<compile_context>
chip_gen: v6e
topology: v6e:2x2x1
jax: 0.10.0
libtpu: 0.0.40
codegen_flags: <defaults>
</compile_context>

<pallas_src>
import functools

import jax
import jax.numpy as jnp
from jax.experimental import pallas as pl
from jax.experimental.pallas import tpu as pltpu

EPS = 1e-6          # GroupNorm eps (module passes eps=1e-06 explicitly)
PRELU_ALPHA = 0.25  # nn.PReLU() default, re-created every forward call


# ----------------------------------------------------------------------------
# Single fused kernel: fused QKV 1x1-conv -> per-head GN+PReLU -> attention ->
# c x c attn_proj channel mix (VPU FMAs) -> GN+PReLU -> residual.
# One batch sample per grid step.
# ----------------------------------------------------------------------------
def _rtfs_mhsa2d_kernel(xs_ref, xr_ref, w_ref, rows_ref, proj_ref, o_ref,
                        *, N, cN, c, t, f, dq, dv):
    # xs_ref  : (1, t, c*f)  bf16  sequence layout  [tt, ci*f+ff] = x[ci, tt, ff]
    # xr_ref  : (1, t, c*f)  f32   residual in permuted coords
    # w_ref   : (c*f, Wtot)  bf16  fused [kron(Wq,I_f) | kron(Wk,I_f) | kron(Wv,I_f)]
    # rows_ref: (3, Wtot)    f32   rows = [conv bias, GN gamma, GN beta]
    #                              (Q gamma/beta pre-scaled by 1/sqrt(h*f))
    # proj_ref: (c+3, c)     f32   SMEM: rows 0..c-1 = Wp, then bias/gamma/beta
    # o_ref   : (1, t, c*f)  f32   output in permuted coords
    xs = xs_ref[0]                                          # (t, c*f) bf16

    # One MXU pass for Q, K, V of every head (review item 3), f32 accumulation.
    z = jnp.dot(xs, w_ref[...], preferred_element_type=jnp.float32)
    z = z + rows_ref[0:1, :]                                # conv bias

    def gn_prelu(y, gamma, beta):
        # Single-pass GroupNorm(num_groups=1) + affine + PReLU(0.25).
        inv_n = 1.0 / float(y.size)
        mu = jnp.sum(y) * inv_n
        var = jnp.maximum(jnp.sum(y * y) * inv_n - mu * mu, 0.0)
        yn = (y - mu) * jax.lax.rsqrt(var + EPS) * gamma + beta
        return jnp.where(yn >= 0, yn, PRELU_ALPHA * yn)

    # attn_proj accumulators, one (t, f) slab per output channel, seeded with
    # the proj conv bias (scalar broadcast from SMEM).
    blocks = [jnp.zeros((t, f), jnp.float32) + proj_ref[c, co] for co in range(c)]

    koff0 = N * dq
    voff0 = 2 * N * dq
    for n in range(N):
        qo = n * dq
        ko = koff0 + n * dq
        vo = voff0 + n * dv
        q = gn_prelu(z[:, qo:qo + dq],
                     rows_ref[1:2, qo:qo + dq], rows_ref[2:3, qo:qo + dq])
        k = gn_prelu(z[:, ko:ko + dq],
                     rows_ref[1:2, ko:ko + dq], rows_ref[2:3, ko:ko + dq])
        v = gn_prelu(z[:, vo:vo + dv],
                     rows_ref[1:2, vo:vo + dv], rows_ref[2:3, vo:vo + dv])

        # scaled dot-product attention (scale already folded into q's affine).
        s = jax.lax.dot_general(q, k, (((1,), (1,)), ((), ())),
                                preferred_element_type=jnp.float32)   # (t, t)
        s = s - jnp.max(s, axis=-1, keepdims=True)
        e = jnp.exp(s)
        p = e * pl.reciprocal(jnp.sum(e, axis=-1, keepdims=True), approx=True)
        o = jnp.dot(p, v, preferred_element_type=jnp.float32)         # (t, dv)

        # attn_proj: direct c x c channel mix, pure VPU scalar FMAs (item 1).
        for cn in range(cN):
            ci = n * cN + cn
            slab = o[:, cn * f:(cn + 1) * f]                           # (t, f)
            for co in range(c):
                blocks[co] = blocks[co] + proj_ref[ci, co] * slab

    # proj GroupNorm over the whole (c, t, f) slab -- single pass over blocks.
    inv_np = 1.0 / float(c * t * f)
    tot = jnp.sum(blocks[0])
    tot2 = jnp.sum(blocks[0] * blocks[0])
    for co in range(1, c):
        tot = tot + jnp.sum(blocks[co])
        tot2 = tot2 + jnp.sum(blocks[co] * blocks[co])
    mu = tot * inv_np
    rstd = jax.lax.rsqrt(jnp.maximum(tot2 * inv_np - mu * mu, 0.0) + EPS)

    for co in range(c):
        yb = (blocks[co] - mu) * rstd * proj_ref[c + 1, co] + proj_ref[c + 2, co]
        yb = jnp.where(yb >= 0, yb, PRELU_ALPHA * yb)
        o_ref[0, :, co * f:(co + 1) * f] = yb + xr_ref[0, :, co * f:(co + 1) * f]


def forward_pallas(x, params, *, N):
    """x: (b, c, t, f) NCHW.  Returns (b, c, t, f), same as the torch module."""
    b, c, t, f = x.shape
    cN = c // N
    h = params["q"]["W"].shape[-1]
    Dq, Dv, CF = h * f, cN * f, c * f
    Wtot = 2 * N * Dq + N * Dv
    scale = 1.0 / float(Dq) ** 0.5

    I_f = jnp.eye(f, dtype=jnp.float32)

    def kron_heads(W):  # (n_, cin, cout) -> (cin*f, n_*cout*f), heads fused on lanes
        n_, cin, cout = W.shape
        Wk = jnp.einsum("nio,ab->niaob", W, I_f).reshape(n_, cin * f, cout * f)
        return jnp.transpose(Wk, (1, 0, 2)).reshape(cin * f, n_ * cout * f)

    w_all = jnp.concatenate([kron_heads(params["q"]["W"]),
                             kron_heads(params["k"]["W"]),
                             kron_heads(params["v"]["W"])], axis=1)    # (CF, Wtot)

    def rep_f(a):       # (n_, 1, cout) -> (n_*cout*f,)
        return jnp.repeat(a[:, 0, :], f, axis=-1).reshape(-1)

    bias_row = jnp.concatenate([rep_f(params["q"]["b"]), rep_f(params["k"]["b"]),
                                rep_f(params["v"]["b"])])
    gamma_row = jnp.concatenate([rep_f(params["q"]["g"]) * scale,      # item 5
                                 rep_f(params["k"]["g"]), rep_f(params["v"]["g"])])
    beta_row = jnp.concatenate([rep_f(params["q"]["beta"]) * scale,
                                rep_f(params["k"]["beta"]), rep_f(params["v"]["beta"])])
    rows = jnp.stack([bias_row, gamma_row, beta_row], axis=0)          # (3, Wtot)

    # attn_proj scalars packed for SMEM: rows 0..c-1 = Wp, then bias/gamma/beta.
    proj_tab = jnp.concatenate([params["proj"]["W"][0],
                                params["proj"]["b"][:, 0, :],
                                params["proj"]["g"][:, 0, :],
                                params["proj"]["beta"][:, 0, :]], axis=0)  # (c+3, c)

    # x in sequence layout (QKV input, bf16 MXU operand) and in permuted coords
    # (residual, f32).  Both are cheap XLA-side relayouts of the tiny activation.
    x_seq = jnp.transpose(x, (0, 2, 1, 3)).reshape(b, t, CF).astype(jnp.bfloat16)
    x_res = jnp.transpose(x.reshape(b, c, f, t), (0, 3, 1, 2)).reshape(b, t, CF)

    kern = functools.partial(_rtfs_mhsa2d_kernel,
                             N=N, cN=cN, c=c, t=t, f=f, dq=Dq, dv=Dv)

    out_perm = pl.pallas_call(
        kern,
        out_shape=jax.ShapeDtypeStruct((b, t, CF), jnp.float32),
        grid=(b,),
        in_specs=[
            pl.BlockSpec((1, t, CF), lambda i: (i, 0, 0)),
            pl.BlockSpec((1, t, CF), lambda i: (i, 0, 0)),
            pl.BlockSpec((CF, Wtot), lambda i: (0, 0)),
            pl.BlockSpec((3, Wtot), lambda i: (0, 0)),
            pl.BlockSpec(memory_space=pltpu.MemorySpace.SMEM),
        ],
        out_specs=pl.BlockSpec((1, t, CF), lambda i: (i, 0, 0)),
        compiler_params=pltpu.CompilerParams(
            dimension_semantics=("parallel",),
            vmem_limit_bytes=32 * 1024 * 1024),
    )(x_seq, x_res, w_all.astype(jnp.bfloat16), rows, proj_tab)

    # Undo the permuted layout; the flat (f, t) block is reinterpreted as (t, f)
    # exactly as the torch reshape chain does (pure reshapes + one transpose).
    out = jnp.transpose(out_perm.reshape(b, t, c, f), (0, 2, 3, 1))
    return out.reshape(b, c, t, f)


# ----------------------------------------------------------------------------
# Pure-JAX reference (mirrors the PyTorch forward op-for-op, no Pallas)
# ----------------------------------------------------------------------------
def _convnorm_ref(x_blc, W, bias, gamma, beta):
    y = jnp.einsum("blc,nco->nblo", x_blc, W) + bias[:, None]
    mu = jnp.mean(y, axis=(2, 3), keepdims=True)
    var = jnp.mean((y - mu) ** 2, axis=(2, 3), keepdims=True)
    yn = (y - mu) / jnp.sqrt(var + EPS) * gamma[:, None] + beta[:, None]
    return jnp.where(yn >= 0, yn, PRELU_ALPHA * yn)


def _attention_ref(Q, K, V):
    scale = 1.0 / (Q.shape[-1] ** 0.5)
    s = jnp.einsum("ntd,nsd->nts", Q, K) * scale
    p = jax.nn.softmax(s, axis=-1)
    return jnp.einsum("nts,nsd->ntd", p, V)


def forward_reference(x, params, *, N):
    b, c, t, f = x.shape
    L = t * f
    cN = c // N
    h = params["q"]["W"].shape[-1]
    x_blc = jnp.transpose(x, (0, 2, 3, 1)).reshape(b, L, c)

    q = _convnorm_ref(x_blc, params["q"]["W"], params["q"]["b"],
                      params["q"]["g"], params["q"]["beta"])
    k = _convnorm_ref(x_blc, params["k"]["W"], params["k"]["b"],
                      params["k"]["g"], params["k"]["beta"])
    v = _convnorm_ref(x_blc, params["v"]["W"], params["v"]["b"],
                      params["v"]["g"], params["v"]["beta"])

    def to_seq(y, ch):
        y = y.reshape(N, b, t, f, ch)
        y = jnp.transpose(y, (0, 1, 2, 4, 3))
        return y.reshape(N * b, t, ch * f)

    Q, K, V = to_seq(q, h), to_seq(k, h), to_seq(v, cN)
    O = _attention_ref(Q, K, V)

    # torch: reshape(b*N,t,c*f//N).transpose(1,2).reshape([N,b,c//N,t,f])
    #        .transpose(0,1).reshape([b,c,t,f])   (flat (f,t)->(t,f) reinterp)
    V5 = O.reshape(N, b, t, cN, f)
    V5 = jnp.transpose(V5, (0, 1, 3, 4, 2))
    V5 = V5.reshape(N, b, cN, t, f)
    V5 = jnp.transpose(V5, (1, 0, 2, 3, 4)).reshape(b, c, t, f)

    v_blc = jnp.transpose(V5, (0, 2, 3, 1)).reshape(b, L, c)
    proj = _convnorm_ref(v_blc, params["proj"]["W"], params["proj"]["b"],
                         params["proj"]["g"], params["proj"]["beta"])
    proj = jnp.transpose(proj[0].reshape(b, t, f, c), (0, 3, 1, 2))
    return proj + x


# ----------------------------------------------------------------------------
# Parameter init (deterministic, synthetic)
# ----------------------------------------------------------------------------
def _make_convnorm_params(key, n, cin, cout):
    k1, k2, k3, k4 = jax.random.split(key, 4)
    return dict(
        W=jax.random.normal(k1, (n, cin, cout), jnp.float32) * 0.3,
        b=jax.random.normal(k2, (n, 1, cout), jnp.float32) * 0.05,
        g=1.0 + jax.random.normal(k3, (n, 1, cout), jnp.float32) * 0.05,
        beta=jax.random.normal(k4, (n, 1, cout), jnp.float32) * 0.05,
    )


def init_params(key, in_channels, hidden_channels, N):
    kq, kk, kv, kp = jax.random.split(key, 4)
    return dict(
        q=_make_convnorm_params(kq, N, in_channels, hidden_channels),
        k=_make_convnorm_params(kk, N, in_channels, hidden_channels),
        v=_make_convnorm_params(kv, N, in_channels, in_channels // N),
        proj=_make_convnorm_params(kp, 1, in_channels, in_channels),
    )


if __name__ == "__main__":
    # Small shapes consistent with the module: x is NCHW (b, c, t, f)
    b, c, t, f = 2, 4, 16, 16
    hidden, N = 8, 4

    root = jax.random.PRNGKey(0)
    kx, kparam = jax.random.split(root)
    x = jax.random.normal(kx, (b, c, t, f), jnp.float32)
    params = init_params(kparam, c, hidden, N)

    fwd_pallas = jax.jit(functools.partial(forward_pallas, N=N))
    fwd_ref = jax.jit(functools.partial(forward_reference, N=N))

    out = fwd_pallas(x, params)
    jax.block_until_ready(out)
    ref = fwd_ref(x, params)
    jax.block_until_ready(ref)

    assert out.shape == (b, c, t, f), out.shape
    assert bool(jnp.all(jnp.isfinite(out)))
    err = float(jnp.max(jnp.abs(out - ref)))
    # 5e-2 tolerance: bf16 MXU operands for the fused QKV projection (per perf
    # review) plus the approx-EUP reciprocal in the softmax, vs. the all-f32
    # reference; all statistics/accumulation stay in f32.
    assert err < 5e-2, f"max abs err vs reference: {err}"
    print("KERNEL_OK")
</pallas_src>

<mosaic_0001>
module attributes {stable_mosaic.version = 11 : i64} {
  func.func @_rtfs_mhsa2d_kernel(%arg0: i32, %arg1: memref<1x16x64xbf16, #tpu.memory_space<vmem>>, %arg2: memref<1x16x64xf32, #tpu.memory_space<vmem>>, %arg3: memref<64x1088xbf16, #tpu.memory_space<vmem>>, %arg4: memref<3x1088xf32, #tpu.memory_space<vmem>>, %arg5: memref<7x4xf32, #tpu.memory_space<smem>>, %arg6: memref<1x16x64xf32, #tpu.memory_space<vmem>>) attributes {dimension_semantics = [#tpu.dimension_semantics<parallel>], iteration_bounds = array<i64: 2>, scalar_prefetch = 0 : i64, scratch_operands = 0 : i64, tpu.core_type = #tpu.core_type<tc>, window_params = [{transform_indices = @transform_0, window_bounds = array<i64: 1, 16, 64>}, {transform_indices = @transform_1, window_bounds = array<i64: 1, 16, 64>}, {pipeline_mode = #tpu.pipeline_mode<synchronous>, transform_indices = @transform_2, window_bounds = array<i64: 64, 1088>}, {pipeline_mode = #tpu.pipeline_mode<synchronous>, transform_indices = @transform_3, window_bounds = array<i64: 3, 1088>}, {transform_indices = @transform_4, window_bounds = array<i64: 7, 4>}, {transform_indices = @transform_5, window_bounds = array<i64: 1, 16, 64>}]} {
    %c0 = arith.constant 0 : index
    %c0_0 = arith.constant 0 : index
    %c0_1 = arith.constant 0 : index
    %0 = vector.load %arg1[%c0, %c0_0, %c0_1] : memref<1x16x64xbf16, #tpu.memory_space<vmem>>, vector<1x16x64xbf16>
    %1 = vector.shape_cast %0 : vector<1x16x64xbf16> to vector<16x64xbf16>
    %c0_2 = arith.constant 0 : index
    %c0_3 = arith.constant 0 : index
    %2 = vector.load %arg3[%c0_2, %c0_3] : memref<64x1088xbf16, #tpu.memory_space<vmem>>, vector<64x1088xbf16>
    %cst = arith.constant dense<0.000000e+00> : vector<16x1088xf32>
    %3 = tpu.matmul %1, %2, %cst {dimension_numbers = #tpu.dot_dimension_numbers<[1], [0], [0], [1], [0, 0, 1, 1], [], []>} : vector<16x64xbf16>, vector<64x1088xbf16>, vector<16x1088xf32> -> vector<16x1088xf32>
    %c0_4 = arith.constant 0 : index
    %c0_5 = arith.constant 0 : index
    %4 = vector.load %arg4[%c0_4, %c0_5] : memref<3x1088xf32, #tpu.memory_space<vmem>>, vector<1x1088xf32>
    %5 = vector.broadcast %4 : vector<1x1088xf32> to vector<16x1088xf32>
    %6 = arith.addf %3, %5 : vector<16x1088xf32>
    %cst_6 = arith.constant 0.000000e+00 : f32
    %7 = vector.broadcast %cst_6 : f32 to vector<16x16xf32>
    %c4 = arith.constant 4 : index
    %c0_7 = arith.constant 0 : index
    %8 = memref.load %arg5[%c4, %c0_7] : memref<7x4xf32, #tpu.memory_space<smem>>
    %9 = vector.broadcast %8 : f32 to vector<16x16xf32>
    %10 = arith.addf %7, %9 : vector<16x16xf32>
    %cst_8 = arith.constant 0.000000e+00 : f32
    %11 = vector.broadcast %cst_8 : f32 to vector<16x16xf32>
    %c4_9 = arith.constant 4 : index
    %c1 = arith.constant 1 : index
    %12 = memref.load %arg5[%c4_9, %c1] : memref<7x4xf32, #tpu.memory_space<smem>>
    %13 = vector.broadcast %12 : f32 to vector<16x16xf32>
    %14 = arith.addf %11, %13 : vector<16x16xf32>
    %cst_10 = arith.constant 0.000000e+00 : f32
    %15 = vector.broadcast %cst_10 : f32 to vector<16x16xf32>
    %c4_11 = arith.constant 4 : index
    %c2 = arith.constant 2 : index
    %16 = memref.load %arg5[%c4_11, %c2] : memref<7x4xf32, #tpu.memory_space<smem>>
    %17 = vector.broadcast %16 : f32 to vector<16x16xf32>
    %18 = arith.addf %15, %17 : vector<16x16xf32>
    %cst_12 = arith.constant 0.000000e+00 : f32
    %19 = vector.broadcast %cst_12 : f32 to vector<16x16xf32>
    %c4_13 = arith.constant 4 : index
    %c3 = arith.constant 3 : index
    %20 = memref.load %arg5[%c4_13, %c3] : memref<7x4xf32, #tpu.memory_space<smem>>
    %21 = vector.broadcast %20 : f32 to vector<16x16xf32>
    %22 = arith.addf %19, %21 : vector<16x16xf32>
    %23 = vector.extract_strided_slice %6 {offsets = [0, 0], sizes = [16, 128], strides = [1, 1]} : vector<16x1088xf32> to vector<16x128xf32>
    %c1_14 = arith.constant 1 : index
    %c0_15 = arith.constant 0 : index
    %24 = vector.load %arg4[%c1_14, %c0_15] : memref<3x1088xf32, #tpu.memory_space<vmem>>, vector<1x128xf32>
    %c2_16 = arith.constant 2 : index
    %c0_17 = arith.constant 0 : index
    %25 = vector.load %arg4[%c2_16, %c0_17] : memref<3x1088xf32, #tpu.memory_space<vmem>>, vector<1x128xf32>
    %26 = vector.shape_cast %23 : vector<16x128xf32> to vector<1x16x128xf32>
    %cst_18 = arith.constant dense<0.000000e+00> : vector<1xf32>
    %27 = vector.multi_reduction <add>, %26, %cst_18 [1, 2] : vector<1x16x128xf32> to vector<1xf32>
    %28 = vector.shape_cast %27 : vector<1xf32> to vector<1x1x1xf32>
    %29 = vector.extract %28[0, 0, 0] : f32 from vector<1x1x1xf32>
    %cst_19 = arith.constant 4.8828125E-4 : f32
    %30 = arith.mulf %29, %cst_19 : f32
    %31 = arith.mulf %23, %23 : vector<16x128xf32>
    %32 = vector.shape_cast %31 : vector<16x128xf32> to vector<1x16x128xf32>
    %cst_20 = arith.constant dense<0.000000e+00> : vector<1xf32>
    %33 = vector.multi_reduction <add>, %32, %cst_20 [1, 2] : vector<1x16x128xf32> to vector<1xf32>
    %34 = vector.shape_cast %33 : vector<1xf32> to vector<1x1x1xf32>
    %35 = vector.extract %34[0, 0, 0] : f32 from vector<1x1x1xf32>
    %cst_21 = arith.constant 4.8828125E-4 : f32
    %36 = arith.mulf %35, %cst_21 : f32
    %37 = arith.mulf %30, %30 : f32
    %38 = arith.subf %36, %37 : f32
    %cst_22 = arith.constant 0.000000e+00 : f32
    %39 = arith.maximumf %38, %cst_22 : f32
    %40 = vector.broadcast %30 : f32 to vector<16x128xf32>
    %41 = arith.subf %23, %40 : vector<16x128xf32>
    %cst_23 = arith.constant 9.99999997E-7 : f32
    %42 = arith.addf %39, %cst_23 : f32
    %43 = math.rsqrt %42 : f32
    %44 = vector.broadcast %43 : f32 to vector<16x128xf32>
    %45 = arith.mulf %41, %44 : vector<16x128xf32>
    %46 = vector.broadcast %24 : vector<1x128xf32> to vector<16x128xf32>
    %47 = arith.mulf %45, %46 : vector<16x128xf32>
    %48 = vector.broadcast %25 : vector<1x128xf32> to vector<16x128xf32>
    %49 = arith.addf %47, %48 : vector<16x128xf32>
    %cst_24 = arith.constant 0.000000e+00 : f32
    %50 = vector.broadcast %cst_24 : f32 to vector<16x128xf32>
    %51 = arith.cmpf oge, %49, %50 : vector<16x128xf32>
    %cst_25 = arith.constant 2.500000e-01 : f32
    %52 = vector.broadcast %cst_25 : f32 to vector<16x128xf32>
    %53 = arith.mulf %52, %49 : vector<16x128xf32>
    %54 = arith.select %51, %49, %53 : vector<16x128xi1>, vector<16x128xf32>
    %55 = vector.extract_strided_slice %6 {offsets = [0, 512], sizes = [16, 128], strides = [1, 1]} : vector<16x1088xf32> to vector<16x128xf32>
    %c1_26 = arith.constant 1 : index
    %c512 = arith.constant 512 : index
    %56 = vector.load %arg4[%c1_26, %c512] : memref<3x1088xf32, #tpu.memory_space<vmem>>, vector<1x128xf32>
    %c2_27 = arith.constant 2 : index
    %c512_28 = arith.constant 512 : index
    %57 = vector.load %arg4[%c2_27, %c512_28] : memref<3x1088xf32, #tpu.memory_space<vmem>>, vector<1x128xf32>
    %58 = vector.shape_cast %55 : vector<16x128xf32> to vector<1x16x128xf32>
    %cst_29 = arith.constant dense<0.000000e+00> : vector<1xf32>
    %59 = vector.multi_reduction <add>, %58, %cst_29 [1, 2] : vector<1x16x128xf32> to vector<1xf32>
    %60 = vector.shape_cast %59 : vector<1xf32> to vector<1x1x1xf32>
    %61 = vector.extract %60[0, 0, 0] : f32 from vector<1x1x1xf32>
    %cst_30 = arith.constant 4.8828125E-4 : f32
    %62 = arith.mulf %61, %cst_30 : f32
    %63 = arith.mulf %55, %55 : vector<16x128xf32>
    %64 = vector.shape_cast %63 : vector<16x128xf32> to vector<1x16x128xf32>
    %cst_31 = arith.constant dense<0.000000e+00> : vector<1xf32>
    %65 = vector.multi_reduction <add>, %64, %cst_31 [1, 2] : vector<1x16x128xf32> to vector<1xf32>
    %66 = vector.shape_cast %65 : vector<1xf32> to vector<1x1x1xf32>
    %67 = vector.extract %66[0, 0, 0] : f32 from vector<1x1x1xf32>
    %cst_32 = arith.constant 4.8828125E-4 : f32
    %68 = arith.mulf %67, %cst_32 : f32
    %69 = arith.mulf %62, %62 : f32
    %70 = arith.subf %68, %69 : f32
    %cst_33 = arith.constant 0.000000e+00 : f32
    %71 = arith.maximumf %70, %cst_33 : f32
    %72 = vector.broadcast %62 : f32 to vector<16x128xf32>
    %73 = arith.subf %55, %72 : vector<16x128xf32>
    %cst_34 = arith.constant 9.99999997E-7 : f32
    %74 = arith.addf %71, %cst_34 : f32
    %75 = math.rsqrt %74 : f32
    %76 = vector.broadcast %75 : f32 to vector<16x128xf32>
    %77 = arith.mulf %73, %76 : vector<16x128xf32>
    %78 = vector.broadcast %56 : vector<1x128xf32> to vector<16x128xf32>
    %79 = arith.mulf %77, %78 : vector<16x128xf32>
    %80 = vector.broadcast %57 : vector<1x128xf32> to vector<16x128xf32>
    %81 = arith.addf %79, %80 : vector<16x128xf32>
    %cst_35 = arith.constant 0.000000e+00 : f32
    %82 = vector.broadcast %cst_35 : f32 to vector<16x128xf32>
    %83 = arith.cmpf oge, %81, %82 : vector<16x128xf32>
    %cst_36 = arith.constant 2.500000e-01 : f32
    %84 = vector.broadcast %cst_36 : f32 to vector<16x128xf32>
    %85 = arith.mulf %84, %81 : vector<16x128xf32>
    %86 = arith.select %83, %81, %85 : vector<16x128xi1>, vector<16x128xf32>
    %87 = vector.extract_strided_slice %6 {offsets = [0, 1024], sizes = [16, 16], strides = [1, 1]} : vector<16x1088xf32> to vector<16x16xf32>
    %c1_37 = arith.constant 1 : index
    %c1024 = arith.constant 1024 : index
    %88 = vector.load %arg4[%c1_37, %c1024] : memref<3x1088xf32, #tpu.memory_space<vmem>>, vector<1x16xf32>
    %c2_38 = arith.constant 2 : index
    %c1024_39 = arith.constant 1024 : index
    %89 = vector.load %arg4[%c2_38, %c1024_39] : memref<3x1088xf32, #tpu.memory_space<vmem>>, vector<1x16xf32>
    %90 = vector.shape_cast %87 : vector<16x16xf32> to vector<1x16x16xf32>
    %cst_40 = arith.constant dense<0.000000e+00> : vector<1xf32>
    %91 = vector.multi_reduction <add>, %90, %cst_40 [1, 2] : vector<1x16x16xf32> to vector<1xf32>
    %92 = vector.shape_cast %91 : vector<1xf32> to vector<1x1x1xf32>
    %93 = vector.extract %92[0, 0, 0] : f32 from vector<1x1x1xf32>
    %cst_41 = arith.constant 3.906250e-03 : f32
    %94 = arith.mulf %93, %cst_41 : f32
    %95 = arith.mulf %87, %87 : vector<16x16xf32>
    %96 = vector.shape_cast %95 : vector<16x16xf32> to vector<1x16x16xf32>
    %cst_42 = arith.constant dense<0.000000e+00> : vector<1xf32>
    %97 = vector.multi_reduction <add>, %96, %cst_42 [1, 2] : vector<1x16x16xf32> to vector<1xf32>
    %98 = vector.shape_cast %97 : vector<1xf32> to vector<1x1x1xf32>
    %99 = vector.extract %98[0, 0, 0] : f32 from vector<1x1x1xf32>
    %cst_43 = arith.constant 3.906250e-03 : f32
    %100 = arith.mulf %99, %cst_43 : f32
    %101 = arith.mulf %94, %94 : f32
    %102 = arith.subf %100, %101 : f32
    %cst_44 = arith.constant 0.000000e+00 : f32
    %103 = arith.maximumf %102, %cst_44 : f32
    %104 = vector.broadcast %94 : f32 to vector<16x16xf32>
    %105 = arith.subf %87, %104 : vector<16x16xf32>
    %cst_45 = arith.constant 9.99999997E-7 : f32
    %106 = arith.addf %103, %cst_45 : f32
    %107 = math.rsqrt %106 : f32
    %108 = vector.broadcast %107 : f32 to vector<16x16xf32>
    %109 = arith.mulf %105, %108 : vector<16x16xf32>
    %110 = vector.broadcast %88 : vector<1x16xf32> to vector<16x16xf32>
    %111 = arith.mulf %109, %110 : vector<16x16xf32>
    %112 = vector.broadcast %89 : vector<1x16xf32> to vector<16x16xf32>
    %113 = arith.addf %111, %112 : vector<16x16xf32>
    %cst_46 = arith.constant 0.000000e+00 : f32
    %114 = vector.broadcast %cst_46 : f32 to vector<16x16xf32>
    %115 = arith.cmpf oge, %113, %114 : vector<16x16xf32>
    %cst_47 = arith.constant 2.500000e-01 : f32
    %116 = vector.broadcast %cst_47 : f32 to vector<16x16xf32>
    %117 = arith.mulf %116, %113 : vector<16x16xf32>
    %118 = arith.select %115, %113, %117 : vector<16x16xi1>, vector<16x16xf32>
    %cst_48 = arith.constant dense<0.000000e+00> : vector<16x16xf32>
    %119 = tpu.matmul %54, %86, %cst_48 {dimension_numbers = #tpu.dot_dimension_numbers<[1], [1], [0], [0], [0, 0, 1, 0], [], []>} : vector<16x128xf32>, vector<16x128xf32>, vector<16x16xf32> -> vector<16x16xf32>
    %cst_49 = arith.constant dense<0xFF800000> : vector<16xf32>
    %120 = vector.multi_reduction <maximumf>, %119, %cst_49 [1] : vector<16x16xf32> to vector<16xf32>
    %121 = vector.shape_cast %120 : vector<16xf32> to vector<16x1xf32>
    %122 = vector.broadcast %121 : vector<16x1xf32> to vector<16x16xf32>
    %123 = arith.subf %119, %122 : vector<16x16xf32>
    %124 = math.exp %123 : vector<16x16xf32>
    %cst_50 = arith.constant dense<0.000000e+00> : vector<16xf32>
    %125 = vector.multi_reduction <add>, %124, %cst_50 [1] : vector<16x16xf32> to vector<16xf32>
    %126 = vector.shape_cast %125 : vector<16xf32> to vector<16x1xf32>
    %127 = tpu.reciprocal %126 {approx = true} : vector<16x1xf32> -> vector<16x1xf32>
    %128 = vector.broadcast %127 : vector<16x1xf32> to vector<16x16xf32>
    %129 = arith.mulf %124, %128 : vector<16x16xf32>
    %cst_51 = arith.constant dense<0.000000e+00> : vector<16x16xf32>
    %130 = tpu.matmul %129, %118, %cst_51 {dimension_numbers = #tpu.dot_dimension_numbers<[1], [0], [0], [1], [0, 0, 1, 1], [], []>} : vector<16x16xf32>, vector<16x16xf32>, vector<16x16xf32> -> vector<16x16xf32>
    %c0_52 = arith.constant 0 : index
    %c0_53 = arith.constant 0 : index
    %131 = memref.load %arg5[%c0_52, %c0_53] : memref<7x4xf32, #tpu.memory_space<smem>>
    %132 = vector.broadcast %131 : f32 to vector<16x16xf32>
    %133 = arith.mulf %132, %130 : vector<16x16xf32>
    %134 = arith.addf %10, %133 : vector<16x16xf32>
    %c0_54 = arith.constant 0 : index
    %c1_55 = arith.constant 1 : index
    %135 = memref.load %arg5[%c0_54, %c1_55] : memref<7x4xf32, #tpu.memory_space<smem>>
    %136 = vector.broadcast %135 : f32 to vector<16x16xf32>
    %137 = arith.mulf %136, %130 : vector<16x16xf32>
    %138 = arith.addf %14, %137 : vector<16x16xf32>
    %c0_56 = arith.constant 0 : index
    %c2_57 = arith.constant 2 : index
    %139 = memref.load %arg5[%c0_56, %c2_57] : memref<7x4xf32, #tpu.memory_space<smem>>
    %140 = vector.broadcast %139 : f32 to vector<16x16xf32>
    %141 = arith.mulf %140, %130 : vector<16x16xf32>
    %142 = arith.addf %18, %141 : vector<16x16xf32>
    %c0_58 = arith.constant 0 : index
    %c3_59 = arith.constant 3 : index
    %143 = memref.load %arg5[%c0_58, %c3_59] : memref<7x4xf32, #tpu.memory_space<smem>>
    %144 = vector.broadcast %143 : f32 to vector<16x16xf32>
    %145 = arith.mulf %144, %130 : vector<16x16xf32>
    %146 = arith.addf %22, %145 : vector<16x16xf32>
    %147 = vector.extract_strided_slice %6 {offsets = [0, 128], sizes = [16, 128], strides = [1, 1]} : vector<16x1088xf32> to vector<16x128xf32>
    %c1_60 = arith.constant 1 : index
    %c128 = arith.constant 128 : index
    %148 = vector.load %arg4[%c1_60, %c128] : memref<3x1088xf32, #tpu.memory_space<vmem>>, vector<1x128xf32>
    %c2_61 = arith.constant 2 : index
    %c128_62 = arith.constant 128 : index
    %149 = vector.load %arg4[%c2_61, %c128_62] : memref<3x1088xf32, #tpu.memory_space<vmem>>, vector<1x128xf32>
    %150 = vector.shape_cast %147 : vector<16x128xf32> to vector<1x16x128xf32>
    %cst_63 = arith.constant dense<0.000000e+00> : vector<1xf32>
    %151 = vector.multi_reduction <add>, %150, %cst_63 [1, 2] : vector<1x16x128xf32> to vector<1xf32>
    %152 = vector.shape_cast %151 : vector<1xf32> to vector<1x1x1xf32>
    %153 = vector.extract %152[0, 0, 0] : f32 from vector<1x1x1xf32>
    %cst_64 = arith.constant 4.8828125E-4 : f32
    %154 = arith.mulf %153, %cst_64 : f32
    %155 = arith.mulf %147, %147 : vector<16x128xf32>
    %156 = vector.shape_cast %155 : vector<16x128xf32> to vector<1x16x128xf32>
    %cst_65 = arith.constant dense<0.000000e+00> : vector<1xf32>
    %157 = vector.multi_reduction <add>, %156, %cst_65 [1, 2] : vector<1x16x128xf32> to vector<1xf32>
    %158 = vector.shape_cast %157 : vector<1xf32> to vector<1x1x1xf32>
    %159 = vector.extract %158[0, 0, 0] : f32 from vector<1x1x1xf32>
    %cst_66 = arith.constant 4.8828125E-4 : f32
    %160 = arith.mulf %159, %cst_66 : f32
    %161 = arith.mulf %154, %154 : f32
    %162 = arith.subf %160, %161 : f32
    %cst_67 = arith.constant 0.000000e+00 : f32
    %163 = arith.maximumf %162, %cst_67 : f32
    %164 = vector.broadcast %154 : f32 to vector<16x128xf32>
    %165 = arith.subf %147, %164 : vector<16x128xf32>
    %cst_68 = arith.constant 9.99999997E-7 : f32
    %166 = arith.addf %163, %cst_68 : f32
    %167 = math.rsqrt %166 : f32
    %168 = vector.broadcast %167 : f32 to vector<16x128xf32>
    %169 = arith.mulf %165, %168 : vector<16x128xf32>
    %170 = vector.broadcast %148 : vector<1x128xf32> to vector<16x128xf32>
    %171 = arith.mulf %169, %170 : vector<16x128xf32>
    %172 = vector.broadcast %149 : vector<1x128xf32> to vector<16x128xf32>
    %173 = arith.addf %171, %172 : vector<16x128xf32>
    %cst_69 = arith.constant 0.000000e+00 : f32
    %174 = vector.broadcast %cst_69 : f32 to vector<16x128xf32>
    %175 = arith.cmpf oge, %173, %174 : vector<16x128xf32>
    %cst_70 = arith.constant 2.500000e-01 : f32
    %176 = vector.broadcast %cst_70 : f32 to vector<16x128xf32>
    %177 = arith.mulf %176, %173 : vector<16x128xf32>
    %178 = arith.select %175, %173, %177 : vector<16x128xi1>, vector<16x128xf32>
    %179 = vector.extract_strided_slice %6 {offsets = [0, 640], sizes = [16, 128], strides = [1, 1]} : vector<16x1088xf32> to vector<16x128xf32>
    %c1_71 = arith.constant 1 : index
    %c640 = arith.constant 640 : index
    %180 = vector.load %arg4[%c1_71, %c640] : memref<3x1088xf32, #tpu.memory_space<vmem>>, vector<1x128xf32>
    %c2_72 = arith.constant 2 : index
    %c640_73 = arith.constant 640 : index
    %181 = vector.load %arg4[%c2_72, %c640_73] : memref<3x1088xf32, #tpu.memory_space<vmem>>, vector<1x128xf32>
    %182 = vector.shape_cast %179 : vector<16x128xf32> to vector<1x16x128xf32>
    %cst_74 = arith.constant dense<0.000000e+00> : vector<1xf32>
    %183 = vector.multi_reduction <add>, %182, %cst_74 [1, 2] : vector<1x16x128xf32> to vector<1xf32>
    %184 = vector.shape_cast %183 : vector<1xf32> to vector<1x1x1xf32>
    %185 = vector.extract %184[0, 0, 0] : f32 from vector<1x1x1xf32>
    %cst_75 = arith.constant 4.8828125E-4 : f32
    %186 = arith.mulf %185, %cst_75 : f32
    %187 = arith.mulf %179, %179 : vector<16x128xf32>
    %188 = vector.shape_cast %187 : vector<16x128xf32> to vector<1x16x128xf32>
    %cst_76 = arith.constant dense<0.000000e+00> : vector<1xf32>
    %189 = vector.multi_reduction <add>, %188, %cst_76 [1, 2] : vector<1x16x128xf32> to vector<1xf32>
    %190 = vector.shape_cast %189 : vector<1xf32> to vector<1x1x1xf32>
    %191 = vector.extract %190[0, 0, 0] : f32 from vector<1x1x1xf32>
    %cst_77 = arith.constant 4.8828125E-4 : f32
    %192 = arith.mulf %191, %cst_77 : f32
    %193 = arith.mulf %186, %186 : f32
    %194 = arith.subf %192, %193 : f32
    %cst_78 = arith.constant 0.000000e+00 : f32
    %195 = arith.maximumf %194, %cst_78 : f32
    %196 = vector.broadcast %186 : f32 to vector<16x128xf32>
    %197 = arith.subf %179, %196 : vector<16x128xf32>
    %cst_79 = arith.constant 9.99999997E-7 : f32
    %198 = arith.addf %195, %cst_79 : f32
    %199 = math.rsqrt %198 : f32
    %200 = vector.broadcast %199 : f32 to vector<16x128xf32>
    %201 = arith.mulf %197, %200 : vector<16x128xf32>
    %202 = vector.broadcast %180 : vector<1x128xf32> to vector<16x128xf32>
    %203 = arith.mulf %201, %202 : vector<16x128xf32>
    %204 = vector.broadcast %181 : vector<1x128xf32> to vector<16x128xf32>
    %205 = arith.addf %203, %204 : vector<16x128xf32>
    %cst_80 = arith.constant 0.000000e+00 : f32
    %206 = vector.broadcast %cst_80 : f32 to vector<16x128xf32>
    %207 = arith.cmpf oge, %205, %206 : vector<16x128xf32>
    %cst_81 = arith.constant 2.500000e-01 : f32
    %208 = vector.broadcast %cst_81 : f32 to vector<16x128xf32>
    %209 = arith.mulf %208, %205 : vector<16x128xf32>
    %210 = arith.select %207, %205, %209 : vector<16x128xi1>, vector<16x128xf32>
    %211 = vector.extract_strided_slice %6 {offsets = [0, 1040], sizes = [16, 16], strides = [1, 1]} : vector<16x1088xf32> to vector<16x16xf32>
    %c1_82 = arith.constant 1 : index
    %c1040 = arith.constant 1040 : index
    %212 = vector.load %arg4[%c1_82, %c1040] : memref<3x1088xf32, #tpu.memory_space<vmem>>, vector<1x16xf32>
    %c2_83 = arith.constant 2 : index
    %c1040_84 = arith.constant 1040 : index
    %213 = vector.load %arg4[%c2_83, %c1040_84] : memref<3x1088xf32, #tpu.memory_space<vmem>>, vector<1x16xf32>
    %214 = vector.shape_cast %211 : vector<16x16xf32> to vector<1x16x16xf32>
    %cst_85 = arith.constant dense<0.000000e+00> : vector<1xf32>
    %215 = vector.multi_reduction <add>, %214, %cst_85 [1, 2] : vector<1x16x16xf32> to vector<1xf32>
    %216 = vector.shape_cast %215 : vector<1xf32> to vector<1x1x1xf32>
    %217 = vector.extract %216[0, 0, 0] : f32 from vector<1x1x1xf32>
    %cst_86 = arith.constant 3.906250e-03 : f32
    %218 = arith.mulf %217, %cst_86 : f32
    %219 = arith.mulf %211, %211 : vector<16x16xf32>
    %220 = vector.shape_cast %219 : vector<16x16xf32> to vector<1x16x16xf32>
    %cst_87 = arith.constant dense<0.000000e+00> : vector<1xf32>
    %221 = vector.multi_reduction <add>, %220, %cst_87 [1, 2] : vector<1x16x16xf32> to vector<1xf32>
    %222 = vector.shape_cast %221 : vector<1xf32> to vector<1x1x1xf32>
    %223 = vector.extract %222[0, 0, 0] : f32 from vector<1x1x1xf32>
    %cst_88 = arith.constant 3.906250e-03 : f32
    %224 = arith.mulf %223, %cst_88 : f32
    %225 = arith.mulf %218, %218 : f32
    %226 = arith.subf %224, %225 : f32
    %cst_89 = arith.constant 0.000000e+00 : f32
    %227 = arith.maximumf %226, %cst_89 : f32
    %228 = vector.broadcast %218 : f32 to vector<16x16xf32>
    %229 = arith.subf %211, %228 : vector<16x16xf32>
    %cst_90 = arith.constant 9.99999997E-7 : f32
    %230 = arith.addf %227, %cst_90 : f32
    %231 = math.rsqrt %230 : f32
    %232 = vector.broadcast %231 : f32 to vector<16x16xf32>
    %233 = arith.mulf %229, %232 : vector<16x16xf32>
    %234 = vector.broadcast %212 : vector<1x16xf32> to vector<16x16xf32>
    %235 = arith.mulf %233, %234 : vector<16x16xf32>
    %236 = vector.broadcast %213 : vector<1x16xf32> to vector<16x16xf32>
    %237 = arith.addf %235, %236 : vector<16x16xf32>
    %cst_91 = arith.constant 0.000000e+00 : f32
    %238 = vector.broadcast %cst_91 : f32 to vector<16x16xf32>
    %239 = arith.cmpf oge, %237, %238 : vector<16x16xf32>
    %cst_92 = arith.constant 2.500000e-01 : f32
    %240 = vector.broadcast %cst_92 : f32 to vector<16x16xf32>
    %241 = arith.mulf %240, %237 : vector<16x16xf32>
    %242 = arith.select %239, %237, %241 : vector<16x16xi1>, vector<16x16xf32>
    %cst_93 = arith.constant dense<0.000000e+00> : vector<16x16xf32>
    %243 = tpu.matmul %178, %210, %cst_93 {dimension_numbers = #tpu.dot_dimension_numbers<[1], [1], [0], [0], [0, 0, 1, 0], [], []>} : vector<16x128xf32>, vector<16x128xf32>, vector<16x16xf32> -> vector<16x16xf32>
    %cst_94 = arith.constant dense<0xFF800000> : vector<16xf32>
    %244 = vector.multi_reduction <maximumf>, %243, %cst_94 [1] : vector<16x16xf32> to vector<16xf32>
    %245 = vector.shape_cast %244 : vector<16xf32> to vector<16x1xf32>
    %246 = vector.broadcast %245 : vector<16x1xf32> to vector<16x16xf32>
    %247 = arith.subf %243, %246 : vector<16x16xf32>
    %248 = math.exp %247 : vector<16x16xf32>
    %cst_95 = arith.constant dense<0.000000e+00> : vector<16xf32>
    %249 = vector.multi_reduction <add>, %248, %cst_95 [1] : vector<16x16xf32> to vector<16xf32>
    %250 = vector.shape_cast %249 : vector<16xf32> to vector<16x1xf32>
    %251 = tpu.reciprocal %250 {approx = true} : vector<16x1xf32> -> vector<16x1xf32>
    %252 = vector.broadcast %251 : vector<16x1xf32> to vector<16x16xf32>
    %253 = arith.mulf %248, %252 : vector<16x16xf32>
    %cst_96 = arith.constant dense<0.000000e+00> : vector<16x16xf32>
    %254 = tpu.matmul %253, %242, %cst_96 {dimension_numbers = #tpu.dot_dimension_numbers<[1], [0], [0], [1], [0, 0, 1, 1], [], []>} : vector<16x16xf32>, vector<16x16xf32>, vector<16x16xf32> -> vector<16x16xf32>
    %c1_97 = arith.constant 1 : index
    %c0_98 = arith.constant 0 : index
    %255 = memref.load %arg5[%c1_97, %c0_98] : memref<7x4xf32, #tpu.memory_space<smem>>
    %256 = vector.broadcast %255 : f32 to vector<16x16xf32>
    %257 = arith.mulf %256, %254 : vector<16x16xf32>
    %258 = arith.addf %134, %257 : vector<16x16xf32>
    %c1_99 = arith.constant 1 : index
    %c1_100 = arith.constant 1 : index
    %259 = memref.load %arg5[%c1_99, %c1_100] : memref<7x4xf32, #tpu.memory_space<smem>>
    %260 = vector.broadcast %259 : f32 to vector<16x16xf32>
    %261 = arith.mulf %260, %254 : vector<16x16xf32>
    %262 = arith.addf %138, %261 : vector<16x16xf32>
    %c1_101 = arith.constant 1 : index
    %c2_102 = arith.constant 2 : index
    %263 = memref.load %arg5[%c1_101, %c2_102] : memref<7x4xf32, #tpu.memory_space<smem>>
    %264 = vector.broadcast %263 : f32 to vector<16x16xf32>
    %265 = arith.mulf %264, %254 : vector<16x16xf32>
    %266 = arith.addf %142, %265 : vector<16x16xf32>
    %c1_103 = arith.constant 1 : index
    %c3_104 = arith.constant 3 : index
    %267 = memref.load %arg5[%c1_103, %c3_104] : memref<7x4xf32, #tpu.memory_space<smem>>
    %268 = vector.broadcast %267 : f32 to vector<16x16xf32>
    %269 = arith.mulf %268, %254 : vector<16x16xf32>
    %270 = arith.addf %146, %269 : vector<16x16xf32>
    %271 = vector.extract_strided_slice %6 {offsets = [0, 256], sizes = [16, 128], strides = [1, 1]} : vector<16x1088xf32> to vector<16x128xf32>
    %c1_105 = arith.constant 1 : index
    %c256 = arith.constant 256 : index
    %272 = vector.load %arg4[%c1_105, %c256] : memref<3x1088xf32, #tpu.memory_space<vmem>>, vector<1x128xf32>
    %c2_106 = arith.constant 2 : index
    %c256_107 = arith.constant 256 : index
    %273 = vector.load %arg4[%c2_106, %c256_107] : memref<3x1088xf32, #tpu.memory_space<vmem>>, vector<1x128xf32>
    %274 = vector.shape_cast %271 : vector<16x128xf32> to vector<1x16x128xf32>
    %cst_108 = arith.constant dense<0.000000e+00> : vector<1xf32>
    %275 = vector.multi_reduction <add>, %274, %cst_108 [1, 2] : vector<1x16x128xf32> to vector<1xf32>
    %276 = vector.shape_cast %275 : vector<1xf32> to vector<1x1x1xf32>
    %277 = vector.extract %276[0, 0, 0] : f32 from vector<1x1x1xf32>
    %cst_109 = arith.constant 4.8828125E-4 : f32
    %278 = arith.mulf %277, %cst_109 : f32
    %279 = arith.mulf %271, %271 : vector<16x128xf32>
    %280 = vector.shape_cast %279 : vector<16x128xf32> to vector<1x16x128xf32>
    %cst_110 = arith.constant dense<0.000000e+00> : vector<1xf32>
    %281 = vector.multi_reduction <add>, %280, %cst_110 [1, 2] : vector<1x16x128xf32> to vector<1xf32>
    %282 = vector.shape_cast %281 : vector<1xf32> to vector<1x1x1xf32>
    %283 = vector.extract %282[0, 0, 0] : f32 from vector<1x1x1xf32>
    %cst_111 = arith.constant 4.8828125E-4 : f32
    %284 = arith.mulf %283, %cst_111 : f32
    %285 = arith.mulf %278, %278 : f32
    %286 = arith.subf %284, %285 : f32
    %cst_112 = arith.constant 0.000000e+00 : f32
    %287 = arith.maximumf %286, %cst_112 : f32
    %288 = vector.broadcast %278 : f32 to vector<16x128xf32>
    %289 = arith.subf %271, %288 : vector<16x128xf32>
    %cst_113 = arith.constant 9.99999997E-7 : f32
    %290 = arith.addf %287, %cst_113 : f32
    %291 = math.rsqrt %290 : f32
    %292 = vector.broadcast %291 : f32 to vector<16x128xf32>
    %293 = arith.mulf %289, %292 : vector<16x128xf32>
    %294 = vector.broadcast %272 : vector<1x128xf32> to vector<16x128xf32>
    %295 = arith.mulf %293, %294 : vector<16x128xf32>
    %296 = vector.broadcast %273 : vector<1x128xf32> to vector<16x128xf32>
    %297 = arith.addf %295, %296 : vector<16x128xf32>
    %cst_114 = arith.constant 0.000000e+00 : f32
    %298 = vector.broadcast %cst_114 : f32 to vector<16x128xf32>
    %299 = arith.cmpf oge, %297, %298 : vector<16x128xf32>
    %cst_115 = arith.constant 2.500000e-01 : f32
    %300 = vector.broadcast %cst_115 : f32 to vector<16x128xf32>
    %301 = arith.mulf %300, %297 : vector<16x128xf32>
    %302 = arith.select %299, %297, %301 : vector<16x128xi1>, vector<16x128xf32>
    %303 = vector.extract_strided_slice %6 {offsets = [0, 768], sizes = [16, 128], strides = [1, 1]} : vector<16x1088xf32> to vector<16x128xf32>
    %c1_116 = arith.constant 1 : index
    %c768 = arith.constant 768 : index
    %304 = vector.load %arg4[%c1_116, %c768] : memref<3x1088xf32, #tpu.memory_space<vmem>>, vector<1x128xf32>
    %c2_117 = arith.constant 2 : index
    %c768_118 = arith.constant 768 : index
    %305 = vector.load %arg4[%c2_117, %c768_118] : memref<3x1088xf32, #tpu.memory_space<vmem>>, vector<1x128xf32>
    %306 = vector.shape_cast %303 : vector<16x128xf32> to vector<1x16x128xf32>
    %cst_119 = arith.constant dense<0.000000e+00> : vector<1xf32>
    %307 = vector.multi_reduction <add>, %306, %cst_119 [1, 2] : vector<1x16x128xf32> to vector<1xf32>
    %308 = vector.shape_cast %307 : vector<1xf32> to vector<1x1x1xf32>
    %309 = vector.extract %308[0, 0, 0] : f32 from vector<1x1x1xf32>
    %cst_120 = arith.constant 4.8828125E-4 : f32
    %310 = arith.mulf %309, %cst_120 : f32
    %311 = arith.mulf %303, %303 : vector<16x128xf32>
    %312 = vector.shape_cast %311 : vector<16x128xf32> to vector<1x16x128xf32>
    %cst_121 = arith.constant dense<0.000000e+00> : vector<1xf32>
    %313 = vector.multi_reduction <add>, %312, %cst_121 [1, 2] : vector<1x16x128xf32> to vector<1xf32>
    %314 = vector.shape_cast %313 : vector<1xf32> to vector<1x1x1xf32>
    %315 = vector.extract %314[0, 0, 0] : f32 from vector<1x1x1xf32>
    %cst_122 = arith.constant 4.8828125E-4 : f32
    %316 = arith.mulf %315, %cst_122 : f32
    %317 = arith.mulf %310, %310 : f32
    %318 = arith.subf %316, %317 : f32
    %cst_123 = arith.constant 0.000000e+00 : f32
    %319 = arith.maximumf %318, %cst_123 : f32
    %320 = vector.broadcast %310 : f32 to vector<16x128xf32>
    %321 = arith.subf %303, %320 : vector<16x128xf32>
    %cst_124 = arith.constant 9.99999997E-7 : f32
    %322 = arith.addf %319, %cst_124 : f32
    %323 = math.rsqrt %322 : f32
    %324 = vector.broadcast %323 : f32 to vector<16x128xf32>
    %325 = arith.mulf %321, %324 : vector<16x128xf32>
    %326 = vector.broadcast %304 : vector<1x128xf32> to vector<16x128xf32>
    %327 = arith.mulf %325, %326 : vector<16x128xf32>
    %328 = vector.broadcast %305 : vector<1x128xf32> to vector<16x128xf32>
    %329 = arith.addf %327, %328 : vector<16x128xf32>
    %cst_125 = arith.constant 0.000000e+00 : f32
    %330 = vector.broadcast %cst_125 : f32 to vector<16x128xf32>
    %331 = arith.cmpf oge, %329, %330 : vector<16x128xf32>
    %cst_126 = arith.constant 2.500000e-01 : f32
    %332 = vector.broadcast %cst_126 : f32 to vector<16x128xf32>
    %333 = arith.mulf %332, %329 : vector<16x128xf32>
    %334 = arith.select %331, %329, %333 : vector<16x128xi1>, vector<16x128xf32>
    %335 = vector.extract_strided_slice %6 {offsets = [0, 1056], sizes = [16, 16], strides = [1, 1]} : vector<16x1088xf32> to vector<16x16xf32>
    %c1_127 = arith.constant 1 : index
    %c1056 = arith.constant 1056 : index
    %336 = vector.load %arg4[%c1_127, %c1056] : memref<3x1088xf32, #tpu.memory_space<vmem>>, vector<1x16xf32>
    %c2_128 = arith.constant 2 : index
    %c1056_129 = arith.constant 1056 : index
    %337 = vector.load %arg4[%c2_128, %c1056_129] : memref<3x1088xf32, #tpu.memory_space<vmem>>, vector<1x16xf32>
    %338 = vector.shape_cast %335 : vector<16x16xf32> to vector<1x16x16xf32>
    %cst_130 = arith.constant dense<0.000000e+00> : vector<1xf32>
    %339 = vector.multi_reduction <add>, %338, %cst_130 [1, 2] : vector<1x16x16xf32> to vector<1xf32>
    %340 = vector.shape_cast %339 : vector<1xf32> to vector<1x1x1xf32>
    %341 = vector.extract %340[0, 0, 0] : f32 from vector<1x1x1xf32>
    %cst_131 = arith.constant 3.906250e-03 : f32
    %342 = arith.mulf %341, %cst_131 : f32
    %343 = arith.mulf %335, %335 : vector<16x16xf32>
    %344 = vector.shape_cast %343 : vector<16x16xf32> to vector<1x16x16xf32>
    %cst_132 = arith.constant dense<0.000000e+00> : vector<1xf32>
    %345 = vector.multi_reduction <add>, %344, %cst_132 [1, 2] : vector<1x16x16xf32> to vector<1xf32>
    %346 = vector.shape_cast %345 : vector<1xf32> to vector<1x1x1xf32>
    %347 = vector.extract %346[0, 0, 0] : f32 from vector<1x1x1xf32>
    %cst_133 = arith.constant 3.906250e-03 : f32
    %348 = arith.mulf %347, %cst_133 : f32
    %349 = arith.mulf %342, %342 : f32
    %350 = arith.subf %348, %349 : f32
    %cst_134 = arith.constant 0.000000e+00 : f32
    %351 = arith.maximumf %350, %cst_134 : f32
    %352 = vector.broadcast %342 : f32 to vector<16x16xf32>
    %353 = arith.subf %335, %352 : vector<16x16xf32>
    %cst_135 = arith.constant 9.99999997E-7 : f32
    %354 = arith.addf %351, %cst_135 : f32
    %355 = math.rsqrt %354 : f32
    %356 = vector.broadcast %355 : f32 to vector<16x16xf32>
    %357 = arith.mulf %353, %356 : vector<16x16xf32>
    %358 = vector.broadcast %336 : vector<1x16xf32> to vector<16x16xf32>
    %359 = arith.mulf %357, %358 : vector<16x16xf32>
    %360 = vector.broadcast %337 : vector<1x16xf32> to vector<16x16xf32>
    %361 = arith.addf %359, %360 : vector<16x16xf32>
    %cst_136 = arith.constant 0.000000e+00 : f32
    %362 = vector.broadcast %cst_136 : f32 to vector<16x16xf32>
    %363 = arith.cmpf oge, %361, %362 : vector<16x16xf32>
    %cst_137 = arith.constant 2.500000e-01 : f32
    %364 = vector.broadcast %cst_137 : f32 to vector<16x16xf32>
    %365 = arith.mulf %364, %361 : vector<16x16xf32>
    %366 = arith.select %363, %361, %365 : vector<16x16xi1>, vector<16x16xf32>
    %cst_138 = arith.constant dense<0.000000e+00> : vector<16x16xf32>
    %367 = tpu.matmul %302, %334, %cst_138 {dimension_numbers = #tpu.dot_dimension_numbers<[1], [1], [0], [0], [0, 0, 1, 0], [], []>} : vector<16x128xf32>, vector<16x128xf32>, vector<16x16xf32> -> vector<16x16xf32>
    %cst_139 = arith.constant dense<0xFF800000> : vector<16xf32>
    %368 = vector.multi_reduction <maximumf>, %367, %cst_139 [1] : vector<16x16xf32> to vector<16xf32>
    %369 = vector.shape_cast %368 : vector<16xf32> to vector<16x1xf32>
    %370 = vector.broadcast %369 : vector<16x1xf32> to vector<16x16xf32>
    %371 = arith.subf %367, %370 : vector<16x16xf32>
    %372 = math.exp %371 : vector<16x16xf32>
    %cst_140 = arith.constant dense<0.000000e+00> : vector<16xf32>
    %373 = vector.multi_reduction <add>, %372, %cst_140 [1] : vector<16x16xf32> to vector<16xf32>
    %374 = vector.shape_cast %373 : vector<16xf32> to vector<16x1xf32>
    %375 = tpu.reciprocal %374 {approx = true} : vector<16x1xf32> -> vector<16x1xf32>
    %376 = vector.broadcast %375 : vector<16x1xf32> to vector<16x16xf32>
    %377 = arith.mulf %372, %376 : vector<16x16xf32>
    %cst_141 = arith.constant dense<0.000000e+00> : vector<16x16xf32>
    %378 = tpu.matmul %377, %366, %cst_141 {dimension_numbers = #tpu.dot_dimension_numbers<[1], [0], [0], [1], [0, 0, 1, 1], [], []>} : vector<16x16xf32>, vector<16x16xf32>, vector<16x16xf32> -> vector<16x16xf32>
    %c2_142 = arith.constant 2 : index
    %c0_143 = arith.constant 0 : index
    %379 = memref.load %arg5[%c2_142, %c0_143] : memref<7x4xf32, #tpu.memory_space<smem>>
    %380 = vector.broadcast %379 : f32 to vector<16x16xf32>
    %381 = arith.mulf %380, %378 : vector<16x16xf32>
    %382 = arith.addf %258, %381 : vector<16x16xf32>
    %c2_144 = arith.constant 2 : index
    %c1_145 = arith.constant 1 : index
    %383 = memref.load %arg5[%c2_144, %c1_145] : memref<7x4xf32, #tpu.memory_space<smem>>
    %384 = vector.broadcast %383 : f32 to vector<16x16xf32>
    %385 = arith.mulf %384, %378 : vector<16x16xf32>
    %386 = arith.addf %262, %385 : vector<16x16xf32>
    %c2_146 = arith.constant 2 : index
    %c2_147 = arith.constant 2 : index
    %387 = memref.load %arg5[%c2_146, %c2_147] : memref<7x4xf32, #tpu.memory_space<smem>>
    %388 = vector.broadcast %387 : f32 to vector<16x16xf32>
    %389 = arith.mulf %388, %378 : vector<16x16xf32>
    %390 = arith.addf %266, %389 : vector<16x16xf32>
    %c2_148 = arith.constant 2 : index
    %c3_149 = arith.constant 3 : index
    %391 = memref.load %arg5[%c2_148, %c3_149] : memref<7x4xf32, #tpu.memory_space<smem>>
    %392 = vector.broadcast %391 : f32 to vector<16x16xf32>
    %393 = arith.mulf %392, %378 : vector<16x16xf32>
    %394 = arith.addf %270, %393 : vector<16x16xf32>
    %395 = vector.extract_strided_slice %6 {offsets = [0, 384], sizes = [16, 128], strides = [1, 1]} : vector<16x1088xf32> to vector<16x128xf32>
    %c1_150 = arith.constant 1 : index
    %c384 = arith.constant 384 : index
    %396 = vector.load %arg4[%c1_150, %c384] : memref<3x1088xf32, #tpu.memory_space<vmem>>, vector<1x128xf32>
    %c2_151 = arith.constant 2 : index
    %c384_152 = arith.constant 384 : index
    %397 = vector.load %arg4[%c2_151, %c384_152] : memref<3x1088xf32, #tpu.memory_space<vmem>>, vector<1x128xf32>
    %398 = vector.shape_cast %395 : vector<16x128xf32> to vector<1x16x128xf32>
    %cst_153 = arith.constant dense<0.000000e+00> : vector<1xf32>
    %399 = vector.multi_reduction <add>, %398, %cst_153 [1, 2] : vector<1x16x128xf32> to vector<1xf32>
    %400 = vector.shape_cast %399 : vector<1xf32> to vector<1x1x1xf32>
    %401 = vector.extract %400[0, 0, 0] : f32 from vector<1x1x1xf32>
    %cst_154 = arith.constant 4.8828125E-4 : f32
    %402 = arith.mulf %401, %cst_154 : f32
    %403 = arith.mulf %395, %395 : vector<16x128xf32>
    %404 = vector.shape_cast %403 : vector<16x128xf32> to vector<1x16x128xf32>
    %cst_155 = arith.constant dense<0.000000e+00> : vector<1xf32>
    %405 = vector.multi_reduction <add>, %404, %cst_155 [1, 2] : vector<1x16x128xf32> to vector<1xf32>
    %406 = vector.shape_cast %405 : vector<1xf32> to vector<1x1x1xf32>
    %407 = vector.extract %406[0, 0, 0] : f32 from vector<1x1x1xf32>
    %cst_156 = arith.constant 4.8828125E-4 : f32
    %408 = arith.mulf %407, %cst_156 : f32
    %409 = arith.mulf %402, %402 : f32
    %410 = arith.subf %408, %409 : f32
    %cst_157 = arith.constant 0.000000e+00 : f32
    %411 = arith.maximumf %410, %cst_157 : f32
    %412 = vector.broadcast %402 : f32 to vector<16x128xf32>
    %413 = arith.subf %395, %412 : vector<16x128xf32>
    %cst_158 = arith.constant 9.99999997E-7 : f32
    %414 = arith.addf %411, %cst_158 : f32
    %415 = math.rsqrt %414 : f32
    %416 = vector.broadcast %415 : f32 to vector<16x128xf32>
    %417 = arith.mulf %413, %416 : vector<16x128xf32>
    %418 = vector.broadcast %396 : vector<1x128xf32> to vector<16x128xf32>
    %419 = arith.mulf %417, %418 : vector<16x128xf32>
    %420 = vector.broadcast %397 : vector<1x128xf32> to vector<16x128xf32>
    %421 = arith.addf %419, %420 : vector<16x128xf32>
    %cst_159 = arith.constant 0.000000e+00 : f32
    %422 = vector.broadcast %cst_159 : f32 to vector<16x128xf32>
    %423 = arith.cmpf oge, %421, %422 : vector<16x128xf32>
    %cst_160 = arith.constant 2.500000e-01 : f32
    %424 = vector.broadcast %cst_160 : f32 to vector<16x128xf32>
    %425 = arith.mulf %424, %421 : vector<16x128xf32>
    %426 = arith.select %423, %421, %425 : vector<16x128xi1>, vector<16x128xf32>
    %427 = vector.extract_strided_slice %6 {offsets = [0, 896], sizes = [16, 128], strides = [1, 1]} : vector<16x1088xf32> to vector<16x128xf32>
    %c1_161 = arith.constant 1 : index
    %c896 = arith.constant 896 : index
    %428 = vector.load %arg4[%c1_161, %c896] : memref<3x1088xf32, #tpu.memory_space<vmem>>, vector<1x128xf32>
    %c2_162 = arith.constant 2 : index
    %c896_163 = arith.constant 896 : index
    %429 = vector.load %arg4[%c2_162, %c896_163] : memref<3x1088xf32, #tpu.memory_space<vmem>>, vector<1x128xf32>
    %430 = vector.shape_cast %427 : vector<16x128xf32> to vector<1x16x128xf32>
    %cst_164 = arith.constant dense<0.000000e+00> : vector<1xf32>
    %431 = vector.multi_reduction <add>, %430, %cst_164 [1, 2] : vector<1x16x128xf32> to vector<1xf32>
    %432 = vector.shape_cast %431 : vector<1xf32> to vector<1x1x1xf32>
    %433 = vector.extract %432[0, 0, 0] : f32 from vector<1x1x1xf32>
    %cst_165 = arith.constant 4.8828125E-4 : f32
    %434 = arith.mulf %433, %cst_165 : f32
    %435 = arith.mulf %427, %427 : vector<16x128xf32>
    %436 = vector.shape_cast %435 : vector<16x128xf32> to vector<1x16x128xf32>
    %cst_166 = arith.constant dense<0.000000e+00> : vector<1xf32>
    %437 = vector.multi_reduction <add>, %436, %cst_166 [1, 2] : vector<1x16x128xf32> to vector<1xf32>
    %438 = vector.shape_cast %437 : vector<1xf32> to vector<1x1x1xf32>
    %439 = vector.extract %438[0, 0, 0] : f32 from vector<1x1x1xf32>
    %cst_167 = arith.constant 4.8828125E-4 : f32
    %440 = arith.mulf %439, %cst_167 : f32
    %441 = arith.mulf %434, %434 : f32
    %442 = arith.subf %440, %441 : f32
    %cst_168 = arith.constant 0.000000e+00 : f32
    %443 = arith.maximumf %442, %cst_168 : f32
    %444 = vector.broadcast %434 : f32 to vector<16x128xf32>
    %445 = arith.subf %427, %444 : vector<16x128xf32>
    %cst_169 = arith.constant 9.99999997E-7 : f32
    %446 = arith.addf %443, %cst_169 : f32
    %447 = math.rsqrt %446 : f32
    %448 = vector.broadcast %447 : f32 to vector<16x128xf32>
    %449 = arith.mulf %445, %448 : vector<16x128xf32>
    %450 = vector.broadcast %428 : vector<1x128xf32> to vector<16x128xf32>
    %451 = arith.mulf %449, %450 : vector<16x128xf32>
    %452 = vector.broadcast %429 : vector<1x128xf32> to vector<16x128xf32>
    %453 = arith.addf %451, %452 : vector<16x128xf32>
    %cst_170 = arith.constant 0.000000e+00 : f32
    %454 = vector.broadcast %cst_170 : f32 to vector<16x128xf32>
    %455 = arith.cmpf oge, %453, %454 : vector<16x128xf32>
    %cst_171 = arith.constant 2.500000e-01 : f32
    %456 = vector.broadcast %cst_171 : f32 to vector<16x128xf32>
    %457 = arith.mulf %456, %453 : vector<16x128xf32>
    %458 = arith.select %455, %453, %457 : vector<16x128xi1>, vector<16x128xf32>
    %459 = vector.extract_strided_slice %6 {offsets = [0, 1072], sizes = [16, 16], strides = [1, 1]} : vector<16x1088xf32> to vector<16x16xf32>
    %c1_172 = arith.constant 1 : index
    %c1072 = arith.constant 1072 : index
    %460 = vector.load %arg4[%c1_172, %c1072] : memref<3x1088xf32, #tpu.memory_space<vmem>>, vector<1x16xf32>
    %c2_173 = arith.constant 2 : index
    %c1072_174 = arith.constant 1072 : index
    %461 = vector.load %arg4[%c2_173, %c1072_174] : memref<3x1088xf32, #tpu.memory_space<vmem>>, vector<1x16xf32>
    %462 = vector.shape_cast %459 : vector<16x16xf32> to vector<1x16x16xf32>
    %cst_175 = arith.constant dense<0.000000e+00> : vector<1xf32>
    %463 = vector.multi_reduction <add>, %462, %cst_175 [1, 2] : vector<1x16x16xf32> to vector<1xf32>
    %464 = vector.shape_cast %463 : vector<1xf32> to vector<1x1x1xf32>
    %465 = vector.extract %464[0, 0, 0] : f32 from vector<1x1x1xf32>
    %cst_176 = arith.constant 3.906250e-03 : f32
    %466 = arith.mulf %465, %cst_176 : f32
    %467 = arith.mulf %459, %459 : vector<16x16xf32>
    %468 = vector.shape_cast %467 : vector<16x16xf32> to vector<1x16x16xf32>
    %cst_177 = arith.constant dense<0.000000e+00> : vector<1xf32>
    %469 = vector.multi_reduction <add>, %468, %cst_177 [1, 2] : vector<1x16x16xf32> to vector<1xf32>
    %470 = vector.shape_cast %469 : vector<1xf32> to vector<1x1x1xf32>
    %471 = vector.extract %470[0, 0, 0] : f32 from vector<1x1x1xf32>
    %cst_178 = arith.constant 3.906250e-03 : f32
    %472 = arith.mulf %471, %cst_178 : f32
    %473 = arith.mulf %466, %466 : f32
    %474 = arith.subf %472, %473 : f32
    %cst_179 = arith.constant 0.000000e+00 : f32
    %475 = arith.maximumf %474, %cst_179 : f32
    %476 = vector.broadcast %466 : f32 to vector<16x16xf32>
    %477 = arith.subf %459, %476 : vector<16x16xf32>
    %cst_180 = arith.constant 9.99999997E-7 : f32
    %478 = arith.addf %475, %cst_180 : f32
    %479 = math.rsqrt %478 : f32
    %480 = vector.broadcast %479 : f32 to vector<16x16xf32>
    %481 = arith.mulf %477, %480 : vector<16x16xf32>
    %482 = vector.broadcast %460 : vector<1x16xf32> to vector<16x16xf32>
    %483 = arith.mulf %481, %482 : vector<16x16xf32>
    %484 = vector.broadcast %461 : vector<1x16xf32> to vector<16x16xf32>
    %485 = arith.addf %483, %484 : vector<16x16xf32>
    %cst_181 = arith.constant 0.000000e+00 : f32
    %486 = vector.broadcast %cst_181 : f32 to vector<16x16xf32>
    %487 = arith.cmpf oge, %485, %486 : vector<16x16xf32>
    %cst_182 = arith.constant 2.500000e-01 : f32
    %488 = vector.broadcast %cst_182 : f32 to vector<16x16xf32>
    %489 = arith.mulf %488, %485 : vector<16x16xf32>
    %490 = arith.select %487, %485, %489 : vector<16x16xi1>, vector<16x16xf32>
    %cst_183 = arith.constant dense<0.000000e+00> : vector<16x16xf32>
    %491 = tpu.matmul %426, %458, %cst_183 {dimension_numbers = #tpu.dot_dimension_numbers<[1], [1], [0], [0], [0, 0, 1, 0], [], []>} : vector<16x128xf32>, vector<16x128xf32>, vector<16x16xf32> -> vector<16x16xf32>
    %cst_184 = arith.constant dense<0xFF800000> : vector<16xf32>
    %492 = vector.multi_reduction <maximumf>, %491, %cst_184 [1] : vector<16x16xf32> to vector<16xf32>
    %493 = vector.shape_cast %492 : vector<16xf32> to vector<16x1xf32>
    %494 = vector.broadcast %493 : vector<16x1xf32> to vector<16x16xf32>
    %495 = arith.subf %491, %494 : vector<16x16xf32>
    %496 = math.exp %495 : vector<16x16xf32>
    %cst_185 = arith.constant dense<0.000000e+00> : vector<16xf32>
    %497 = vector.multi_reduction <add>, %496, %cst_185 [1] : vector<16x16xf32> to vector<16xf32>
    %498 = vector.shape_cast %497 : vector<16xf32> to vector<16x1xf32>
    %499 = tpu.reciprocal %498 {approx = true} : vector<16x1xf32> -> vector<16x1xf32>
    %500 = vector.broadcast %499 : vector<16x1xf32> to vector<16x16xf32>
    %501 = arith.mulf %496, %500 : vector<16x16xf32>
    %cst_186 = arith.constant dense<0.000000e+00> : vector<16x16xf32>
    %502 = tpu.matmul %501, %490, %cst_186 {dimension_numbers = #tpu.dot_dimension_numbers<[1], [0], [0], [1], [0, 0, 1, 1], [], []>} : vector<16x16xf32>, vector<16x16xf32>, vector<16x16xf32> -> vector<16x16xf32>
    %c3_187 = arith.constant 3 : index
    %c0_188 = arith.constant 0 : index
    %503 = memref.load %arg5[%c3_187, %c0_188] : memref<7x4xf32, #tpu.memory_space<smem>>
    %504 = vector.broadcast %503 : f32 to vector<16x16xf32>
    %505 = arith.mulf %504, %502 : vector<16x16xf32>
    %506 = arith.addf %382, %505 : vector<16x16xf32>
    %c3_189 = arith.constant 3 : index
    %c1_190 = arith.constant 1 : index
    %507 = memref.load %arg5[%c3_189, %c1_190] : memref<7x4xf32, #tpu.memory_space<smem>>
    %508 = vector.broadcast %507 : f32 to vector<16x16xf32>
    %509 = arith.mulf %508, %502 : vector<16x16xf32>
    %510 = arith.addf %386, %509 : vector<16x16xf32>
    %c3_191 = arith.constant 3 : index
    %c2_192 = arith.constant 2 : index
    %511 = memref.load %arg5[%c3_191, %c2_192] : memref<7x4xf32, #tpu.memory_space<smem>>
    %512 = vector.broadcast %511 : f32 to vector<16x16xf32>
    %513 = arith.mulf %512, %502 : vector<16x16xf32>
    %514 = arith.addf %390, %513 : vector<16x16xf32>
    %c3_193 = arith.constant 3 : index
    %c3_194 = arith.constant 3 : index
    %515 = memref.load %arg5[%c3_193, %c3_194] : memref<7x4xf32, #tpu.memory_space<smem>>
    %516 = vector.broadcast %515 : f32 to vector<16x16xf32>
    %517 = arith.mulf %516, %502 : vector<16x16xf32>
    %518 = arith.addf %394, %517 : vector<16x16xf32>
    %519 = vector.shape_cast %506 : vector<16x16xf32> to vector<1x16x16xf32>
    %cst_195 = arith.constant dense<0.000000e+00> : vector<1xf32>
    %520 = vector.multi_reduction <add>, %519, %cst_195 [1, 2] : vector<1x16x16xf32> to vector<1xf32>
    %521 = vector.shape_cast %520 : vector<1xf32> to vector<1x1x1xf32>
    %522 = vector.extract %521[0, 0, 0] : f32 from vector<1x1x1xf32>
    %523 = arith.mulf %506, %506 : vector<16x16xf32>
    %524 = vector.shape_cast %523 : vector<16x16xf32> to vector<1x16x16xf32>
    %cst_196 = arith.constant dense<0.000000e+00> : vector<1xf32>
    %525 = vector.multi_reduction <add>, %524, %cst_196 [1, 2] : vector<1x16x16xf32> to vector<1xf32>
    %526 = vector.shape_cast %525 : vector<1xf32> to vector<1x1x1xf32>
    %527 = vector.extract %526[0, 0, 0] : f32 from vector<1x1x1xf32>
    %528 = vector.shape_cast %510 : vector<16x16xf32> to vector<1x16x16xf32>
    %cst_197 = arith.constant dense<0.000000e+00> : vector<1xf32>
    %529 = vector.multi_reduction <add>, %528, %cst_197 [1, 2] : vector<1x16x16xf32> to vector<1xf32>
    %530 = vector.shape_cast %529 : vector<1xf32> to vector<1x1x1xf32>
    %531 = vector.extract %530[0, 0, 0] : f32 from vector<1x1x1xf32>
    %532 = arith.addf %522, %531 : f32
    %533 = arith.mulf %510, %510 : vector<16x16xf32>
    %534 = vector.shape_cast %533 : vector<16x16xf32> to vector<1x16x16xf32>
    %cst_198 = arith.constant dense<0.000000e+00> : vector<1xf32>
    %535 = vector.multi_reduction <add>, %534, %cst_198 [1, 2] : vector<1x16x16xf32> to vector<1xf32>
    %536 = vector.shape_cast %535 : vector<1xf32> to vector<1x1x1xf32>
    %537 = vector.extract %536[0, 0, 0] : f32 from vector<1x1x1xf32>
    %538 = arith.addf %527, %537 : f32
    %539 = vector.shape_cast %514 : vector<16x16xf32> to vector<1x16x16xf32>
    %cst_199 = arith.constant dense<0.000000e+00> : vector<1xf32>
    %540 = vector.multi_reduction <add>, %539, %cst_199 [1, 2] : vector<1x16x16xf32> to vector<1xf32>
    %541 = vector.shape_cast %540 : vector<1xf32> to vector<1x1x1xf32>
    %542 = vector.extract %541[0, 0, 0] : f32 from vector<1x1x1xf32>
    %543 = arith.addf %532, %542 : f32
    %544 = arith.mulf %514, %514 : vector<16x16xf32>
    %545 = vector.shape_cast %544 : vector<16x16xf32> to vector<1x16x16xf32>
    %cst_200 = arith.constant dense<0.000000e+00> : vector<1xf32>
    %546 = vector.multi_reduction <add>, %545, %cst_200 [1, 2] : vector<1x16x16xf32> to vector<1xf32>
    %547 = vector.shape_cast %546 : vector<1xf32> to vector<1x1x1xf32>
    %548 = vector.extract %547[0, 0, 0] : f32 from vector<1x1x1xf32>
    %549 = arith.addf %538, %548 : f32
    %550 = vector.shape_cast %518 : vector<16x16xf32> to vector<1x16x16xf32>
    %cst_201 = arith.constant dense<0.000000e+00> : vector<1xf32>
    %551 = vector.multi_reduction <add>, %550, %cst_201 [1, 2] : vector<1x16x16xf32> to vector<1xf32>
    %552 = vector.shape_cast %551 : vector<1xf32> to vector<1x1x1xf32>
    %553 = vector.extract %552[0, 0, 0] : f32 from vector<1x1x1xf32>
    %554 = arith.addf %543, %553 : f32
    %555 = arith.mulf %518, %518 : vector<16x16xf32>
    %556 = vector.shape_cast %555 : vector<16x16xf32> to vector<1x16x16xf32>
    %cst_202 = arith.constant dense<0.000000e+00> : vector<1xf32>
    %557 = vector.multi_reduction <add>, %556, %cst_202 [1, 2] : vector<1x16x16xf32> to vector<1xf32>
    %558 = vector.shape_cast %557 : vector<1xf32> to vector<1x1x1xf32>
    %559 = vector.extract %558[0, 0, 0] : f32 from vector<1x1x1xf32>
    %560 = arith.addf %549, %559 : f32
    %cst_203 = arith.constant 9.765625E-4 : f32
    %561 = arith.mulf %554, %cst_203 : f32
    %cst_204 = arith.constant 9.765625E-4 : f32
    %562 = arith.mulf %560, %cst_204 : f32
    %563 = arith.mulf %561, %561 : f32
    %564 = arith.subf %562, %563 : f32
    %cst_205 = arith.constant 0.000000e+00 : f32
    %565 = arith.maximumf %564, %cst_205 : f32
    %cst_206 = arith.constant 9.99999997E-7 : f32
    %566 = arith.addf %565, %cst_206 : f32
    %567 = math.rsqrt %566 : f32
    %568 = vector.broadcast %561 : f32 to vector<16x16xf32>
    %569 = arith.subf %506, %568 : vector<16x16xf32>
    %570 = vector.broadcast %567 : f32 to vector<16x16xf32>
    %571 = arith.mulf %569, %570 : vector<16x16xf32>
    %c5 = arith.constant 5 : index
    %c0_207 = arith.constant 0 : index
    %572 = memref.load %arg5[%c5, %c0_207] : memref<7x4xf32, #tpu.memory_space<smem>>
    %573 = vector.broadcast %572 : f32 to vector<16x16xf32>
    %574 = arith.mulf %571, %573 : vector<16x16xf32>
    %c6 = arith.constant 6 : index
    %c0_208 = arith.constant 0 : index
    %575 = memref.load %arg5[%c6, %c0_208] : memref<7x4xf32, #tpu.memory_space<smem>>
    %576 = vector.broadcast %575 : f32 to vector<16x16xf32>
    %577 = arith.addf %574, %576 : vector<16x16xf32>
    %cst_209 = arith.constant 0.000000e+00 : f32
    %578 = vector.broadcast %cst_209 : f32 to vector<16x16xf32>
    %579 = arith.cmpf oge, %577, %578 : vector<16x16xf32>
    %cst_210 = arith.constant 2.500000e-01 : f32
    %580 = vector.broadcast %cst_210 : f32 to vector<16x16xf32>
    %581 = arith.mulf %580, %577 : vector<16x16xf32>
    %582 = arith.select %579, %577, %581 : vector<16x16xi1>, vector<16x16xf32>
    %c0_211 = arith.constant 0 : index
    %c0_212 = arith.constant 0 : index
    %c0_213 = arith.constant 0 : index
    %583 = vector.load %arg2[%c0_211, %c0_212, %c0_213] : memref<1x16x64xf32, #tpu.memory_space<vmem>>, vector<1x16x16xf32>
    %584 = vector.shape_cast %583 : vector<1x16x16xf32> to vector<16x16xf32>
    %585 = arith.addf %582, %584 : vector<16x16xf32>
    %c0_214 = arith.constant 0 : index
    %c0_215 = arith.constant 0 : index
    %c0_216 = arith.constant 0 : index
    %586 = vector.load %arg6[%c0_214, %c0_215, %c0_216] : memref<1x16x64xf32, #tpu.memory_space<vmem>>, vector<1x16x16xf32>
    %587 = vector.shape_cast %586 : vector<1x16x16xf32> to vector<16x16xf32>
    %588 = vector.shape_cast %585 : vector<16x16xf32> to vector<1x16x16xf32>
    tpu.vector_store %arg6[%c0_214, %c0_215, %c0_216], %588 {strides = array<i32>} : memref<1x16x64xf32, #tpu.memory_space<vmem>>, vector<1x16x16xf32>,
    %589 = vector.broadcast %561 : f32 to vector<16x16xf32>
    %590 = arith.subf %510, %589 : vector<16x16xf32>
    %591 = vector.broadcast %567 : f32 to vector<16x16xf32>
    %592 = arith.mulf %590, %591 : vector<16x16xf32>
    %c5_217 = arith.constant 5 : index
    %c1_218 = arith.constant 1 : index
    %593 = memref.load %arg5[%c5_217, %c1_218] : memref<7x4xf32, #tpu.memory_space<smem>>
    %594 = vector.broadcast %593 : f32 to vector<16x16xf32>
    %595 = arith.mulf %592, %594 : vector<16x16xf32>
    %c6_219 = arith.constant 6 : index
    %c1_220 = arith.constant 1 : index
    %596 = memref.load %arg5[%c6_219, %c1_220] : memref<7x4xf32, #tpu.memory_space<smem>>
    %597 = vector.broadcast %596 : f32 to vector<16x16xf32>
    %598 = arith.addf %595, %597 : vector<16x16xf32>
    %cst_221 = arith.constant 0.000000e+00 : f32
    %599 = vector.broadcast %cst_221 : f32 to vector<16x16xf32>
    %600 = arith.cmpf oge, %598, %599 : vector<16x16xf32>
    %cst_222 = arith.constant 2.500000e-01 : f32
    %601 = vector.broadcast %cst_222 : f32 to vector<16x16xf32>
    %602 = arith.mulf %601, %598 : vector<16x16xf32>
    %603 = arith.select %600, %598, %602 : vector<16x16xi1>, vector<16x16xf32>
    %c0_223 = arith.constant 0 : index
    %c0_224 = arith.constant 0 : index
    %c16 = arith.constant 16 : index
    %604 = vector.load %arg2[%c0_223, %c0_224, %c16] : memref<1x16x64xf32, #tpu.memory_space<vmem>>, vector<1x16x16xf32>
    %605 = vector.shape_cast %604 : vector<1x16x16xf32> to vector<16x16xf32>
    %606 = arith.addf %603, %605 : vector<16x16xf32>
    %c0_225 = arith.constant 0 : index
    %c0_226 = arith.constant 0 : index
    %c16_227 = arith.constant 16 : index
    %607 = vector.load %arg6[%c0_225, %c0_226, %c16_227] : memref<1x16x64xf32, #tpu.memory_space<vmem>>, vector<1x16x16xf32>
    %608 = vector.shape_cast %607 : vector<1x16x16xf32> to vector<16x16xf32>
    %609 = vector.shape_cast %606 : vector<16x16xf32> to vector<1x16x16xf32>
    tpu.vector_store %arg6[%c0_225, %c0_226, %c16_227], %609 {strides = array<i32>} : memref<1x16x64xf32, #tpu.memory_space<vmem>>, vector<1x16x16xf32>,
    %610 = vector.broadcast %561 : f32 to vector<16x16xf32>
    %611 = arith.subf %514, %610 : vector<16x16xf32>
    %612 = vector.broadcast %567 : f32 to vector<16x16xf32>
    %613 = arith.mulf %611, %612 : vector<16x16xf32>
    %c5_228 = arith.constant 5 : index
    %c2_229 = arith.constant 2 : index
    %614 = memref.load %arg5[%c5_228, %c2_229] : memref<7x4xf32, #tpu.memory_space<smem>>
    %615 = vector.broadcast %614 : f32 to vector<16x16xf32>
    %616 = arith.mulf %613, %615 : vector<16x16xf32>
    %c6_230 = arith.constant 6 : index
    %c2_231 = arith.constant 2 : index
    %617 = memref.load %arg5[%c6_230, %c2_231] : memref<7x4xf32, #tpu.memory_space<smem>>
    %618 = vector.broadcast %617 : f32 to vector<16x16xf32>
    %619 = arith.addf %616, %618 : vector<16x16xf32>
    %cst_232 = arith.constant 0.000000e+00 : f32
    %620 = vector.broadcast %cst_232 : f32 to vector<16x16xf32>
    %621 = arith.cmpf oge, %619, %620 : vector<16x16xf32>
    %cst_233 = arith.constant 2.500000e-01 : f32
    %622 = vector.broadcast %cst_233 : f32 to vector<16x16xf32>
    %623 = arith.mulf %622, %619 : vector<16x16xf32>
    %624 = arith.select %621, %619, %623 : vector<16x16xi1>, vector<16x16xf32>
    %c0_234 = arith.constant 0 : index
    %c0_235 = arith.constant 0 : index
    %c32 = arith.constant 32 : index
    %625 = vector.load %arg2[%c0_234, %c0_235, %c32] : memref<1x16x64xf32, #tpu.memory_space<vmem>>, vector<1x16x16xf32>
    %626 = vector.shape_cast %625 : vector<1x16x16xf32> to vector<16x16xf32>
    %627 = arith.addf %624, %626 : vector<16x16xf32>
    %c0_236 = arith.constant 0 : index
    %c0_237 = arith.constant 0 : index
    %c32_238 = arith.constant 32 : index
    %628 = vector.load %arg6[%c0_236, %c0_237, %c32_238] : memref<1x16x64xf32, #tpu.memory_space<vmem>>, vector<1x16x16xf32>
    %629 = vector.shape_cast %628 : vector<1x16x16xf32> to vector<16x16xf32>
    %630 = vector.shape_cast %627 : vector<16x16xf32> to vector<1x16x16xf32>
    tpu.vector_store %arg6[%c0_236, %c0_237, %c32_238], %630 {strides = array<i32>} : memref<1x16x64xf32, #tpu.memory_space<vmem>>, vector<1x16x16xf32>,
    %631 = vector.broadcast %561 : f32 to vector<16x16xf32>
    %632 = arith.subf %518, %631 : vector<16x16xf32>
    %633 = vector.broadcast %567 : f32 to vector<16x16xf32>
    %634 = arith.mulf %632, %633 : vector<16x16xf32>
    %c5_239 = arith.constant 5 : index
    %c3_240 = arith.constant 3 : index
    %635 = memref.load %arg5[%c5_239, %c3_240] : memref<7x4xf32, #tpu.memory_space<smem>>
    %636 = vector.broadcast %635 : f32 to vector<16x16xf32>
    %637 = arith.mulf %634, %636 : vector<16x16xf32>
    %c6_241 = arith.constant 6 : index
    %c3_242 = arith.constant 3 : index
    %638 = memref.load %arg5[%c6_241, %c3_242] : memref<7x4xf32, #tpu.memory_space<smem>>
    %639 = vector.broadcast %638 : f32 to vector<16x16xf32>
    %640 = arith.addf %637, %639 : vector<16x16xf32>
    %cst_243 = arith.constant 0.000000e+00 : f32
    %641 = vector.broadcast %cst_243 : f32 to vector<16x16xf32>
    %642 = arith.cmpf oge, %640, %641 : vector<16x16xf32>
    %cst_244 = arith.constant 2.500000e-01 : f32
    %643 = vector.broadcast %cst_244 : f32 to vector<16x16xf32>
    %644 = arith.mulf %643, %640 : vector<16x16xf32>
    %645 = arith.select %642, %640, %644 : vector<16x16xi1>, vector<16x16xf32>
    %c0_245 = arith.constant 0 : index
    %c0_246 = arith.constant 0 : index
    %c48 = arith.constant 48 : index
    %646 = vector.load %arg2[%c0_245, %c0_246, %c48] : memref<1x16x64xf32, #tpu.memory_space<vmem>>, vector<1x16x16xf32>
    %647 = vector.shape_cast %646 : vector<1x16x16xf32> to vector<16x16xf32>
    %648 = arith.addf %645, %647 : vector<16x16xf32>
    %c0_247 = arith.constant 0 : index
    %c0_248 = arith.constant 0 : index
    %c48_249 = arith.constant 48 : index
    %649 = vector.load %arg6[%c0_247, %c0_248, %c48_249] : memref<1x16x64xf32, #tpu.memory_space<vmem>>, vector<1x16x16xf32>
    %650 = vector.shape_cast %649 : vector<1x16x16xf32> to vector<16x16xf32>
    %651 = vector.shape_cast %648 : vector<16x16xf32> to vector<1x16x16xf32>
    tpu.vector_store %arg6[%c0_247, %c0_248, %c48_249], %651 {strides = array<i32>} : memref<1x16x64xf32, #tpu.memory_space<vmem>>, vector<1x16x16xf32>,
    return
  }
  func.func @transform_0(%arg0: i32) -> (i32, i32, i32) {
    %c0_i32 = arith.constant 0 : i32
    %c0_i32_0 = arith.constant 0 : i32
    %c0_i32_1 = arith.constant 0 : i32
    return %arg0, %c0_i32, %c0_i32_0 : i32, i32, i32
  }
  func.func @transform_1(%arg0: i32) -> (i32, i32, i32) {
    %c0_i32 = arith.constant 0 : i32
    %c0_i32_0 = arith.constant 0 : i32
    %c0_i32_1 = arith.constant 0 : i32
    return %arg0, %c0_i32, %c0_i32_0 : i32, i32, i32
  }
  func.func @transform_2(%arg0: i32) -> (i32, i32) {
    %c0_i32 = arith.constant 0 : i32
    %c0_i32_0 = arith.constant 0 : i32
    %c0_i32_1 = arith.constant 0 : i32
    return %c0_i32, %c0_i32_0 : i32, i32
  }
  func.func @transform_3(%arg0: i32) -> (i32, i32) {
    %c0_i32 = arith.constant 0 : i32
    %c0_i32_0 = arith.constant 0 : i32
    %c0_i32_1 = arith.constant 0 : i32
    return %c0_i32, %c0_i32_0 : i32, i32
  }
  func.func @transform_4(%arg0: i32) -> (i32, i32) {
    %c0_i32 = arith.constant 0 : i32
    %c0_i32_0 = arith.constant 0 : i32
    %c0_i32_1 = arith.constant 0 : i32
    return %c0_i32, %c0_i32_0 : i32, i32
  }
  func.func @transform_5(%arg0: i32) -> (i32, i32, i32) {
    %c0_i32 = arith.constant 0 : i32
    %c0_i32_0 = arith.constant 0 : i32
    %c0_i32_1 = arith.constant 0 : i32
    return %arg0, %c0_i32, %c0_i32_0 : i32, i32, i32
  }
}

</mosaic_0001>

<bundles_post_ra>
// kernel: forward_pallas.1
= control target key start
LH: loop header
LB: loop body
LE: loop exit
PB: predicated region body
PF: predicated region fallthrough
CT: control target
= control target key end

     0   :  { %10 = vsyncpa [#allocation3], 0  ;;  %s3174_s18 = smov 0   ;;  %s4037_s0 = inlined_call_operand.vmem [shape: bf16[2,16,64], index: 0, kind: input, shape index: {}]   ;;  %s4038_s1 = inlined_call_operand.vmem [shape: f32[2,16,64], index: 1, kind: input, shape index: {}]   ;;  %s4039_s2 = inlined_call_operand.vmem [shape: bf16[64,1088], index: 2, kind: input, shape index: {}]   ;;  %s4040_s3 = inlined_call_operand.vmem [shape: f32[3,1088], index: 3, kind: input, shape index: {}]   ;;  %s4041_s4 = inlined_call_operand.vmem [shape: f32[7,4], index: 4, kind: input, shape index: {}]   ;;  %s4042_s5 = inlined_call_operand.vmem [shape: f32[2,16,64], index: 5, kind: output, shape index: {}]  }
   0x1 LB: > { %s3180_s19 = sadd.s32 4294967295, %s3131_s18   ;;  %p2656_p0 = scmp.ge.s32.totalorder %s3131_s18, 1  ;;  %s3131_s18 = sphi %s3174_s18, %s16_s18  }
   0x2   : > { %p162_p1 = scmp.lt.s32.totalorder %s3131_s18, 3  ;;  %s181_s22 = sshll.u32 %s4041_s4, 4  ;;  %s182_s22 = int_to_ptr.vmem [resolvable:$true] %s181_s22 }
   0x3   : > { %p2971_p3 = scmp.eq.s32.totalorder %s3180_s19, 0  ;;  %s3106_s24 = scalar_lea.vmem %s182_s22, 128 }
   0x4   : > { %p3187_p2 = pnand %p2656_p0, %p162_p1  ;;  %p3107_p6 = scmp.ne.s32.totalorder %s182_s22, %s3106_s24 }
   0x5   : > { %p3114_p10 = scmp.lt.s32.totalorder %s182_s22, %s182_s22  ;;  %p3115_p11 = scmp.lt.s32.totalorder %s3106_s24, %s3106_s24 }
   0x6   : > { %p2967_p4 = pneg %p3187_p2 }
   0x7   : > { %p3116_p12 = por %p3115_p11, %p3114_p10 }
   0x8   : > { %p2968_p5 = pnand %p2971_p3, %p2967_p4 }
   0xa   : > { %p3108_p7 = pneg %p2968_p5 }
   0xc   : > { %p3109_p8 = pnand %p3108_p7, %p3107_p6 }
   0xe   : > { %p3110_p9 = pneg %p3109_p8 }
  0x10   : > { %p3117_p13 = pnand %p3116_p12, %p3110_p9 }
  0x12   : > { %3120 = shalt.err (!%p3117_p13)
}
  0x13   : > { %s3133_s25 = smov [#allocation2]   ;;  %210 = sbr.rel (%p3187_p2) target bundleno = 2798 (0xaee), region = 40 }
  0x14   : > { %2970 = dma.vmem_to_smem (!%p2968_p5), %s182_s22, 128, %s3133_s25, [#allocation3]  }
  0x18   : > { %3126 = dma.done.wait (%p2971_p3), [#allocation3], 128  }
  0x19   : > { %3128 = vsyncadd (%p2971_p3), [#allocation3], 4294967168 }
  0x1a   : > { %216 = sfence }
  0x1b   : > { %v2992_v0 = vld [vmem:[%s4039_s2 + $0xdc] ss:$36 sps:$4 sm:$0xff]   ;;  %p244_p0 = scmp.lt.s32.totalorder %s3180_s19, 1  ;;  %v3134_v2 = vmov 0   ;;  %v2995_v3 = vld [vmem:[%s4039_s2 + $0x94] ss:$36 sps:$4 sm:$0xff]   ;;  %v307_v23 = vlaneseq }
  0x1c   : > { %v2994_v1 = vld [vmem:[%s4039_s2 + $0xd8] ss:$36 sps:$4 sm:$0xff]   ;;  %577 = vmatprep.mubr.bf16.mxu0 %v3134_v2  ;;  %620 = vmatprep.mubr.bf16.mxu1 %v3134_v2  ;;  %v2997_v4 = vld [vmem:[%s4039_s2 + $0x90] ss:$36 sps:$4 sm:$0xff]   ;;  %v3000_v6 = vld [vmem:[%s4039_s2 + $0x48] ss:$36 sps:$4 sm:$0xff]  }
  0x1d   : > { %553 = vmatprep.subr.bf16.mxu0 %v2992_v0  ;;  %s4045_s19 = smov (!%p244_p0, %s3180_s19), 1  ;;  %v2998_v5 = vld [vmem:[%s4039_s2 + $0x4c] ss:$36 sps:$4 sm:$0xff]   ;;  %v3001_v7 = vld [vmem:[%s4039_s2 + $0x4] ss:$36 sps:$4 sm:$0xff]   ;;  %vm541_vm0 = vcmask 523264  }
  0x1e   : > { %554 = vmatpush1.bf16.msra.mxu0 %v2994_v1  ;;  %s2765_s11 = sshll.u32 %s4045_s19, 3  ;;  %v3003_v8 = vld [vmem:[%s4039_s2] ss:$36 sps:$4 sm:$0xff]   ;;  %v3007_v9 = vld [vmem:[%s4039_s2 + $0xec] ss:$36 sps:$4 sm:$0xff]   ;;  %v3135_v19 = vmov 0.0  }
  0x1f   : > { %555 = vmatprep.subr.bf16.mxu0 %v2995_v3  ;;  %s248_s14 = scalar_lea.vmem %s4037_s0, %s2765_s11  ;;  %v3005_v11 = vld [vmem:[%s4039_s2 + $0xe8] ss:$36 sps:$4 sm:$0xff]   ;;  %v3008_v13 = vld [vmem:[%s4039_s2 + $0xa0] ss:$36 sps:$4 sm:$0xff]   ;;  %v3011_v15 = vld [vmem:[%s4039_s2 + $0x58] ss:$36 sps:$4 sm:$0xff]  }
  0x20   : > { %v3239_v10 = vld [vmem:[%s248_s14] sm:$0xff]   ;;  %v3016_v16 = vld [vmem:[%s4039_s2 + $0x14] ss:$36 sps:$4 sm:$0xff]   ;;  %vm3136_vm1 = vmmov 0   ;;  %v3019_v21 = vld [vmem:[%s4039_s2 + $0x68] ss:$36 sps:$4 sm:$0xff]  }
  0x21   : > { %v3010_v12 = vld [vmem:[%s4039_s2 + $0xa4] ss:$36 sps:$4 sm:$0xff]   ;;  %v3013_v14 = vld [vmem:[%s4039_s2 + $0x5c] ss:$36 sps:$4 sm:$0xff]   ;;  %v3014_v17 = vld [vmem:[%s4039_s2 + $0x10] ss:$36 sps:$4 sm:$0xff]  }
  0x22   : > { %556 = vmatpush1.bf16.msra.mxu0 %v2997_v4  ;;  %v3017_v18 = vld [vmem:[%s4039_s2 + $0xf8] ss:$36 sps:$4 sm:$0xff]   ;;  %v3018_v20 = vld [vmem:[%s4039_s2 + $0xb0] ss:$36 sps:$4 sm:$0xff]   ;;  %v3020_v22 = vld [vmem:[%s4039_s2 + $0x20] ss:$36 sps:$4 sm:$0xff]  }
  0x23   : > { %557 = vmatprep.subr.bf16.mxu0 %v2998_v5  ;;  %v3281_v24 = vshrl.u32 %v307_v23, 7  ;;  %v3287_v26 = vld [vmem:[%s4040_s3] ss:$4 sm:$0xff]  ;;  %vm886_vm2 = vcmask 130048   ;;  %s3137_s28 = smov 112   ;;  %s3138_s22 = smov 0.0  }
  0x24   : > { %v2667_v49 = vld [vmem:[%s4040_s3 + $0x20] ss:$4 sm:$0x1]  ;;  %v3026_v23 = vld [vmem:[%s4039_s2 + $0x98] ss:$36 sps:$4 sm:$0xff]  }
  0x25   : > { %v309_v25 = vsub.s32 0, %v3281_v24  ;;  %v325_v37 = vsub.s32 4, %v3281_v24  ;;  %v313_v52 = vsub.s32 1, %v3281_v24  ;;  %v329_v53 = vsub.s32 5, %v3281_v24 }
  0x26   : > { %558 = vmatpush1.bf16.msra.mxu0 %v3000_v6 }
  0x27   : > { %559 = vmatprep.subr.bf16.mxu0 %v3001_v7  ;;  %v310_v28 = vrot.slane %v3287_v26, %v309_v25  ;;  %v326_v39 = vrot.slane %v3287_v26, %v325_v37  ;;  %v342_v51 = vrot.slane %v2667_v49, %v309_v25  ;;  %v314_v58 = vrot.slane %v3287_v26, %v313_v52  ;;  %v3027_v25 = vld [vmem:[%s4039_s2 + $0x54] ss:$36 sps:$4 sm:$0xff]  }
  0x28   : > { %v330_v59 = vrot.slane %v3287_v26, %v329_v53  ;;  %v3044_v53 = vld [vmem:[%s4039_s2 + $0x1c] ss:$36 sps:$4 sm:$0xff]  }
  0x2a   : > { %560 = vmatpush1.bf16.msra.mxu0 %v3003_v8 }
  0x2b   : > { %639 = vmatprep.subr.bf16.mxu0 %v3007_v9 }
  0x2d   : > { %2705 = vmatmul.mubr.msk.bf16.vlgmr.msra.gmra.mxu0 %vm541_vm0, %v3239_v10 }
  0x2e   : > { %640 = vmatpush1.bf16.msra.mxu0 %v3005_v11  ;;  %663 = vmatprep.mubr.bf16.mxu0 %v3134_v2 }
  0x2f   : > { %641 = vmatprep.subr.bf16.mxu0 %v3010_v12 }
  0x32   : > { %642 = vmatpush1.bf16.msra.mxu0 %v3008_v13 }
  0x33   : > { %643 = vmatprep.subr.bf16.mxu0 %v3013_v14 }
  0x36   : > { %644 = vmatpush1.bf16.msra.mxu0 %v3011_v15 }
  0x37   : > { %645 = vmatprep.subr.bf16.mxu0 %v3016_v16 }
  0x3a   : > { %646 = vmatpush1.bf16.msra.mxu0 %v3014_v17 }
  0x3b   : > { %2805 = vmatprep.subr.bf16.mxu0 %v3135_v19 }
  0x3d   : > { %2707 = vmatmul.mubr.msk.bf16.vlgmr.msra.gmra.mxu0 %vm541_vm0, %v3239_v10 }
  0x3e   : > { %2806 = vmatpush3.bf16.msra.mxu0 %v3017_v18  ;;  %2813 = vmatprep.mubr.msk.bf16.mxu0 %vm3136_vm1, %v3135_v19 }
  0x3f   : > { %2807 = vmatprep.subr.bf16.mxu0 %v3135_v19 }
  0x42   : > { %2808 = vmatpush3.bf16.msra.mxu0 %v3018_v20  ;;  %v3021_v20 = vld [vmem:[%s4039_s2 + $0xe4] ss:$36 sps:$4 sm:$0xff]  }
  0x43   : > { %2809 = vmatprep.subr.bf16.mxu0 %v3135_v19  ;;  %596 = vmatprep.subr.bf16.mxu1 %v3021_v20 }
  0x46   : > { %2810 = vmatpush3.bf16.msra.mxu0 %v3019_v21  ;;  %v3023_v21 = vld [vmem:[%s4039_s2 + $0xe0] ss:$36 sps:$4 sm:$0xff]  }
  0x47   : > { %2811 = vmatprep.subr.bf16.mxu0 %v3135_v19  ;;  %597 = vmatpush1.bf16.msra.mxu1 %v3023_v21 }
  0x4a   : > { %2812 = vmatpush3.bf16.msra.mxu0 %v3020_v22  ;;  %v3024_v22 = vld [vmem:[%s4039_s2 + $0x9c] ss:$36 sps:$4 sm:$0xff]  }
  0x4b   : > { %598 = vmatprep.subr.bf16.mxu1 %v3024_v22 }
  0x4c   : > { %599 = vmatpush1.bf16.msra.mxu1 %v3026_v23 }
  0x4d   : > { %2814 = vmatmul.mubr.msk.bf16.vlgmr.msra.gmra.mxu0 %vm541_vm0, %v3239_v10  ;;  %600 = vmatprep.subr.bf16.mxu1 %v3027_v25 }
  0xed   : > { %v579_v27 = vpop.f32.mrf.mxu0 }
  0xee   : > { %v3290_v31 = vadd.f32 %v579_v27, %v310_v28  ;;  %v3029_v27 = vld [vmem:[%s4039_s2 + $0x50] ss:$36 sps:$4 sm:$0xff]  }
  0xef   : > { %v581_v29 = vpop.f32.mrf.mxu0  ;;  %601 = vmatpush1.bf16.msra.mxu1 %v3029_v27 }
  0xf0   : > { %v783_v35 = vmul.f32 %v3290_v31, %v3290_v31  ;;  %v3339_v5 = vadd.f32 %v581_v29, %v314_v58  ;;  %v3032_v29 = vld [vmem:[%s4039_s2 + $0x8] ss:$36 sps:$4 sm:$0xff]  }
  0xf1   : > { %v583_v30 = vpop.f32.mrf.mxu0 }
  0xf2   : > { %v3292_v32 = vadd.f32 %v583_v30, %v310_v28  ;;  %v1161_v14 = vmul.f32 %v3339_v5, %v3339_v5  ;;  %v3030_v28 = vld [vmem:[%s4039_s2 + $0xc] ss:$36 sps:$4 sm:$0xff]   ;;  %v3035_v30 = vld [vmem:[%s4039_s2 + $0xf4] ss:$36 sps:$4 sm:$0xff]  }
  0xf3   : > { %v585_v38 = vpop.f32.mrf.mxu0  ;;  %602 = vmatprep.subr.bf16.mxu1 %v3030_v28 }
  0xf4   : > { %v772_v33 = vadd.f32 %v3292_v32, %v3290_v31  ;;  %v784_v34 = vmul.f32 %v3292_v32, %v3292_v32  ;;  %v3329_v63 = vadd.f32 %v585_v38, %v314_v58  ;;  %603 = vmatpush1.bf16.msra.mxu1 %v3032_v29 }
  0xf5   : > { %682 = vmatprep.subr.bf16.mxu1 %v3035_v30 }
  0xf6   : > { %773 = vadd.xlane.f32.xlu0 %v772_v33  ;;  %v785_v36 = vadd.f32 %v784_v34, %v783_v35  ;;  %v1162_v12 = vmul.f32 %v3329_v63, %v3329_v63  ;;  %v1150_v13 = vadd.f32 %v3329_v63, %v3339_v5  ;;  %v3033_v33 = vld [vmem:[%s4039_s2 + $0xf0] ss:$36 sps:$4 sm:$0xff]   ;;  %v3036_v35 = vld [vmem:[%s4039_s2 + $0xa8] ss:$36 sps:$4 sm:$0xff]  }
  0xf7   : > { %v3038_v34 = vld [vmem:[%s4039_s2 + $0xac] ss:$36 sps:$4 sm:$0xff]   ;;  %2706 = vmatmul.mubr.msk.bf16.vlgmr.msra.gmra.mxu1 %vm541_vm0, %v3239_v10 }
  0xf8   : > { %v1163_v17 = vadd.f32 %v1162_v12, %v1161_v14  ;;  %683 = vmatpush1.bf16.msra.mxu1 %v3033_v33  ;;  %706 = vmatprep.mubr.bf16.mxu1 %v3134_v2 }
  0xf9   : > { %684 = vmatprep.subr.bf16.mxu1 %v3038_v34 }
  0xfa   : > { %786 = vadd.xlane.f32.xlu0 %v785_v36 }
  0xfc   : > { %685 = vmatpush1.bf16.msra.mxu1 %v3036_v35 }
  0xfd   : > { %v665_v40 = vpop.f32.mrf.mxu0 }
  0xfe   : > { %v3302_v42 = vadd.f32 %v665_v40, %v326_v39 }
  0xff   : > { %v667_v41 = vpop.f32.mrf.mxu0 }
 0x100   : > { %v840_v45 = vmul.f32 %v3302_v42, %v3302_v42  ;;  %v3341_v6 = vadd.f32 %v667_v41, %v330_v59 }
 0x101   : > { %v669_v43 = vpop.f32.mrf.mxu0 }
 0x102   : > { %v3304_v44 = vadd.f32 %v669_v43, %v326_v39  ;;  %v1218_v15 = vmul.f32 %v3341_v6, %v3341_v6 }
 0x103   : > { %v671_v50 = vpop.f32.mrf.mxu0 }
 0x104   : > { %v829_v46 = vadd.f32 %v3304_v44, %v3302_v42  ;;  %v841_v47 = vmul.f32 %v3304_v44, %v3304_v44  ;;  %v3343_v7 = vadd.f32 %v671_v50, %v330_v59  ;;  %v3041_v50 = vld [vmem:[%s4039_s2 + $0x64] ss:$36 sps:$4 sm:$0xff]  }
 0x105   : > { %686 = vmatprep.subr.bf16.mxu1 %v3041_v50 }
 0x106   : > { %830 = vadd.xlane.f32.xlu1 %v829_v46  ;;  %v842_v48 = vadd.f32 %v841_v47, %v840_v45  ;;  %v1219_v16 = vmul.f32 %v3343_v7, %v3343_v7  ;;  %v1207_v18 = vadd.f32 %v3343_v7, %v3341_v6 }
 0x108   : > { %v1220_v19 = vadd.f32 %v1219_v16, %v1218_v15 }
 0x10a   : > { %843 = vadd.xlane.f32.xlu1 %v842_v48 }
 0x10d   : > { %v751_v54 = vpop.f32.mrf.mxu0 }
 0x10e   : > { %v3317_v55 = vadd.f32 %v751_v54, %v342_v51  ;;  %v3042_v54 = vld [vmem:[%s4039_s2 + $0x18] ss:$36 sps:$4 sm:$0xff]  }
 0x10f   : > { %v2815_v56 = vpop.f32.mrf.mxu0 }
 0x110   : > { %v3321_v57 = vmul.f32 %v3317_v55, %v3317_v55  ;;  %v887_v62 = vsel %vm886_vm2, %v3317_v55, 0.0 }
 0x111   : > { %v754_v60 = vpop.f32.mrf.mxu0 }
 0x112   : > { %v3325_v61 = vadd.f32 %v754_v60, %v342_v51  ;;  %v902_v4 = vsel %vm886_vm2, %v3321_v57, 0.0  ;;  %v3039_v51 = vld [vmem:[%s4039_s2 + $0x60] ss:$36 sps:$4 sm:$0xff]  }
 0x113   : > { %v2816_v0 = vpop.f32.mrf.mxu0  ;;  %687 = vmatpush1.bf16.msra.mxu1 %v3039_v51 }
 0x114   : > { %v888_v1 = vsel %vm886_vm2, %v3325_v61, 0.0  ;;  %v3335_v3 = vmul.f32 %v3325_v61, %v3325_v61  ;;  %688 = vmatprep.subr.bf16.mxu1 %v3044_v53 }
 0x115   : > { %v889_v8 = vadd.f32 %v888_v1, %v887_v62 }
 0x116   : > { %v903_v9 = vsel %vm886_vm2, %v3335_v3, 0.0 }
 0x117   : > { %890 = vadd.xlane.f32.xlu0 %v889_v8  ;;  %v904_v11 = vadd.f32 %v903_v9, %v902_v4  ;;  %689 = vmatpush1.bf16.msra.mxu1 %v3042_v54 }
 0x119   : > { %905 = vadd.xlane.f32.xlu1 %v904_v11 }
 0x11a   : > { %2708 = vmatmul.mubr.msk.bf16.vlgmr.msra.gmra.mxu1 %vm541_vm0, %v3239_v10 }
 0x11b   : > { %1151 = vadd.xlane.f32.xlu0 %v1150_v13 }
 0x11d   : > { %1164 = vadd.xlane.f32.xlu1 %v1163_v17 }
 0x11f   : > { %1208 = vadd.xlane.f32.xlu0 %v1207_v18 }
 0x121   : > { %1221 = vadd.xlane.f32.xlu1 %v1220_v19 }
 0x132   : > { %1266 = vrot.lane.b32.xlu1 %v3325_v61, %s3137_s28 }
 0x135   : > { %1264 = vrot.lane.b32.xlu0 %v3317_v55, %s3137_s28 }
 0x136   : > { %1285 = vrot.lane.b32.xlu1 %v3321_v57, %s3137_s28 }
 0x13a   : > { %1287 = vrot.lane.b32.xlu1 %v3335_v3, %s3137_s28 }
 0x17f   : > { %v774_v36 = vpop.xlane.xlu0 %773 }
 0x180   : > { %v775_v37 = vrot.slane %v774_v36, 4 }
 0x182   : > { %v776_v38 = vadd.f32 %v775_v37, %v774_v36 }
 0x183   : > { %v787_v39 = vpop.xlane.xlu0 %786 }
 0x184   : > { %v777_v40 = vrot.slane %v776_v38, 2  ;;  %v788_v41 = vrot.slane %v787_v39, 4 }
 0x186   : > { %v789_v43 = vadd.f32 %v788_v41, %v787_v39  ;;  %v778_v45 = vadd.f32 %v777_v40, %v776_v38  ;;  %v2714_v39 = vld [vmem:[%s4040_s3 + $0x1] ss:$0 sm:$0xff] }
 0x188   : > { %v790_v46 = vrot.slane %v789_v43, 2  ;;  %v779_v47 = vrot.slane %v778_v45, 1 }
 0x18a   : > { %v780_v48 = vadd.f32 %v779_v47, %v778_v45  ;;  %v791_v49 = vadd.f32 %v790_v46, %v789_v43 }
 0x18c   : > { %2873 = vpush %v780_v48  ;;  %v792_v2 = vrot.slane %v791_v49, 1 }
 0x18e   : > { %v793_v52 = vadd.f32 %v792_v2, %v791_v49 }
 0x18f   : > { %v831_v56 = vpop.xlane.xlu1 %830 }
 0x190   : > { %2875 = vpush %v793_v52  ;;  %v832_v16 = vrot.slane %v831_v56, 4 }
 0x192   : > { %v833_v20 = vadd.f32 %v832_v16, %v831_v56 }
 0x193   : > { %v844_v58 = vpop.xlane.xlu1 %843 }
 0x194   : > { %v845_v18 = vrot.slane %v844_v58, 4  ;;  %v834_v23 = vrot.slane %v833_v20, 2 }
 0x196   : > { %v846_v21 = vadd.f32 %v845_v18, %v844_v58  ;;  %v835_v27 = vadd.f32 %v834_v23, %v833_v20 }
 0x198   : > { %v847_v25 = vrot.slane %v846_v21, 2  ;;  %v836_v29 = vrot.slane %v835_v27, 1 }
 0x19a   : > { %v848_v28 = vadd.f32 %v847_v25, %v846_v21  ;;  %v837_v34 = vadd.f32 %v836_v29, %v835_v27 }
 0x19c   : > { %v849_v30 = vrot.slane %v848_v28, 1 }
 0x19e   : > { %v850_v35 = vadd.f32 %v849_v30, %v848_v28  ;;  %v2716_v28 = vld [vmem:[%s4040_s3 + $0x11] ss:$0 sm:$0xff] }
 0x1a0   : > { %v3420_v59 = vpop.xlane.xlu0 %890 }
 0x1a1   : > { %v892_v45 = vrot.slane %v3420_v59, 4 }
 0x1a2   : > { %v3422_v60 = vpop.xlane.xlu1 %905 }
 0x1a3   : > { %v893_v50 = vadd.f32 %v892_v45, %v3420_v59 }
 0x1a4   : > { %v3424_v62 = vpop.xlane.xlu0 %1151 }
 0x1a5   : > { %v894_v53 = vrot.slane %v893_v50, 2 }
 0x1a6   : > { %v3426_v0 = vpop.xlane.xlu1 %1164 }
 0x1a7   : > { %v895_v58 = vadd.f32 %v894_v53, %v893_v50 }
 0x1a8   : > { %v3428_v1 = vpop.xlane.xlu0 %1208 }
 0x1aa   : > { %v3430_v4 = vpop.xlane.xlu1 %1221 }
 0x1ac   : > { %v1265_v9 = vpop.permute.xlu0 %1264 }
 0x1ad   : > { %v1270_v10 = vsel %vm886_vm2, %v1265_v9, 0.0  ;;  %v896_v9 = vrot.slane %v895_v58, 1 }
 0x1ae   : > { %v1267_v8 = vpop.permute.xlu1 %1266 }
 0x1af   : > { %v1271_v11 = vsel %vm886_vm2, %v1267_v8, 0.0 }
 0x1b0   : > { %v1272_v12 = vadd.f32 %v1271_v11, %v1270_v10  ;;  %v897_v10 = vadd.f32 %v896_v9, %v895_v58  ;;  %v333_v58 = vsub.s32 6, %v3281_v24 }
 0x1b2   : > { %v1286_v13 = vpop.permute.xlu1 %1285  ;;  %1273 = vadd.xlane.f32.xlu0 %v1272_v12 }
 0x1b3   : > { %v1291_v14 = vsel %vm886_vm2, %v1286_v13, 0.0 }
 0x1b6   : > { %v1288_v15 = vpop.permute.xlu1 %1287 }
 0x1b7   : > { %v1292_v17 = vsel %vm886_vm2, %v1288_v15, 0.0  ;;  %v622_v13 = vpop.f32.mrf.mxu1 }
 0x1b8   : > { %v1293_v19 = vadd.f32 %v1292_v17, %v1291_v14 }
 0x1b9   : > { %v3463_v15 = vpop.f32.mrf.mxu1 }
 0x1ba   : > { %1294 = vadd.xlane.f32.xlu1 %v1293_v19 }
 0x1bb   : > { %v626_v17 = vpop.f32.mrf.mxu1 }
 0x1bd   : > { %s2874_s14 = spop %2873 }
 0x1be   : > { %s3434_s15 = smul.f32 0.00048828125, %s2874_s14 }
 0x1c0   : > { %s796_s16 = smul.f32 %s3434_s15, %s3434_s15  ;;  %v799_v36 = vstv %s3434_s15 }
 0x1c1   : > { %s2876_s17 = spop %2875  ;;  %v800_v37 = vsub.f32 %v3290_v31, %v799_v36  ;;  %v801_v38 = vsub.f32 %v3292_v32, %v799_v36  ;;  %v2715_v31 = vld [vmem:[%s4040_s3 + $0x2] ss:$0 sm:$0xff]  ;;  %v907_v32 = vrot.slane %v3422_v60, 4  ;;  %v1166_v36 = vrot.slane %v3426_v0, 4 }
 0x1c2   : > { %s795_s20 = smul.f32 0.00048828125, %s2876_s17 }
 0x1c3   : > { %v908_v2 = vadd.f32 %v907_v32, %v3422_v60  ;;  %v317_v60 = vsub.s32 2, %v3281_v24 }
 0x1c4   : > { %s797_s21 = ssub.f32 %s795_s20, %s796_s16 }
 0x1c5   : > { %v909_v56 = vrot.slane %v908_v2, 2  ;;  %v318_v14 = vrot.slane %v3287_v26, %v317_v60 }
 0x1c6   : > { %s798_s23 = smax.f32 %s3138_s22, %s797_s21 }
 0x1c7   : > { %s802_s24 = sadd.f32 1e-06, %s798_s23  ;;  %v910_v8 = vadd.f32 %v909_v56, %v908_v2  ;;  %v3465_v16 = vadd.f32 %v622_v13, %v318_v14  ;;  %v3467_v18 = vadd.f32 %v626_v17, %v318_v14  ;;  %v3496_v56 = vpop.f32.mrf.mxu1 }
 0x1c9   : > { %v803_v22 = vstv %s802_s24  ;;  %v911_v11 = vrot.slane %v910_v8, 1  ;;  %v1539_v19 = vadd.f32 %v3467_v18, %v3465_v16  ;;  %v1550_v20 = vmul.f32 %v3465_v16, %v3465_v16 }
 0x1ca   : > { %3045 = vrsqrt.f32 %v803_v22  ;;  %v1551_v21 = vmul.f32 %v3467_v18, %v3467_v18 }
 0x1cb   : > { %v912_v12 = vadd.f32 %v911_v11, %v910_v8  ;;  %1540 = vadd.xlane.f32.xlu0 %v1539_v19  ;;  %v334_v8 = vrot.slane %v3287_v26, %v333_v58 }
 0x1cc   : > { %v1552_v22 = vadd.f32 %v1551_v21, %v1550_v20  ;;  %v3518_v21 = vld [vmem:[%s4040_s3 + $0x21] ss:$0 sm:$0xff] }
 0x1cf   : > { %1553 = vadd.xlane.f32.xlu0 %v1552_v22 }
 0x1d7   : > { %v3046_v33 = vpop.eup %3045 }
 0x1d8   : > { %2877 = vpush %v3046_v33 }
 0x1d9   : > { %2879 = vpush %v837_v34  ;;  %v2717_v34 = vld [vmem:[%s4040_s3 + $0x12] ss:$0 sm:$0xff] }
 0x1da   : > { %2881 = vpush %v850_v35  ;;  %v1153_v35 = vrot.slane %v3424_v62, 4  ;;  %v708_v9 = vpop.f32.mrf.mxu1 }
 0x1db   : > { %v3500_v11 = vadd.f32 %v708_v9, %v334_v8 }
 0x209   : > { %s2878_s25 = spop %2877 }
 0x20a   : > { %v806_v40 = vstv %s2878_s25  ;;  %s2880_s29 = spop %2879 }
 0x20b   : > { %v807_v41 = vmul.f32 %v806_v40, %v800_v37  ;;  %v808_v43 = vmul.f32 %v806_v40, %v801_v38  ;;  %s3447_s30 = smul.f32 0.00048828125, %s2880_s29  ;;  %s2882_s6 = spop %2881 }
 0x20c   : > { %s852_s9 = smul.f32 0.00048828125, %s2882_s6 }
 0x20d   : > { %v813_v46 = vmul.f32 %v2714_v39, %v807_v41  ;;  %v814_v47 = vmul.f32 %v2714_v39, %v808_v43  ;;  %s853_s10 = smul.f32 %s3447_s30, %s3447_s30  ;;  %v856_v23 = vstv %s3447_s30  ;;  %v1154_v41 = vadd.f32 %v1153_v35, %v3424_v62 }
 0x20e   : > { %v857_v25 = vsub.f32 %v3302_v42, %v856_v23  ;;  %v858_v27 = vsub.f32 %v3304_v44, %v856_v23  ;;  %v1167_v43 = vadd.f32 %v1166_v36, %v3426_v0 }
 0x20f   : > { %v819_v48 = vadd.f32 %v2715_v31, %v813_v46  ;;  %v3456_v49 = vadd.f32 %v2715_v31, %v814_v47  ;;  %s854_s11 = ssub.f32 %s852_s9, %s853_s10  ;;  %v1155_v46 = vrot.slane %v1154_v41, 2 }
 0x210   : > { %v1168_v47 = vrot.slane %v1167_v43, 2 }
 0x211   : > { %s855_s12 = smax.f32 %s3138_s22, %s854_s11  ;;  %vm821_vm3 = vcmp.ge.f32.partialorder %v819_v48, 0.0  ;;  %v823_v51 = vmul.f32 0.25, %v819_v48  ;;  %vm822_vm6 = vcmp.ge.f32.partialorder %v3456_v49, 0.0  ;;  %v1156_v50 = vadd.f32 %v1155_v46, %v1154_v41 }
 0x212   : > { %s859_s13 = sadd.f32 1e-06, %s855_s12  ;;  %v1169_v2 = vadd.f32 %v1168_v47, %v1167_v43 }
 0x213   : > { %v825_v52 = vsel %vm821_vm3, %v819_v48, %v823_v51  ;;  %v824_v48 = vmul.f32 0.25, %v3456_v49  ;;  %v1157_v0 = vrot.slane %v1156_v50, 1 }
 0x214   : > { %v860_v54 = vstv %s859_s13  ;;  %2821 = vmatprep.mubr.f32.mxu1 %v825_v52  ;;  %v1170_v51 = vrot.slane %v1169_v2, 1 }
 0x215   : > { %3047 = vrsqrt.f32 %v860_v54  ;;  %v826_v62 = vsel %vm822_vm6, %v3456_v49, %v824_v48  ;;  %v1158_v53 = vadd.f32 %v1157_v0, %v1156_v50  ;;  %v3502_v49 = vpop.f32.mrf.mxu1 }
 0x216   : > { %v1171_v54 = vadd.f32 %v1170_v51, %v1169_v2 }
 0x222   : > { %v3048_v59 = vpop.eup %3047 }
 0x223   : > { %2883 = vpush %v3048_v59  ;;  %v1607_v59 = vmul.f32 %v3500_v11, %v3500_v11 }
 0x224   : > { %2885 = vpush %v897_v10  ;;  %v712_v10 = vpop.f32.mrf.mxu1 }
 0x225   : > { %2887 = vpush %v912_v12  ;;  %v3504_v12 = vadd.f32 %v712_v10, %v334_v8 }
 0x227   : > { %v1596_v60 = vadd.f32 %v3504_v12, %v3500_v11  ;;  %v1608_v13 = vmul.f32 %v3504_v12, %v3504_v12 }
 0x229   : > { %1597 = vadd.xlane.f32.xlu0 %v1596_v60  ;;  %v1609_v14 = vadd.f32 %v1608_v13, %v1607_v59 }
 0x22b   : > { %1610 = vadd.xlane.f32.xlu1 %v1609_v14 }
 0x23b   : > { %v1274_v0 = vpop.xlane.xlu0 %1273 }
 0x254   : > { %s2884_s14 = spop %2883 }
 0x255   : > { %v863_v29 = vstv %s2884_s14  ;;  %s2886_s17 = spop %2885 }
 0x256   : > { %v864_v30 = vmul.f32 %v863_v29, %v857_v25  ;;  %v865_v33 = vmul.f32 %v863_v29, %v858_v27  ;;  %s3481_s20 = smul.f32 0.00390625, %s2886_s17  ;;  %s2888_s21 = spop %2887  ;;  %v3525_v27 = vld [vmem:[%s4040_s3 + $0x22] ss:$0 sm:$0xff] }
 0x257   : > { %s914_s25 = smul.f32 0.00390625, %s2888_s21 }
 0x258   : > { %v870_v42 = vmul.f32 %v2716_v28, %v864_v30  ;;  %v871_v44 = vmul.f32 %v2716_v28, %v865_v33  ;;  %s915_s26 = smul.f32 %s3481_s20, %s3481_s20  ;;  %v918_v17 = vstv %s3481_s20  ;;  %v1210_v30 = vrot.slane %v3428_v1, 4 }
 0x259   : > { %v919_v19 = vsub.f32 %v3317_v55, %v918_v17  ;;  %v920_v20 = vsub.f32 %v3325_v61, %v918_v17  ;;  %v1223_v33 = vrot.slane %v3430_v4, 4 }
 0x25a   : > { %v876_v37 = vadd.f32 %v2717_v34, %v870_v42  ;;  %v877_v38 = vadd.f32 %v2717_v34, %v871_v44  ;;  %s916_s27 = ssub.f32 %s914_s25, %s915_s26  ;;  %v1211_v36 = vadd.f32 %v1210_v30, %v3428_v1  ;;  %v1541_v30 = vpop.xlane.xlu0 %1540 }
 0x25c   : > { %s917_s29 = smax.f32 %s3138_s22, %s916_s27  ;;  %vm879_vm4 = vcmp.ge.f32.partialorder %v877_v38, 0.0  ;;  %v881_v39 = vmul.f32 0.25, %v877_v38  ;;  %v880_v40 = vmul.f32 0.25, %v876_v37  ;;  %vm878_vm5 = vcmp.ge.f32.partialorder %v876_v37, 0.0 }
 0x25d   : > { %s921_s30 = sadd.f32 1e-06, %s917_s29  ;;  %v1212_v41 = vrot.slane %v1211_v36, 2 }
 0x25e   : > { %v883_v45 = vsel %vm879_vm4, %v877_v38, %v881_v39  ;;  %v882_v32 = vsel %vm878_vm5, %v876_v37, %v880_v40  ;;  %v1224_v37 = vadd.f32 %v1223_v33, %v3430_v4 }
 0x25f   : > { %v922_v31 = vstv %s921_s30  ;;  %2817 = vmatprep.subr.mxu1 %v883_v45 }
 0x260   : > { %3049 = vrsqrt.f32 %v922_v31  ;;  %2818 = vmatpush3.xpose.msra.mxu1 %v883_v45  ;;  %v1225_v43 = vrot.slane %v1224_v37, 2  ;;  %v1213_v45 = vadd.f32 %v1212_v41, %v1211_v36  ;;  %v1554_v36 = vpop.xlane.xlu0 %1553 }
 0x261   : > { %2819 = vmatprep.subr.mxu1 %v882_v32  ;;  %v1555_v41 = vrot.slane %v1554_v36, 4 }
 0x262   : > { %v1226_v31 = vadd.f32 %v1225_v43, %v1224_v37 }
 0x264   : > { %2820 = vmatpush3.xpose.msra.mxu1 %v882_v32  ;;  %v1214_v32 = vrot.slane %v1213_v45, 1  ;;  %v1227_v46 = vrot.slane %v1226_v31, 1 }
 0x266   : > { %v1215_v47 = vadd.f32 %v1214_v32, %v1213_v45  ;;  %v1228_v48 = vadd.f32 %v1227_v46, %v1226_v31  ;;  %v1556_v46 = vadd.f32 %v1555_v41, %v1554_v36 }
 0x267   : > { %2822 = vmatmul.mubr.f32.vlgmr.msra.gmra.mxu1 %v826_v62 }
 0x26d   : > { %v3050_v52 = vpop.eup %3049 }
 0x26e   : > { %2889 = vpush %v3050_v52 }
 0x26f   : > { %2891 = vpush %v1158_v53  ;;  %v1295_v53 = vpop.xlane.xlu1 %1294 }
 0x270   : > { %2893 = vpush %v1171_v54  ;;  %v1275_v54 = vrot.slane %v1274_v0, 4 }
 0x29f   : > { %s2890_s6 = spop %2889 }
 0x2a0   : > { %v925_v22 = vstv %s2890_s6  ;;  %s2892_s9 = spop %2891 }
 0x2a1   : > { %v926_v23 = vmul.f32 %v925_v22, %v919_v19  ;;  %v927_v25 = vmul.f32 %v925_v22, %v920_v20  ;;  %s3520_s10 = smul.f32 0.00048828125, %s2892_s9  ;;  %s2894_s11 = spop %2893  ;;  %v3550_v22 = vpop.f32.mrf.mxu1 }
 0x2a2   : > { %s1173_s14 = smul.f32 0.00048828125, %s2894_s11 }
 0x2a3   : > { %v932_v28 = vmul.f32 %v3518_v21, %v926_v23  ;;  %v933_v29 = vmul.f32 %v3518_v21, %v927_v25  ;;  %s1174_s15 = smul.f32 %s3520_s10, %s3520_s10  ;;  %v1177_v4 = vstv %s3520_s10 }
 0x2a4   : > { %v1178_v50 = vsub.f32 %v3339_v5, %v1177_v4  ;;  %v1179_v62 = vsub.f32 %v3329_v63, %v1177_v4  ;;  %v1296_v5 = vrot.slane %v1295_v53, 4  ;;  %v1276_v63 = vadd.f32 %v1275_v54, %v1274_v0 }
 0x2a5   : > { %v938_v34 = vadd.f32 %v3525_v27, %v932_v28  ;;  %v939_v42 = vadd.f32 %v3525_v27, %v933_v29  ;;  %s1175_s16 = ssub.f32 %s1173_s14, %s1174_s15  ;;  %v1557_v4 = vrot.slane %v1556_v46, 2 }
 0x2a6   : > { %v1297_v58 = vadd.f32 %v1296_v5, %v1295_v53  ;;  %v1277_v9 = vrot.slane %v1276_v63, 2 }
 0x2a7   : > { %s1176_s17 = smax.f32 %s3138_s22, %s1175_s16  ;;  %vm941_vm7 = vcmp.ge.f32.partialorder %v939_v42, 0.0  ;;  %v943_v44 = vmul.f32 0.25, %v939_v42  ;;  %v942_v35 = vmul.f32 0.25, %v938_v34  ;;  %vm940_vm8 = vcmp.ge.f32.partialorder %v938_v34, 0.0 }
 0x2a8   : > { %s1180_s20 = sadd.f32 1e-06, %s1176_s17  ;;  %v1298_v10 = vrot.slane %v1297_v58, 2  ;;  %v1278_v59 = vadd.f32 %v1277_v9, %v1276_v63 }
 0x2a9   : > { %v945_v38 = vsel %vm941_vm7, %v939_v42, %v943_v44  ;;  %v944_v40 = vsel %vm940_vm8, %v938_v34, %v942_v35  ;;  %v2727_v44 = vld [vmem:[%s4040_s3 + $0x15] ss:$0 sm:$0xff] }
 0x2aa   : > { %v1181_v39 = vstv %s1180_s20  ;;  %2824 = vmatprep.subr.mxu1 %v945_v38  ;;  %v1299_v60 = vadd.f32 %v1298_v10, %v1297_v58  ;;  %v1279_v13 = vrot.slane %v1278_v59, 1 }
 0x2ab   : > { %3051 = vrsqrt.f32 %v1181_v39  ;;  %2825 = vmatpush3.msra.mxu1 %v945_v38 }
 0x2ac   : > { %2826 = vmatprep.subr.mxu1 %v944_v40  ;;  %v1300_v14 = vrot.slane %v1299_v60, 1  ;;  %v1280_v19 = vadd.f32 %v1279_v13, %v1278_v59 }
 0x2ad   : > { %2827 = vmatpush3.msra.mxu1 %v944_v40 }
 0x2ae   : > { %v1301_v20 = vadd.f32 %v1300_v14, %v1299_v60 }
 0x2b2   : > { %v1598_v9 = vpop.xlane.xlu0 %1597 }
 0x2b3   : > { %v1599_v14 = vrot.slane %v1598_v9, 4 }
 0x2b4   : > { %v1611_v59 = vpop.xlane.xlu1 %1610 }
 0x2b8   : > { %v3052_v1 = vpop.eup %3051 }
 0x2b9   : > { %2895 = vpush %v3052_v1 }
 0x2ba   : > { %2897 = vpush %v1215_v47 }
 0x2bb   : > { %2899 = vpush %v1228_v48 }
 0x2ea   : > { %s2896_s21 = spop %2895 }
 0x2eb   : > { %v1184_v2 = vstv %s2896_s21  ;;  %s2898_s23 = spop %2897 }
 0x2ec   : > { %v3541_v51 = vmul.f32 %v1184_v2, %v1178_v50  ;;  %v3543_v52 = vmul.f32 %v1184_v2, %v1179_v62  ;;  %s3545_s24 = smul.f32 0.00048828125, %s2898_s23  ;;  %s2900_s25 = spop %2899  ;;  %v1558_v62 = vadd.f32 %v1557_v4, %v1556_v46 }
 0x2ed   : > { %s1230_s26 = smul.f32 0.00048828125, %s2900_s25 }
 0x2ee   : > { %s1231_s27 = smul.f32 %s3545_s24, %s3545_s24  ;;  %v1234_v33 = vstv %s3545_s24  ;;  %v1559_v0 = vrot.slane %v1558_v62, 1 }
 0x2ef   : > { %v1235_v34 = vsub.f32 %v3341_v6, %v1234_v33  ;;  %v1236_v42 = vsub.f32 %v3343_v7, %v1234_v33  ;;  %v2728_v6 = vld [vmem:[%s4040_s3 + $0x16] ss:$0 sm:$0xff]  ;;  %v1542_v7 = vrot.slane %v1541_v30, 4 }
 0x2f0   : > { %s1232_s29 = ssub.f32 %s1230_s26, %s1231_s27  ;;  %v1560_v54 = vadd.f32 %v1559_v0, %v1558_v62  ;;  %v321_v62 = vsub.s32 3, %v3281_v24  ;;  %v337_v0 = vsub.s32 7, %v3281_v24 }
 0x2f1   : > { %v1543_v31 = vadd.f32 %v1542_v7, %v1541_v30 }
 0x2f2   : > { %s1233_s30 = smax.f32 %s3138_s22, %s1232_s29 }
 0x2f3   : > { %s1237_s6 = sadd.f32 1e-06, %s1233_s30  ;;  %v1544_v48 = vrot.slane %v1543_v31, 2 }
 0x2f5   : > { %v1238_v8 = vstv %s1237_s6  ;;  %v1545_v50 = vadd.f32 %v1544_v48, %v1543_v31 }
 0x2f6   : > { %3053 = vrsqrt.f32 %v1238_v8 }
 0x2f7   : > { %v1546_v2 = vrot.slane %v1545_v50, 1 }
 0x2f9   : > { %v1547_v53 = vadd.f32 %v1546_v2, %v1545_v50 }
 0x303   : > { %v3054_v17 = vpop.eup %3053 }
 0x304   : > { %2901 = vpush %v3054_v17  ;;  %v1612_v17 = vrot.slane %v1611_v59, 4 }
 0x305   : > { %2903 = vpush %v1280_v19  ;;  %v1600_v19 = vadd.f32 %v1599_v14, %v1598_v9 }
 0x306   : > { %2905 = vpush %v1301_v20  ;;  %v1613_v20 = vadd.f32 %v1612_v17, %v1611_v59 }
 0x308   : > { %v1614_v30 = vrot.slane %v1613_v20, 2 }
 0x327   : > { %v3552_v23 = vpop.f32.mrf.mxu1 }
 0x328   : > { %v1024_v25 = vsel %vm886_vm2, %v3552_v23, -inf }
 0x329   : > { %1025 = vmax.xlane.f32.xlu1 %v1024_v25  ;;  %v3556_v28 = vpop.f32.mrf.mxu1 }
 0x32a   : > { %v1021_v29 = vsel %vm886_vm2, %v3556_v28, -inf }
 0x32b   : > { %1022 = vmax.xlane.f32.xlu0 %v1021_v29  ;;  %v1601_v29 = vrot.slane %v1600_v19, 2 }
 0x32d   : > { %v1602_v33 = vadd.f32 %v1601_v29, %v1600_v19 }
 0x335   : > { %s2902_s7 = spop %2901 }
 0x336   : > { %v1241_v35 = vstv %s2902_s7  ;;  %s2904_s10 = spop %2903 }
 0x337   : > { %v1242_v37 = vmul.f32 %v1241_v35, %v1235_v34  ;;  %v1243_v38 = vmul.f32 %v1241_v35, %v1236_v42  ;;  %s3566_s11 = smul.f32 0.00390625, %s2904_s10  ;;  %s2906_s12 = spop %2905  ;;  %v1615_v34 = vadd.f32 %v1614_v30, %v1613_v20  ;;  %v1603_v42 = vrot.slane %v1602_v33, 1  ;;  %v2726_v30 = vld [vmem:[%s4040_s3 + $0x6] ss:$0 sm:$0xff] }
 0x338   : > { %s1303_s15 = smul.f32 0.00390625, %s2906_s12 }
 0x339   : > { %v1248_v39 = vmul.f32 %v2727_v44, %v1242_v37  ;;  %v1249_v40 = vmul.f32 %v2727_v44, %v1243_v38  ;;  %s1304_s16 = smul.f32 %s3566_s11, %s3566_s11  ;;  %v1307_v63 = vstv %s3566_s11  ;;  %v1616_v44 = vrot.slane %v1615_v34, 1 }
 0x33a   : > { %v1308_v58 = vsub.f32 %v3317_v55, %v1307_v63  ;;  %v1309_v8 = vsub.f32 %v3325_v61, %v1307_v63  ;;  %v1604_v35 = vadd.f32 %v1603_v42, %v1602_v33 }
 0x33b   : > { %v3573_v43 = vadd.f32 %v2728_v6, %v1248_v39  ;;  %v1255_v45 = vadd.f32 %v2728_v6, %v1249_v40  ;;  %s1305_s17 = ssub.f32 %s1303_s15, %s1304_s16  ;;  %v1617_v36 = vadd.f32 %v1616_v44, %v1615_v34 }
 0x33d   : > { %s1306_s20 = smax.f32 %s3138_s22, %s1305_s17  ;;  %vm1257_vm9 = vcmp.ge.f32.partialorder %v1255_v45, 0.0  ;;  %v1259_v32 = vmul.f32 0.25, %v1255_v45  ;;  %s3139_s17 = smov 96   ;;  %vm1256_vm11 = vcmp.ge.f32.partialorder %v3573_v43, 0.0 }
 0x33e   : > { %s1310_s21 = sadd.f32 1e-06, %s1306_s20 }
 0x33f   : > { %v3576_v1 = vsel %vm1257_vm9, %v1255_v45, %v1259_v32 }
 0x340   : > { %v1311_v47 = vstv %s1310_s21  ;;  %2831 = vmatprep.subr.mxu1 %v3576_v1 }
 0x341   : > { %3055 = vrsqrt.f32 %v1311_v47 }
 0x34e   : > { %v3056_v5 = vpop.eup %3055 }
 0x34f   : > { %2907 = vpush %v3056_v5 }
 0x350   : > { %2909 = vpush %v1547_v53 }
 0x351   : > { %2911 = vpush %v1560_v54  ;;  %v322_v54 = vrot.slane %v3287_v26, %v321_v62 }
 0x353   : > { %v3638_v26 = vadd.f32 %v3463_v15, %v322_v54  ;;  %v3642_v20 = vadd.f32 %v3496_v56, %v322_v54  ;;  %v2737_v15 = vld [vmem:[%s4040_s3 + $0x19] ss:$0 sm:$0xff] }
 0x355   : > { %v1924_v44 = vadd.f32 %v3642_v20, %v3638_v26 }
 0x380   : > { %s2908_s23 = spop %2907 }
 0x381   : > { %v1314_v10 = vstv %s2908_s23  ;;  %s2910_s24 = spop %2909 }
 0x382   : > { %v3582_v60 = vmul.f32 %v1314_v10, %v1308_v58  ;;  %v3584_v13 = vmul.f32 %v1314_v10, %v1309_v8  ;;  %s3586_s25 = smul.f32 0.00048828125, %s2910_s24  ;;  %s2912_s26 = spop %2911  ;;  %v2725_v58 = vld [vmem:[%s4040_s3 + $0x5] ss:$0 sm:$0xff]  ;;  %v3103_v8 = vld [vmem:[%s4040_s3] ss:$4 sm:$0xff] }
 0x383   : > { %s1562_s27 = smul.f32 0.00048828125, %s2912_s26  ;;  %v338_v9 = vrot.slane %v3103_v8, %v337_v0  ;;  %v1191_v19 = vmul.f32 %v2725_v58, %v3541_v51 }
 0x384   : > { %s1563_s29 = smul.f32 %s3586_s25, %s3586_s25  ;;  %v1566_v47 = vstv %s3586_s25 }
 0x385   : > { %v3651_v34 = vadd.f32 %v3550_v22, %v338_v9  ;;  %v1197_v51 = vadd.f32 %v2726_v30, %v1191_v19  ;;  %v2735_v22 = vld [vmem:[%s4040_s3 + $0x9] ss:$0 sm:$0xff] }
 0x386   : > { %s1564_s30 = ssub.f32 %s1562_s27, %s1563_s29 }
 0x387   : > { %vm1199_vm10 = vcmp.ge.f32.partialorder %v1197_v51, 0.0 }
 0x388   : > { %s1565_s6 = smax.f32 %s3138_s22, %s1564_s30 }
 0x389   : > { %s1569_s7 = sadd.f32 1e-06, %s1565_s6 }
 0x38b   : > { %v1570_v25 = vstv %s1569_s7 }
 0x38c   : > { %3057 = vrsqrt.f32 %v1570_v25 }
 0x399   : > { %v3058_v37 = vpop.eup %3057 }
 0x39a   : > { %2913 = vpush %v3058_v37 }
 0x39b   : > { %2915 = vpush %v1604_v35  ;;  %v1935_v35 = vmul.f32 %v3638_v26, %v3638_v26 }
 0x39c   : > { %2917 = vpush %v1617_v36 }
 0x3b2   : > { %v1026_v38 = vpop.xlane.xlu1 %1025 }
 0x3b3   : > { %v1028_v6 = vsub.f32 %v3552_v23, %v1026_v38  ;;  %v1567_v23 = vsub.f32 %v3465_v16, %v1566_v47 }
 0x3b4   : > { %v1023_v7 = vpop.xlane.xlu0 %1022 }
 0x3b5   : > { %v1031_v39 = vmul.f32 1.442695, %v1028_v6  ;;  %v1027_v40 = vsub.f32 %v3556_v28, %v1023_v7  ;;  %v1568_v28 = vsub.f32 %v3467_v18, %v1566_v47  ;;  %v2738_v6 = vld [vmem:[%s4040_s3 + $0x1a] ss:$0 sm:$0xff] }
 0x3b7   : > { %3059 = vpow2.f32 %v1031_v39  ;;  %v1029_v41 = vmul.f32 1.442695, %v1027_v40  ;;  %v1993_v40 = vmul.f32 %v3651_v34, %v3651_v34 }
 0x3b9   : > { %3061 = vpow2.f32 %v1029_v41 }
 0x3c4   : > { %v3593_v45 = vpop.eup %3059 }
 0x3c5   : > { %v1036_v31 = vsel %vm886_vm2, %v3593_v45, 0.0 }
 0x3c6   : > { %v3597_v32 = vpop.eup %3061  ;;  %1037 = vadd.xlane.f32.xlu1 %v1036_v31  ;;  %v1192_v31 = vmul.f32 %v2725_v58, %v3543_v52 }
 0x3c7   : > { %v1033_v46 = vsel %vm886_vm2, %v3597_v32, 0.0 }
 0x3c8   : > { %1034 = vadd.xlane.f32.xlu0 %v1033_v46 }
 0x3cb   : > { %s2914_s8 = spop %2913 }
 0x3cc   : > { %v1573_v48 = vstv %s2914_s8  ;;  %s2916_s9 = spop %2915 }
 0x3cd   : > { %v3604_v4 = vmul.f32 %v1573_v48, %v1567_v23  ;;  %v3606_v50 = vmul.f32 %v1573_v48, %v1568_v28  ;;  %s3608_s10 = smul.f32 0.00048828125, %s2916_s9  ;;  %s2918_s11 = spop %2917  ;;  %v1201_v28 = vmul.f32 0.25, %v1197_v51  ;;  %v2736_v48 = vld [vmem:[%s4040_s3 + $0xa] ss:$0 sm:$0xff] }
 0x3ce   : > { %s1619_s12 = smul.f32 0.00048828125, %s2918_s11 }
 0x3cf   : > { %s1620_s13 = smul.f32 %s3608_s10, %s3608_s10  ;;  %v1623_v5 = vstv %s3608_s10  ;;  %v1580_v47 = vmul.f32 %v2735_v22, %v3604_v4  ;;  %v1198_v4 = vadd.f32 %v2726_v30, %v1192_v31  ;;  %v1203_v54 = vsel %vm1199_vm10, %v1197_v51, %v1201_v28 }
 0x3d0   : > { %v1625_v59 = vsub.f32 %v3504_v12, %v1623_v5  ;;  %v3648_v12 = vadd.f32 %v3502_v49, %v338_v9  ;;  %v1624_v56 = vsub.f32 %v3500_v11, %v1623_v5  ;;  %v1936_v49 = vmul.f32 %v3642_v20, %v3642_v20 }
 0x3d1   : > { %s1621_s14 = ssub.f32 %s1619_s12, %s1620_s13  ;;  %v1581_v58 = vmul.f32 %v2735_v22, %v3606_v50  ;;  %v1202_v8 = vmul.f32 0.25, %v1198_v4  ;;  %vm1200_vm13 = vcmp.ge.f32.partialorder %v1198_v4, 0.0 }
 0x3d2   : > { %v1992_v39 = vmul.f32 %v3648_v12, %v3648_v12  ;;  %v1937_v23 = vadd.f32 %v1936_v49, %v1935_v35 }
 0x3d3   : > { %s1622_s15 = smax.f32 %s3138_s22, %s1621_s14 }
 0x3d4   : > { %s1626_s16 = sadd.f32 1e-06, %s1622_s15  ;;  %v1994_v0 = vadd.f32 %v1993_v40, %v1992_v39 }
 0x3d6   : > { %v1627_v16 = vstv %s1626_s16 }
 0x3d7   : > { %3063 = vrsqrt.f32 %v1627_v16  ;;  %1653 = vrot.lane.b32.xlu1 %v3325_v61, %s3139_s17 }
 0x3db   : > { %1670 = vrot.lane.b32.xlu1 %v3321_v57, %s3139_s17 }
 0x3de   : > { %1651 = vrot.lane.b32.xlu0 %v3317_v55, %s3139_s17 }
 0x3df   : > { %1672 = vrot.lane.b32.xlu1 %v3335_v3, %s3139_s17 }
 0x3e4   : > { %v3064_v18 = vpop.eup %3063 }
 0x3e5   : > { %2919 = vpush %v3064_v18 }
 0x416   : > { %s3623_s20 = spop %2919 }
 0x417   : > { %v1630_v24 = vstv %s3623_s20 }
 0x418   : > { %v1632_v33 = vmul.f32 %v1630_v24, %v1625_v59  ;;  %v1631_v36 = vmul.f32 %v1630_v24, %v1624_v56  ;;  %v1587_v59 = vadd.f32 %v2736_v48, %v1581_v58 }
 0x41a   : > { %v1638_v37 = vmul.f32 %v2737_v15, %v1632_v33  ;;  %v1637_v16 = vmul.f32 %v2737_v15, %v1631_v36  ;;  %vm1589_vm0 = vcmp.ge.f32.partialorder %v1587_v59, 0.0 }
 0x41c   : > { %v1644_v18 = vadd.f32 %v2738_v6, %v1638_v37  ;;  %v1643_v5 = vadd.f32 %v2738_v6, %v1637_v16 }
 0x41e   : > { %vm1646_vm12 = vcmp.ge.f32.partialorder %v1644_v18, 0.0  ;;  %vm1645_vm15 = vcmp.ge.f32.partialorder %v1643_v5, 0.0 }
 0x44f   : > { %v1038_v2 = vpop.xlane.xlu1 %1037 }
 0x450   : > { %3065 = vrcp.f32 %v1038_v2  ;;  %v1258_v2 = vmul.f32 0.25, %v3573_v43 }
 0x451   : > { %v1035_v53 = vpop.xlane.xlu0 %1034 }
 0x452   : > { %3067 = vrcp.f32 %v1035_v53  ;;  %v1586_v53 = vadd.f32 %v2736_v48, %v1580_v47 }
 0x453   : > { %v1654_v63 = vpop.permute.xlu1 %1653 }
 0x454   : > { %v1658_v14 = vsel %vm886_vm2, %v1654_v63, 0.0  ;;  %v1260_v63 = vsel %vm1256_vm11, %v3573_v43, %v1258_v2  ;;  %v1590_v9 = vmul.f32 0.25, %v1586_v53  ;;  %vm1588_vm14 = vcmp.ge.f32.partialorder %v1586_v53, 0.0 }
 0x455   : > { %v1652_v10 = vpop.permute.xlu0 %1651 }
 0x456   : > { %v1657_v17 = vsel %vm886_vm2, %v1652_v10, 0.0  ;;  %v1647_v10 = vmul.f32 0.25, %v1643_v5  ;;  %v1592_v43 = vsel %vm1588_vm14, %v1586_v53, %v1590_v9 }
 0x457   : > { %v1671_v25 = vpop.permute.xlu1 %1670  ;;  %v1659_v29 = vadd.f32 %v1658_v14, %v1657_v17  ;;  %v1591_v17 = vmul.f32 0.25, %v1587_v59 }
 0x458   : > { %v1676_v38 = vsel %vm886_vm2, %v1671_v25, 0.0  ;;  %v1649_v14 = vsel %vm1645_vm15, %v1643_v5, %v1647_v10 }
 0x459   : > { %1660 = vadd.xlane.f32.xlu0 %v1659_v29  ;;  %v1593_v50 = vsel %vm1589_vm0, %v1587_v59, %v1591_v17 }
 0x45b   : > { %v1673_v42 = vpop.permute.xlu1 %1672 }
 0x45c   : > { %v1677_v11 = vsel %vm886_vm2, %v1673_v42, 0.0 }
 0x45d   : > { %1925 = vadd.xlane.f32.xlu0 %v1924_v44  ;;  %v1678_v7 = vadd.f32 %v1677_v11, %v1676_v38  ;;  %v3066_v41 = vpop.eup %3065 }
 0x45e   : > { %v1042_v52 = vmul.f32 %v3066_v41, %v3593_v45  ;;  %v1648_v45 = vmul.f32 0.25, %v1644_v18 }
 0x45f   : > { %v3068_v46 = vpop.eup %3067  ;;  %1679 = vadd.xlane.f32.xlu1 %v1678_v7 }
 0x460   : > { %v1041_v62 = vmul.f32 %v3068_v46, %v3597_v32  ;;  %v1981_v32 = vadd.f32 %v3651_v34, %v3648_v12  ;;  %v1650_v24 = vsel %vm1646_vm12, %v1644_v18, %v1648_v45 }
 0x461   : > { %1938 = vadd.xlane.f32.xlu0 %v1937_v23 }
 0x462   : > { %2828 = vmatprep.mubr.msk.f32.mxu1 %vm886_vm2, %v1041_v62 }
 0x463   : > { %1995 = vadd.xlane.f32.xlu1 %v1994_v0  ;;  %2829 = vmatmul.mubr.msk.f32.vlgmr.msra.gmra.mxu1 %vm886_vm2, %v1042_v52 }
 0x464   : > { %2832 = vmatpush3.xpose.msra.mxu1 %v3576_v1  ;;  %2835 = vmatprep.mubr.f32.mxu1 %v1203_v54  ;;  %v1204_v1 = vsel %vm1200_vm13, %v1198_v4, %v1202_v8 }
 0x465   : > { %2833 = vmatprep.subr.mxu1 %v1260_v63  ;;  %1982 = vadd.xlane.f32.xlu0 %v1981_v32 }
 0x468   : > { %2834 = vmatpush3.xpose.msra.mxu1 %v1260_v63 }
 0x469   : > { %2845 = vmatprep.subr.mxu1 %v1650_v24 }
 0x46b   : > { %2836 = vmatmul.mubr.f32.vlgmr.msra.gmra.mxu1 %v1204_v1 }
 0x46c   : > { %2846 = vmatpush3.xpose.msra.mxu1 %v1650_v24  ;;  %2849 = vmatprep.mubr.f32.mxu1 %v1592_v43 }
 0x46d   : > { %2847 = vmatprep.subr.mxu1 %v1649_v14 }
 0x470   : > { %2848 = vmatpush3.xpose.msra.mxu1 %v1649_v14 }
 0x473   : > { %2850 = vmatmul.mubr.f32.vlgmr.msra.gmra.mxu1 %v1593_v50 }
 0x4e2   : > { %v1661_v19 = vpop.xlane.xlu0 %1660 }
 0x4e3   : > { %v1662_v25 = vrot.slane %v1661_v19, 4 }
 0x4e5   : > { %v1663_v29 = vadd.f32 %v1662_v25, %v1661_v19 }
 0x4e6   : > { %v1926_v37 = vpop.xlane.xlu0 %1925 }
 0x4e7   : > { %v1664_v30 = vrot.slane %v1663_v29, 2  ;;  %v1927_v6 = vrot.slane %v1926_v37, 4 }
 0x4e8   : > { %v1680_v33 = vpop.xlane.xlu1 %1679 }
 0x4e9   : > { %v1681_v15 = vrot.slane %v1680_v33, 4  ;;  %v1665_v56 = vadd.f32 %v1664_v30, %v1663_v29  ;;  %v1928_v41 = vadd.f32 %v1927_v6, %v1926_v37 }
 0x4ea   : > { %v1939_v11 = vpop.xlane.xlu0 %1938 }
 0x4eb   : > { %v1682_v51 = vadd.f32 %v1681_v15, %v1680_v33  ;;  %v1666_v42 = vrot.slane %v1665_v56, 1  ;;  %v1940_v7 = vrot.slane %v1939_v11, 4  ;;  %v1929_v48 = vrot.slane %v1928_v41, 2 }
 0x4ec   : > { %v1996_v1 = vpop.xlane.xlu1 %1995 }
 0x4ed   : > { %v1683_v44 = vrot.slane %v1682_v51, 2  ;;  %v1667_v35 = vadd.f32 %v1666_v42, %v1665_v56  ;;  %v1941_v46 = vadd.f32 %v1940_v7, %v1939_v11  ;;  %v1930_v2 = vadd.f32 %v1929_v48, %v1928_v41 }
 0x4ee   : > { %v1983_v24 = vpop.xlane.xlu0 %1982  ;;  %v1997_v14 = vrot.slane %v1996_v1, 4 }
 0x4ef   : > { %2921 = vpush %v1667_v35  ;;  %v1684_v49 = vadd.f32 %v1683_v44, %v1682_v51  ;;  %v1942_v16 = vrot.slane %v1941_v46, 2  ;;  %v1931_v53 = vrot.slane %v1930_v2, 1  ;;  %v1984_v43 = vrot.slane %v1983_v24, 4 }
 0x4f0   : > { %v1998_v50 = vadd.f32 %v1997_v14, %v1996_v1 }
 0x4f1   : > { %v1685_v22 = vrot.slane %v1684_v49, 1  ;;  %v1943_v52 = vadd.f32 %v1942_v16, %v1941_v46  ;;  %v1932_v5 = vadd.f32 %v1931_v53, %v1930_v2  ;;  %v1985_v17 = vadd.f32 %v1984_v43, %v1983_v24 }
 0x4f2   : > { %v1999_v29 = vrot.slane %v1998_v50, 2 }
 0x4f3   : > { %v1686_v36 = vadd.f32 %v1685_v22, %v1684_v49  ;;  %v1944_v54 = vrot.slane %v1943_v52, 1  ;;  %v1986_v25 = vrot.slane %v1985_v17, 2 }
 0x4f4   : > { %v2000_v33 = vadd.f32 %v1999_v29, %v1998_v50 }
 0x4f5   : > { %2923 = vpush %v1686_v36  ;;  %v1945_v63 = vadd.f32 %v1944_v54, %v1943_v52  ;;  %v1987_v30 = vadd.f32 %v1986_v25, %v1985_v17 }
 0x4f6   : > { %v2001_v56 = vrot.slane %v2000_v33, 1 }
 0x4f7   : > { %v1988_v15 = vrot.slane %v1987_v30, 1 }
 0x4f8   : > { %v2002_v44 = vadd.f32 %v2001_v56, %v2000_v33  ;;  %v2747_v33 = vld [vmem:[%s4040_s3 + $0x1d] ss:$0 sm:$0xff] }
 0x4f9   : > { %v1989_v42 = vadd.f32 %v1988_v15, %v1987_v30 }
 0x520   : > { %s2922_s12 = spop %2921 }
 0x521   : > { %s3692_s13 = smul.f32 0.00390625, %s2922_s12 }
 0x523   : > { %v3694_v38 = vpop.f32.mrf.mxu1  ;;  %s1689_s14 = smul.f32 %s3692_s13, %s3692_s13  ;;  %v1692_v45 = vstv %s3692_s13 }
 0x524   : > { %v1693_v58 = vsub.f32 %v3317_v55, %v1692_v45  ;;  %v1694_v8 = vsub.f32 %v3325_v61, %v1692_v45 }
 0x525   : > { %v3698_v39 = vpop.f32.mrf.mxu1 }
 0x526   : > { %s2924_s15 = spop %2923 }
 0x527   : > { %s1688_s16 = smul.f32 0.00390625, %s2924_s15 }
 0x529   : > { %s1690_s20 = ssub.f32 %s1688_s16, %s1689_s14 }
 0x52b   : > { %s1691_s21 = smax.f32 %s3138_s22, %s1690_s20  ;;  %v3701_v40 = vpop.f32.mrf.mxu1 }
 0x52c   : > { %s1695_s23 = sadd.f32 1e-06, %s1691_s21  ;;  %v1405_v31 = vsel %vm886_vm2, %v3701_v40, -inf  ;;  %s3140_s21 = smov 80  }
 0x52d   : > { %1406 = vmax.xlane.f32.xlu1 %v1405_v31  ;;  %v3705_v47 = vpop.f32.mrf.mxu1 }
 0x52e   : > { %v1696_v23 = vstv %s1695_s23  ;;  %v1402_v28 = vsel %vm886_vm2, %v3705_v47, -inf }
 0x52f   : > { %3069 = vrsqrt.f32 %v1696_v23  ;;  %1403 = vmax.xlane.f32.xlu0 %v1402_v28 }
 0x533   : > { %v3709_v18 = vpop.f32.mrf.mxu1 }
 0x534   : > { %v1790_v62 = vsel %vm886_vm2, %v3709_v18, -inf }
 0x535   : > { %1791 = vmax.xlane.f32.xlu1 %v1790_v62  ;;  %v3713_v0 = vpop.f32.mrf.mxu1 }
 0x536   : > { %v1787_v4 = vsel %vm886_vm2, %v3713_v0, -inf }
 0x537   : > { %1788 = vmax.xlane.f32.xlu0 %v1787_v4 }
 0x53c   : > { %v3070_v32 = vpop.eup %3069 }
 0x53d   : > { %2925 = vpush %v3070_v32 }
 0x53e   : > { %2927 = vpush %v1932_v5  ;;  %v1317_v5 = vmul.f32 %v3518_v21, %v3582_v60 }
 0x53f   : > { %2929 = vpush %v1945_v63 }
 0x540   : > { %v1319_v63 = vadd.f32 %v3525_v27, %v1317_v5 }
 0x542   : > { %v1323_v24 = vmul.f32 0.25, %v1319_v63  ;;  %vm1321_vm1 = vcmp.ge.f32.partialorder %v1319_v63, 0.0 }
 0x544   : > { %v1325_v60 = vsel %vm1321_vm1, %v1319_v63, %v1323_v24 }
 0x56e   : > { %s2926_s24 = spop %2925 }
 0x56f   : > { %v1699_v9 = vstv %s2926_s24  ;;  %s2928_s25 = spop %2927  ;;  %s3828_s24 = sld [smem:[#allocation2 + $0x83]] }
 0x570   : > { %v3720_v10 = vmul.f32 %v1699_v9, %v1693_v58  ;;  %v3722_v59 = vmul.f32 %v1699_v9, %v1694_v8  ;;  %s3724_s26 = smul.f32 0.00048828125, %s2928_s25  ;;  %s2930_s27 = spop %2929  ;;  %v1318_v58 = vmul.f32 %v3518_v21, %v3584_v13 }
 0x571   : > { %s1947_s29 = smul.f32 0.00048828125, %s2930_s27  ;;  %s3838_s25 = sld [smem:[#allocation2 + $0x100]] }
 0x572   : > { %s1948_s30 = smul.f32 %s3724_s26, %s3724_s26  ;;  %v1951_v35 = vstv %s3724_s26  ;;  %v1703_v45 = vmul.f32 %v3518_v21, %v3722_v59  ;;  %v1702_v8 = vmul.f32 %v3518_v21, %v3720_v10  ;;  %v1320_v1 = vadd.f32 %v3525_v27, %v1318_v58  ;;  %s3844_s26 = sld [smem:[#allocation2 + $0x101]] }
 0x573   : > { %v1952_v6 = vsub.f32 %v3638_v26, %v1951_v35  ;;  %v1953_v7 = vsub.f32 %v3642_v20, %v1951_v35  ;;  %s3850_s27 = sld [smem:[#allocation2 + $0x102]] }
 0x574   : > { %s1949_s6 = ssub.f32 %s1947_s29, %s1948_s30  ;;  %v1705_v9 = vadd.f32 %v3525_v27, %v1703_v45  ;;  %v1704_v43 = vadd.f32 %v3525_v27, %v1702_v8  ;;  %v1324_v17 = vmul.f32 0.25, %v1320_v1  ;;  %vm1322_vm4 = vcmp.ge.f32.partialorder %v1320_v1, 0.0 }
 0x575   : > { %s3852_s29 = sld [smem:[#allocation2 + $0x103]] }
 0x576   : > { %s1950_s7 = smax.f32 %s3138_s22, %s1949_s6  ;;  %v1709_v14 = vmul.f32 0.25, %v1705_v9  ;;  %vm1707_vm3 = vcmp.ge.f32.partialorder %v1705_v9, 0.0  ;;  %v1708_v13 = vmul.f32 0.25, %v1704_v43  ;;  %vm1706_vm5 = vcmp.ge.f32.partialorder %v1704_v43, 0.0 }
 0x577   : > { %s1954_s8 = sadd.f32 1e-06, %s1950_s7  ;;  %v1326_v21 = vsel %vm1322_vm4, %v1320_v1, %v1324_v17 }
 0x578   : > { %v1711_v59 = vsel %vm1707_vm3, %v1705_v9, %v1709_v14  ;;  %v1710_v10 = vsel %vm1706_vm5, %v1704_v43, %v1708_v13  ;;  %vm2490_vm5 = vcmask 261248  }
 0x579   : > { %v1955_v19 = vstv %s1954_s8  ;;  %s3814_s8 = sld [smem:[#allocation2 + $0x200]] }
 0x57a   : > { %3071 = vrsqrt.f32 %v1955_v19 }
 0x587   : > { %v3072_v51 = vpop.eup %3071 }
 0x588   : > { %2931 = vpush %v3072_v51 }
 0x589   : > { %2933 = vpush %v1989_v42 }
 0x58a   : > { %2935 = vpush %v2002_v44 }
 0x5b6   : > { %v1407_v49 = vpop.xlane.xlu1 %1406 }
 0x5b7   : > { %v1409_v22 = vsub.f32 %v3701_v40, %v1407_v49 }
 0x5b8   : > { %v1404_v36 = vpop.xlane.xlu0 %1403 }
 0x5b9   : > { %v1412_v37 = vmul.f32 1.442695, %v1409_v22  ;;  %v1408_v11 = vsub.f32 %v3705_v47, %v1404_v36  ;;  %s2932_s9 = spop %2931 }
 0x5ba   : > { %v1958_v41 = vstv %s2932_s9  ;;  %s2934_s10 = spop %2933  ;;  %s3816_s9 = sld [smem:[#allocation2 + $0x201]] }
 0x5bb   : > { %3073 = vpow2.f32 %v1412_v37  ;;  %v1410_v31 = vmul.f32 1.442695, %v1408_v11  ;;  %v3734_v46 = vmul.f32 %v1958_v41, %v1952_v6  ;;  %v3736_v23 = vmul.f32 %v1958_v41, %v1953_v7  ;;  %s3738_s11 = smul.f32 0.00048828125, %s2934_s10  ;;  %s2936_s12 = spop %2935 }
 0x5bc   : > { %s2004_s13 = smul.f32 0.00048828125, %s2936_s12  ;;  %s3818_s10 = sld [smem:[#allocation2 + $0x202]] }
 0x5bd   : > { %3075 = vpow2.f32 %v1410_v31  ;;  %s2005_s14 = smul.f32 %s3738_s11, %s3738_s11  ;;  %v2008_v50 = vstv %s3738_s11  ;;  %s1124_s11 = sld [smem:[#allocation2]] }
 0x5be   : > { %v1792_v26 = vpop.xlane.xlu1 %1791  ;;  %v2010_v29 = vsub.f32 %v3651_v34, %v2008_v50  ;;  %v2009_v51 = vsub.f32 %v3648_v12, %v2008_v50  ;;  %v2745_v34 = vld [vmem:[%s4040_s3 + $0xd] ss:$0 sm:$0xff]  ;;  %v2746_v12 = vld [vmem:[%s4040_s3 + $0xe] ss:$0 sm:$0xff]  ;;  %s2722_s12 = sld [smem:[#allocation2 + $0x1]] }
 0x5bf   : > { %s2006_s15 = ssub.f32 %s2004_s13, %s2005_s14  ;;  %v1794_v20 = vsub.f32 %v3709_v18, %v1792_v26  ;;  %v1965_v11 = vmul.f32 %v2745_v34, %v3734_v46 }
 0x5c0   : > { %v1789_v40 = vpop.xlane.xlu0 %1788  ;;  %s2723_s13 = sld [smem:[#allocation2 + $0x2]] }
 0x5c1   : > { %s2007_s16 = smax.f32 %s3138_s22, %s2006_s15  ;;  %v1797_v47 = vmul.f32 1.442695, %v1794_v20  ;;  %v1793_v28 = vsub.f32 %v3713_v0, %v1789_v40  ;;  %v1971_v46 = vadd.f32 %v2746_v12, %v1965_v11  ;;  %s2724_s14 = sld [smem:[#allocation2 + $0x3]] }
 0x5c2   : > { %s2011_s20 = sadd.f32 1e-06, %s2007_s16 }
 0x5c3   : > { %3077 = vpow2.f32 %v1797_v47  ;;  %v1795_v48 = vmul.f32 1.442695, %v1793_v28  ;;  %vm1973_vm7 = vcmp.ge.f32.partialorder %v1971_v46, 0.0  ;;  %s3820_s15 = sld [smem:[#allocation2 + $0x203]] }
 0x5c4   : > { %v2012_v16 = vstv %s2011_s20  ;;  %s3822_s16 = sld [smem:[#allocation2 + $0x80]] }
 0x5c5   : > { %3079 = vrsqrt.f32 %v2012_v16  ;;  %s3824_s20 = sld [smem:[#allocation2 + $0x81]] }
 0x5c6   : > { %3081 = vpow2.f32 %v1795_v48  ;;  %v1966_v48 = vmul.f32 %v2745_v34, %v3736_v23 }
 0x5c8   : > { %v3745_v62 = vpop.eup %3073  ;;  %v1972_v45 = vadd.f32 %v2746_v12, %v1966_v48 }
 0x5c9   : > { %v1417_v2 = vsel %vm886_vm2, %v3745_v62, 0.0  ;;  %v768_v34 = vstv %s3820_s15 }
 0x5ca   : > { %v3749_v52 = vpop.eup %3075  ;;  %1418 = vadd.xlane.f32.xlu1 %v1417_v2  ;;  %vm1974_vm9 = vcmp.ge.f32.partialorder %v1972_v45, 0.0  ;;  %v1514_v12 = vstv %s3822_s16 }
 0x5cb   : > { %v1414_v18 = vsel %vm886_vm2, %v3749_v52, 0.0 }
 0x5cc   : > { %1415 = vadd.xlane.f32.xlu0 %v1414_v18  ;;  %v1975_v18 = vmul.f32 0.25, %v1971_v46 }
 0x5ce   : > { %v1977_v9 = vsel %vm1973_vm7, %v1971_v46, %v1975_v18  ;;  %vm2572_vm7 = vcmask 523648  }
 0x5d0   : > { %v3753_v4 = vpop.eup %3077 }
 0x5d1   : > { %v1802_v0 = vsel %vm886_vm2, %v3753_v4, 0.0 }
 0x5d2   : > { %v3080_v53 = vpop.eup %3079  ;;  %1803 = vadd.xlane.f32.xlu1 %v1802_v0 }
 0x5d3   : > { %v3757_v54 = vpop.eup %3081  ;;  %2937 = vpush %v3080_v53 }
 0x5d4   : > { %v1799_v32 = vsel %vm886_vm2, %v3757_v54, 0.0 }
 0x5d5   : > { %1800 = vadd.xlane.f32.xlu0 %v1799_v32 }
 0x5e3   : > { %1426 = vrot.lane.b32.xlu1 %v1325_v60, %s3137_s28 }
 0x5e7   : > { %1813 = vrot.lane.b32.xlu1 %v1711_v59, %s3139_s17 }
 0x5eb   : > { %1428 = vrot.lane.b32.xlu0 %v1326_v21, %s3137_s28  ;;  %1811 = vrot.lane.b32.xlu1 %v1710_v10, %s3139_s17 }
 0x5ef   : > { %2036 = vrot.lane.b32.xlu0 %v3317_v55, %s3140_s21  ;;  %2038 = vrot.lane.b32.xlu1 %v3325_v61, %s3140_s21 }
 0x5f3   : > { %2055 = vrot.lane.b32.xlu0 %v3321_v57, %s3140_s21  ;;  %2057 = vrot.lane.b32.xlu1 %v3335_v3, %s3140_s21  ;;  %v2748_v3 = vld [vmem:[%s4040_s3 + $0x1e] ss:$0 sm:$0xff] }
 0x604   : > { %s2938_s23 = spop %2937 }
 0x605   : > { %v2015_v25 = vstv %s2938_s23  ;;  %s3826_s23 = sld [smem:[#allocation2 + $0x82]] }
 0x606   : > { %v2017_v30 = vmul.f32 %v2015_v25, %v2010_v29  ;;  %v2016_v44 = vmul.f32 %v2015_v25, %v2009_v51  ;;  %v762_v51 = vstv %s3816_s9 }
 0x608   : > { %v2023_v56 = vmul.f32 %v2747_v33, %v2017_v30  ;;  %v2022_v7 = vmul.f32 %v2747_v33, %v2016_v44  ;;  %v1125_v33 = vstv %s1124_s11 }
 0x609   : > { %v1127_v44 = vmul.f32 %v3694_v38, %v1125_v33 }
 0x60a   : > { %v2029_v49 = vadd.f32 %v2748_v3, %v2023_v56  ;;  %v2028_v40 = vadd.f32 %v2748_v3, %v2022_v7  ;;  %v1137_v56 = vstv %s2723_s13  ;;  %v759_v3 = vstv %s3814_s8 }
 0x60b   : > { %v1138_v11 = vmul.f32 %v1137_v56, %v3698_v39  ;;  %v1520_v7 = vstv %s3824_s20 }
 0x60c   : > { %v2033_v31 = vmul.f32 0.25, %v2029_v49  ;;  %vm2031_vm6 = vcmp.ge.f32.partialorder %v2029_v49, 0.0  ;;  %v2032_v5 = vmul.f32 0.25, %v2028_v40  ;;  %vm2030_vm8 = vcmp.ge.f32.partialorder %v2028_v40, 0.0 }
 0x60e   : > { %v2035_v47 = vsel %vm2031_vm6, %v2029_v49, %v2033_v31  ;;  %v1139_v49 = vmul.f32 %v3694_v38, %v1137_v56  ;;  %v1532_v31 = vstv %s3828_s24  ;;  %s2752_s24 = sld [smem:[#allocation2 + $0x181]]  ;;  %vm2531_vm6 = vcmask 392448  }
 0x653   : > { %v1419_v27 = vpop.xlane.xlu1 %1418 }
 0x654   : > { %3083 = vrcp.f32 %v1419_v27 }
 0x655   : > { %v1416_v19 = vpop.xlane.xlu0 %1415 }
 0x656   : > { %3085 = vrcp.f32 %v1416_v19 }
 0x65b   : > { %v1804_v15 = vpop.xlane.xlu1 %1803 }
 0x65c   : > { %3087 = vrcp.f32 %v1804_v15  ;;  %v1131_v15 = vstv %s2722_s12 }
 0x65e   : > { %v1801_v57 = vpop.xlane.xlu0 %1800 }
 0x65f   : > { %3089 = vrcp.f32 %v1801_v57  ;;  %v1427_v42 = vpop.permute.xlu1 %1426  ;;  %v1143_v57 = vstv %s2724_s14 }
 0x661   : > { %v3084_v35 = vpop.eup %3083 }
 0x662   : > { %v1429_v22 = vpop.permute.xlu0 %1428  ;;  %v1423_v41 = vmul.f32 %v3084_v35, %v3745_v62  ;;  %v1133_v35 = vmul.f32 %v3694_v38, %v1131_v15 }
 0x663   : > { %v3086_v36 = vpop.eup %3085  ;;  %2838 = vmatprep.subr.mxu0 %v1429_v22  ;;  %v1814_v37 = vpop.permute.xlu1 %1813 }
 0x664   : > { %2839 = vmatpush3.msra.mxu0 %v1429_v22  ;;  %v1422_v6 = vmul.f32 %v3086_v36, %v3749_v52  ;;  %v1145_v22 = vmul.f32 %v3694_v38, %v1143_v57  ;;  %v1126_v36 = vmul.f32 %v1125_v33, %v3698_v39  ;;  %v1129_v38 = vadd.f32 %v1127_v44, %v759_v3 }
 0x665   : > { %2840 = vmatprep.subr.mxu0 %v1427_v42 }
 0x666   : > { %2841 = vmatpush3.msra.mxu0 %v1427_v42  ;;  %2842 = vmatprep.mubr.msk.f32.mxu0 %vm886_vm2, %v1422_v6  ;;  %v2037_v26 = vpop.permute.xlu0 %2036  ;;  %v765_v42 = vstv %s3818_s10  ;;  %v1144_v6 = vmul.f32 %v1143_v57, %v3698_v39  ;;  %v1147_v46 = vadd.f32 %v1145_v22, %v768_v34 }
 0x667   : > { %2852 = vmatprep.subr.mxu0 %v1814_v37  ;;  %v1812_v20 = vpop.permute.xlu1 %1811  ;;  %2843 = vmatmul.mubr.msk.f32.vlgmr.msra.gmra.mxu0 %vm886_vm2, %v1423_v41  ;;  %v2042_v2 = vsel %vm886_vm2, %v2037_v26, 0.0  ;;  %v1526_v41 = vstv %s3826_s23  ;;  %v1135_v26 = vadd.f32 %v1133_v35, %v762_v51  ;;  %s2751_s23 = sld [smem:[#allocation2 + $0x180]] }
 0x668   : > { %2853 = vmatpush3.msra.mxu0 %v1814_v37  ;;  %v1132_v37 = vmul.f32 %v1131_v15, %v3698_v39  ;;  %v1128_v39 = vadd.f32 %v1126_v36, %v759_v3 }
 0x669   : > { %2854 = vmatprep.subr.mxu0 %v1812_v20  ;;  %v3088_v28 = vpop.eup %3087 }
 0x66a   : > { %2855 = vmatpush3.msra.mxu0 %v1812_v20  ;;  %v2056_v0 = vpop.permute.xlu0 %2055  ;;  %v1808_v63 = vmul.f32 %v3088_v28, %v3753_v4  ;;  %v1976_v4 = vmul.f32 0.25, %v1972_v45  ;;  %v1141_v20 = vadd.f32 %v1139_v49, %v765_v42 }
 0x66b   : > { %2859 = vmatprep.subr.mxu0 %v2035_v47  ;;  %v2039_v16 = vpop.permute.xlu1 %2038  ;;  %v2061_v58 = vsel %vm886_vm2, %v2056_v0, 0.0 }
 0x66c   : > { %v3090_v62 = vpop.eup %3089  ;;  %v2043_v52 = vsel %vm886_vm2, %v2039_v16, 0.0  ;;  %v1978_v1 = vsel %vm1974_vm9, %v1972_v45, %v1976_v4  ;;  %v1899_v4 = vstv %s3838_s25  ;;  %s2753_s25 = sld [smem:[#allocation2 + $0x182]] }
 0x66d   : > { %v1807_v53 = vmul.f32 %v3090_v62, %v3757_v54  ;;  %v2044_v32 = vadd.f32 %v2043_v52, %v2042_v2  ;;  %v2034_v54 = vsel %vm2030_vm8, %v2028_v40, %v2032_v5  ;;  %v1134_v62 = vadd.f32 %v1132_v37, %v762_v51 }
 0x66e   : > { %v1140_v2 = vadd.f32 %v1138_v11, %v765_v42  ;;  %v1146_v52 = vadd.f32 %v1144_v6, %v768_v34 }
 0x66f   : > { %2856 = vmatprep.mubr.msk.f32.mxu0 %vm886_vm2, %v1807_v53  ;;  %v2058_v23 = vpop.permute.xlu1 %2057  ;;  %2045 = vadd.xlane.f32.xlu0 %v2044_v32 }
 0x670   : > { %v2062_v8 = vsel %vm886_vm2, %v2058_v23, 0.0  ;;  %2857 = vmatmul.mubr.msk.f32.vlgmr.msra.gmra.mxu0 %vm886_vm2, %v1808_v63 }
 0x671   : > { %2860 = vmatpush3.xpose.msra.mxu0 %v2035_v47  ;;  %2863 = vmatprep.mubr.f32.mxu0 %v1977_v9  ;;  %v2063_v24 = vadd.f32 %v2062_v8, %v2061_v58 }
 0x672   : > { %2861 = vmatprep.subr.mxu0 %v2034_v54 }
 0x673   : > { %2064 = vadd.xlane.f32.xlu1 %v2063_v24 }
 0x675   : > { %2862 = vmatpush3.xpose.msra.mxu0 %v2034_v54 }
 0x678   : > { %2864 = vmatmul.mubr.f32.vlgmr.msra.gmra.mxu0 %v1978_v1  ;;  %v1905_v1 = vstv %s3844_s26  ;;  %s2754_s26 = sld [smem:[#allocation2 + $0x183]] }
 0x6f8   : > { %v2046_v43 = vpop.xlane.xlu0 %2045 }
 0x6f9   : > { %v2047_v60 = vrot.slane %v2046_v43, 4 }
 0x6fb   : > { %v2048_v14 = vadd.f32 %v2047_v60, %v2046_v43  ;;  %v1911_v43 = vstv %s3850_s27  ;;  %v1917_v60 = vstv %s3852_s29  ;;  %s2766_s27 = sshll.u32 %s4045_s19, 4  ;;  %s3143_s19 = smov 48  }
 0x6fc   : > { %v2065_v59 = vpop.xlane.xlu1 %2064 }
 0x6fd   : > { %v2049_v17 = vrot.slane %v2048_v14, 2  ;;  %v2066_v13 = vrot.slane %v2065_v59, 4 }
 0x6ff   : > { %v2067_v21 = vadd.f32 %v2066_v13, %v2065_v59  ;;  %v2050_v10 = vadd.f32 %v2049_v17, %v2048_v14 }
 0x701   : > { %v2068_v27 = vrot.slane %v2067_v21, 2  ;;  %v2051_v50 = vrot.slane %v2050_v10, 1 }
 0x703   : > { %v2052_v19 = vadd.f32 %v2051_v50, %v2050_v10  ;;  %v2069_v25 = vadd.f32 %v2068_v27, %v2067_v21 }
 0x705   : > { %2939 = vpush %v2052_v19  ;;  %v2070_v29 = vrot.slane %v2069_v25, 1 }
 0x707   : > { %v2071_v30 = vadd.f32 %v2070_v29, %v2069_v25 }
 0x709   : > { %2941 = vpush %v2071_v30 }
 0x727   : > { %v2844_v40 = vpop.f32.mrf.mxu0 }
 0x728   : > { %v1516_v47 = vmul.f32 %v2844_v40, %v1514_v12  ;;  %v1522_v28 = vmul.f32 %v2844_v40, %v1520_v7  ;;  %v1528_v48 = vmul.f32 %v2844_v40, %v1526_v41  ;;  %v1534_v16 = vmul.f32 %v2844_v40, %v1532_v31 }
 0x729   : > { %v1504_v18 = vpop.f32.mrf.mxu0 }
 0x72a   : > { %v1518_v0 = vadd.f32 %v1516_v47, %v1129_v38  ;;  %v1524_v53 = vadd.f32 %v1522_v28, %v1135_v26  ;;  %v1530_v32 = vadd.f32 %v1528_v48, %v1141_v20  ;;  %v1536_v5 = vadd.f32 %v1534_v16, %v1147_v46  ;;  %v3104_v16 = vld [vmem:[%s4040_s3 + $0x21] ss:$0 sm:$0xff] }
 0x72b   : > { %v1515_v63 = vmul.f32 %v1514_v12, %v1504_v18  ;;  %v1521_v45 = vmul.f32 %v1520_v7, %v1504_v18  ;;  %v1527_v23 = vmul.f32 %v1526_v41, %v1504_v18  ;;  %v1533_v58 = vmul.f32 %v1532_v31, %v1504_v18 }
 0x72d   : > { %v1517_v8 = vadd.f32 %v1515_v63, %v1128_v39  ;;  %v1523_v9 = vadd.f32 %v1521_v45, %v1134_v62  ;;  %v1529_v54 = vadd.f32 %v1527_v23, %v1140_v2  ;;  %v1535_v24 = vadd.f32 %v1533_v58, %v1146_v52  ;;  %v3105_v2 = vld [vmem:[%s4040_s3 + $0x22] ss:$0 sm:$0xff] }
 0x730   : > { %v2858_v14 = vpop.f32.mrf.mxu0 }
 0x731   : > { %v1901_v59 = vmul.f32 %v2858_v14, %v1899_v4  ;;  %v1907_v17 = vmul.f32 %v2858_v14, %v1905_v1  ;;  %v1913_v13 = vmul.f32 %v2858_v14, %v1911_v43  ;;  %v1919_v21 = vmul.f32 %v2858_v14, %v1917_v60 }
 0x732   : > { %v1889_v10 = vpop.f32.mrf.mxu0 }
 0x733   : > { %v3858_v27 = vadd.f32 %v1901_v59, %v1518_v0  ;;  %v3860_v50 = vadd.f32 %v1907_v17, %v1524_v53  ;;  %v3862_v19 = vadd.f32 %v1913_v13, %v1530_v32  ;;  %v3864_v25 = vadd.f32 %v1919_v21, %v1536_v5 }
 0x734   : > { %v1900_v29 = vmul.f32 %v1899_v4, %v1889_v10  ;;  %v1906_v30 = vmul.f32 %v1905_v1, %v1889_v10  ;;  %v1912_v33 = vmul.f32 %v1911_v43, %v1889_v10  ;;  %v1918_v15 = vmul.f32 %v1917_v60, %v1889_v10 }
 0x735   : > { %v2296_v4 = vstv %s2753_s25  ;;  %v2302_v10 = vstv %s2754_s26 }
 0x736   : > { %s2940_s30 = spop %2939  ;;  %v3866_v56 = vadd.f32 %v1900_v29, %v1517_v8  ;;  %v3868_v57 = vadd.f32 %v1906_v30, %v1523_v9  ;;  %v3870_v3 = vadd.f32 %v1912_v33, %v1529_v54  ;;  %v3872_v51 = vadd.f32 %v1918_v15, %v1535_v24 }
 0x737   : > { %s3874_s6 = smul.f32 0.00390625, %s2940_s30  ;;  %v2284_v54 = vstv %s2751_s23  ;;  %v2290_v24 = vstv %s2752_s24 }
 0x738   : > { %v2865_v42 = vpop.f32.mrf.mxu0 }
 0x739   : > { %s2074_s7 = smul.f32 %s3874_s6, %s3874_s6  ;;  %v2175_v35 = vsel %vm886_vm2, %v2865_v42, -inf  ;;  %v2077_v31 = vstv %s3874_s6  ;;  %s253_s6 = scalar_lea.vmem %s4038_s1, %s2766_s27 }
 0x73a   : > { %v2163_v34 = vpop.f32.mrf.mxu0  ;;  %s2942_s8 = spop %2941  ;;  %v2078_v46 = vsub.f32 %v3317_v55, %v2077_v31  ;;  %v2079_v40 = vsub.f32 %v3325_v61, %v2077_v31 }
 0x73b   : > { %v2172_v44 = vsel %vm886_vm2, %v2163_v34, -inf  ;;  %s2073_s9 = smul.f32 0.00390625, %s2942_s8 }
 0x73c   : > { %2173 = vmax.xlane.f32.xlu0 %v2172_v44 }
 0x73d   : > { %s2075_s10 = ssub.f32 %s2073_s9, %s2074_s7 }
 0x73f   : > { %s2076_s11 = smax.f32 %s3138_s22, %s2075_s10 }
 0x740   : > { %s2080_s12 = sadd.f32 1e-06, %s2076_s11  ;;  %2176 = vmax.xlane.f32.xlu0 %v2175_v35 }
 0x742   : > { %v2081_v49 = vstv %s2080_s12 }
 0x743   : > { %3091 = vrsqrt.f32 %v2081_v49 }
 0x750   : > { %v3092_v22 = vpop.eup %3091 }
 0x751   : > { %2943 = vpush %v3092_v22 }
 0x782   : > { %s2944_s13 = spop %2943 }
 0x783   : > { %v2084_v26 = vstv %s2944_s13 }
 0x784   : > { %v2085_v28 = vmul.f32 %v2084_v26, %v2078_v46  ;;  %v2086_v48 = vmul.f32 %v2084_v26, %v2079_v40 }
 0x786   : > { %v2087_v39 = vmul.f32 %v3104_v16, %v2085_v28  ;;  %v2088_v62 = vmul.f32 %v3104_v16, %v2086_v48 }
 0x788   : > { %v2089_v52 = vadd.f32 %v3105_v2, %v2087_v39  ;;  %v2090_v18 = vadd.f32 %v3105_v2, %v2088_v62 }
 0x78a   : > { %v2093_v55 = vmul.f32 0.25, %v2089_v52  ;;  %vm2091_vm10 = vcmp.ge.f32.partialorder %v2089_v52, 0.0  ;;  %v2094_v61 = vmul.f32 0.25, %v2090_v18  ;;  %vm2092_vm11 = vcmp.ge.f32.partialorder %v2090_v18, 0.0 }
 0x78c   : > { %v2095_v0 = vsel %vm2091_vm10, %v2089_v52, %v2093_v55  ;;  %v2096_v53 = vsel %vm2092_vm11, %v2090_v18, %v2094_v61 }
 0x7c5   : > { %v2174_v36 = vpop.xlane.xlu0 %2173 }
 0x7c6   : > { %v2178_v37 = vsub.f32 %v2163_v34, %v2174_v36 }
 0x7c8   : > { %v2180_v11 = vmul.f32 1.442695, %v2178_v37 }
 0x7c9   : > { %v2177_v6 = vpop.xlane.xlu0 %2176 }
 0x7ca   : > { %3093 = vpow2.f32 %v2180_v11  ;;  %v2179_v12 = vsub.f32 %v2865_v42, %v2177_v6 }
 0x7cc   : > { %v2182_v7 = vmul.f32 1.442695, %v2179_v12 }
 0x7ce   : > { %3095 = vpow2.f32 %v2182_v7 }
 0x7d7   : > { %v3094_v41 = vpop.eup %3093 }
 0x7d8   : > { %v2184_v38 = vsel %vm886_vm2, %v3094_v41, 0.0 }
 0x7d9   : > { %2185 = vadd.xlane.f32.xlu0 %v2184_v38 }
 0x7db   : > { %v3096_v20 = vpop.eup %3095 }
 0x7dc   : > { %v2187_v47 = vsel %vm886_vm2, %v3096_v20, 0.0 }
 0x7dd   : > { %2188 = vadd.xlane.f32.xlu1 %v2187_v47 }
 0x7ee   : > { %2196 = vrot.lane.b32.xlu1 %v2095_v0, %s3140_s21  ;;  %v3966_v0 = vld [vmem:[%s253_s6] sm:$0xff] }
 0x7ef   : > { %2198 = vrot.lane.b32.xlu0 %v2096_v53, %s3140_s21  ;;  %v3968_v53 = vld [vmem:[%s253_s6 + $0x8] sm:$0xff]  ;;  %s3983_s6 = sld [smem:[#allocation2 + $0x280]] }
 0x862   : > { %v2186_v32 = vpop.xlane.xlu0 %2185 }
 0x863   : > { %3097 = vrcp.f32 %v2186_v32 }
 0x866   : > { %v2189_v5 = vpop.xlane.xlu1 %2188  ;;  %v2199_v63 = vpop.permute.xlu0 %2198 }
 0x867   : > { %3099 = vrcp.f32 %v2189_v5  ;;  %2866 = vmatprep.subr.mxu1 %v2199_v63 }
 0x868   : > { %2867 = vmatpush3.msra.mxu1 %v2199_v63 }
 0x86a   : > { %v2197_v45 = vpop.permute.xlu1 %2196 }
 0x86b   : > { %2868 = vmatprep.subr.mxu1 %v2197_v45 }
 0x86c   : > { %2869 = vmatpush3.msra.mxu1 %v2197_v45 }
 0x870   : > { %v3098_v23 = vpop.eup %3097 }
 0x871   : > { %v2192_v58 = vmul.f32 %v3098_v23, %v3094_v41 }
 0x873   : > { %2870 = vmatprep.mubr.msk.f32.mxu1 %vm886_vm2, %v2192_v58 }
 0x874   : > { %v3100_v8 = vpop.eup %3099 }
 0x875   : > { %v2193_v9 = vmul.f32 %v3100_v8, %v3096_v20 }
 0x877   : > { %2871 = vmatmul.mubr.msk.f32.vlgmr.msra.gmra.mxu1 %vm886_vm2, %v2193_v9 }
 0x937   : > { %v2872_v1 = vpop.f32.mrf.mxu1 }
 0x938   : > { %v2286_v43 = vmul.f32 %v2872_v1, %v2284_v54  ;;  %v2292_v60 = vmul.f32 %v2872_v1, %v2290_v24  ;;  %v2298_v59 = vmul.f32 %v2872_v1, %v2296_v4  ;;  %v2304_v44 = vmul.f32 %v2872_v1, %v2302_v10 }
 0x939   : > { %v2274_v14 = vpop.f32.mrf.mxu1 }
 0x93a   : > { %v2285_v17 = vmul.f32 %v2284_v54, %v2274_v14  ;;  %v2291_v13 = vmul.f32 %v2290_v24, %v2274_v14  ;;  %v2297_v21 = vmul.f32 %v2296_v4, %v2274_v14  ;;  %v2303_v29 = vmul.f32 %v2302_v10, %v2274_v14 }
 0x93b   : > { %v3897_v30 = vadd.f32 %v2292_v60, %v3860_v50  ;;  %v3900_v33 = vadd.f32 %v2286_v43, %v3858_v27  ;;  %v3916_v49 = vadd.f32 %v2298_v59, %v3862_v19  ;;  %v3937_v7 = vadd.f32 %v2304_v44, %v3864_v25 }
 0x93c   : > { %v3903_v15 = vadd.f32 %v2285_v17, %v3866_v56  ;;  %v3906_v42 = vadd.f32 %v2291_v13, %v3868_v57  ;;  %v3909_v34 = vadd.f32 %v2297_v21, %v3870_v3  ;;  %v3927_v22 = vadd.f32 %v2303_v29, %v3872_v51 }
 0x93d   : > { %v2334_v35 = vsel %vm886_vm2, %v3897_v30, 0.0  ;;  %v2308_v50 = vsel %vm886_vm2, %v3900_v33, 0.0  ;;  %v2347_v3 = vmul.f32 %v3897_v30, %v3897_v30  ;;  %v2362_v51 = vsel %vm886_vm2, %v3916_v49, 0.0 }
 0x93e   : > { %v2333_v27 = vsel %vm886_vm2, %v3906_v42, 0.0  ;;  %v2307_v56 = vsel %vm886_vm2, %v3903_v15, 0.0  ;;  %v2346_v57 = vmul.f32 %v3906_v42, %v3906_v42  ;;  %v2361_v19 = vsel %vm886_vm2, %v3909_v34, 0.0 }
 0x93f   : > { %v2335_v36 = vadd.f32 %v2334_v35, %v2333_v27  ;;  %v2309_v37 = vadd.f32 %v2308_v50, %v2307_v56  ;;  %v2319_v6 = vmul.f32 %v3903_v15, %v3903_v15  ;;  %v2374_v12 = vmul.f32 %v3909_v34, %v3909_v34 }
 0x940   : > { %v2348_v11 = vsel %vm886_vm2, %v2346_v57, 0.0  ;;  %v2349_v41 = vsel %vm886_vm2, %v2347_v3, 0.0  ;;  %v2320_v31 = vmul.f32 %v3900_v33, %v3900_v33  ;;  %v2375_v38 = vmul.f32 %v3916_v49, %v3916_v49 }
 0x941   : > { %2336 = vadd.xlane.f32.xlu0 %v2335_v36  ;;  %2310 = vadd.xlane.f32.xlu1 %v2309_v37  ;;  %v2363_v26 = vadd.f32 %v2362_v51, %v2361_v19  ;;  %v2350_v20 = vadd.f32 %v2349_v41, %v2348_v11  ;;  %v2321_v46 = vsel %vm886_vm2, %v2319_v6, 0.0  ;;  %v2376_v40 = vsel %vm886_vm2, %v2374_v12, 0.0 }
 0x942   : > { %v2402_v25 = vmul.f32 %v3927_v22, %v3927_v22  ;;  %v2322_v47 = vsel %vm886_vm2, %v2320_v31, 0.0  ;;  %v2377_v28 = vsel %vm886_vm2, %v2375_v38, 0.0  ;;  %v2403_v48 = vmul.f32 %v3937_v7, %v3937_v7 }
 0x943   : > { %v2323_v16 = vadd.f32 %v2322_v47, %v2321_v46  ;;  %v2378_v39 = vadd.f32 %v2377_v28, %v2376_v40  ;;  %v2389_v62 = vsel %vm886_vm2, %v3927_v22, 0.0  ;;  %v2390_v52 = vsel %vm886_vm2, %v3937_v7, 0.0 }
 0x944   : > { %v2404_v2 = vsel %vm886_vm2, %v2402_v25, 0.0  ;;  %v2405_v18 = vsel %vm886_vm2, %v2403_v48, 0.0  ;;  %v2391_v55 = vadd.f32 %v2390_v52, %v2389_v62 }
 0x945   : > { %2364 = vadd.xlane.f32.xlu0 %v2363_v26  ;;  %2351 = vadd.xlane.f32.xlu1 %v2350_v20  ;;  %v2406_v61 = vadd.f32 %v2405_v18, %v2404_v2 }
 0x949   : > { %2324 = vadd.xlane.f32.xlu0 %v2323_v16  ;;  %2379 = vadd.xlane.f32.xlu1 %v2378_v39 }
 0x94d   : > { %2392 = vadd.xlane.f32.xlu0 %v2391_v55  ;;  %2407 = vadd.xlane.f32.xlu1 %v2406_v61 }
 0x95e   : > { %2476 = vrot.lane.b32.xlu1 %v3968_v53, %s3137_s28 }
 0x962   : > { %2517 = vrot.lane.b32.xlu1 %v3968_v53, %s3139_s17 }
 0x963   : > { %2474 = vrot.lane.b32.xlu0 %v3966_v0, %s3137_s28 }
 0x966   : > { %2558 = vrot.lane.b32.xlu1 %v3968_v53, %s3140_s21 }
 0x967   : > { %2515 = vrot.lane.b32.xlu0 %v3966_v0, %s3139_s17 }
 0x96b   : > { %2556 = vrot.lane.b32.xlu0 %v3966_v0, %s3140_s21 }
 0x9ca   : > { %v2337_v32 = vpop.xlane.xlu0 %2336  ;;  %v2311_v5 = vpop.xlane.xlu1 %2310 }
 0x9cb   : > { %v2338_v63 = vrot.slane %v2337_v32, 4  ;;  %v2312_v45 = vrot.slane %v2311_v5, 4 }
 0x9cd   : > { %v2313_v23 = vadd.f32 %v2312_v45, %v2311_v5  ;;  %v2339_v58 = vadd.f32 %v2338_v63, %v2337_v32 }
 0x9ce   : > { %v2365_v8 = vpop.xlane.xlu0 %2364  ;;  %v2352_v9 = vpop.xlane.xlu1 %2351 }
 0x9cf   : > { %v2314_v54 = vrot.slane %v2313_v23, 2  ;;  %v2366_v24 = vrot.slane %v2365_v8, 4  ;;  %v2353_v4 = vrot.slane %v2352_v9, 4  ;;  %v2340_v14 = vrot.slane %v2339_v58, 2 }
 0x9d1   : > { %v2367_v1 = vadd.f32 %v2366_v24, %v2365_v8  ;;  %v2354_v43 = vadd.f32 %v2353_v4, %v2352_v9  ;;  %v2315_v60 = vadd.f32 %v2314_v54, %v2313_v23  ;;  %v2341_v3 = vadd.f32 %v2340_v14, %v2339_v58 }
 0x9d2   : > { %v2325_v59 = vpop.xlane.xlu0 %2324  ;;  %v2380_v17 = vpop.xlane.xlu1 %2379  ;;  %v2433_v58 = vstv %s3983_s6 }
 0x9d3   : > { %v2355_v13 = vrot.slane %v2354_v43, 2  ;;  %v2326_v21 = vrot.slane %v2325_v59, 4  ;;  %v2381_v10 = vrot.slane %v2380_v17, 4  ;;  %v2368_v29 = vrot.slane %v2367_v1, 2 }
 0x9d4   : > { %v2316_v44 = vrot.slane %v2315_v60, 1  ;;  %v2342_v26 = vrot.slane %v2341_v3, 1 }
 0x9d5   : > { %v2327_v35 = vadd.f32 %v2326_v21, %v2325_v59  ;;  %v2382_v50 = vadd.f32 %v2381_v10, %v2380_v17  ;;  %v2356_v36 = vadd.f32 %v2355_v13, %v2354_v43  ;;  %v2369_v12 = vadd.f32 %v2368_v29, %v2367_v1 }
 0x9d6   : > { %v2393_v27 = vpop.xlane.xlu0 %2392  ;;  %v2408_v56 = vpop.xlane.xlu1 %2407  ;;  %v2317_v57 = vadd.f32 %v2316_v44, %v2315_v60  ;;  %v2343_v62 = vadd.f32 %v2342_v26, %v2341_v3 }
 0x9d7   : > { %v2328_v37 = vrot.slane %v2327_v35, 2  ;;  %v2383_v19 = vrot.slane %v2382_v50, 2  ;;  %v2394_v11 = vrot.slane %v2393_v27, 4  ;;  %v2409_v6 = vrot.slane %v2408_v56, 4 }
 0x9d8   : > { %2945 = vpush %v2317_v57  ;;  %v2357_v20 = vrot.slane %v2356_v36, 1  ;;  %v2370_v28 = vrot.slane %v2369_v12, 1 }
 0x9d9   : > { %v2395_v51 = vadd.f32 %v2394_v11, %v2393_v27  ;;  %v2410_v41 = vadd.f32 %v2409_v6, %v2408_v56  ;;  %v2329_v31 = vadd.f32 %v2328_v37, %v2327_v35  ;;  %v2384_v38 = vadd.f32 %v2383_v19, %v2382_v50 }
 0x9da   : > { %v2358_v2 = vadd.f32 %v2357_v20, %v2356_v36  ;;  %v2371_v61 = vadd.f32 %v2370_v28, %v2369_v12  ;;  %v2475_v17 = vpop.permute.xlu0 %2474  ;;  %v2477_v26 = vpop.permute.xlu1 %2476 }
 0x9db   : > { %v2396_v46 = vrot.slane %v2395_v51, 2  ;;  %v2411_v40 = vrot.slane %v2410_v41, 2  ;;  %v2330_v25 = vrot.slane %v2329_v31, 1  ;;  %v2385_v47 = vrot.slane %v2384_v38, 1 }
 0x9dd   : > { %v2331_v48 = vadd.f32 %v2330_v25, %v2329_v31  ;;  %v2397_v16 = vadd.f32 %v2396_v46, %v2395_v51  ;;  %v2412_v39 = vadd.f32 %v2411_v40, %v2410_v41  ;;  %v2386_v52 = vadd.f32 %v2385_v47, %v2384_v38 }
 0x9de   : > { %v2516_v6 = vpop.permute.xlu0 %2515 }
 0x9df   : > { %2947 = vpush %v2331_v48  ;;  %v2398_v18 = vrot.slane %v2397_v16, 1  ;;  %v2413_v55 = vrot.slane %v2412_v39, 1 }
 0x9e0   : > { %2949 = vpush %v2343_v62 }
 0x9e1   : > { %2951 = vpush %v2358_v2  ;;  %v2399_v32 = vadd.f32 %v2398_v18, %v2397_v16  ;;  %v2414_v5 = vadd.f32 %v2413_v55, %v2412_v39 }
 0x9e2   : > { %2953 = vpush %v2371_v61  ;;  %v2557_v18 = vpop.permute.xlu0 %2556 }
 0x9e3   : > { %2955 = vpush %v2386_v52 }
 0x9e4   : > { %2957 = vpush %v2399_v32  ;;  %v2518_v32 = vpop.permute.xlu1 %2517 }
 0x9e5   : > { %2959 = vpush %v2414_v5 }
 0xa09   : > { %s2946_s28 = spop %2945 }
 0xa10   : > { %s2948_s17 = spop %2947 }
 0xa11   : > { %s2950_s21 = spop %2949 }
 0xa12   : > { %s2345_s7 = sadd.f32 %s2950_s21, %s2946_s28  ;;  %s2952_s8 = spop %2951 }
 0xa13   : > { %s2360_s9 = sadd.f32 %s2952_s8, %s2948_s17  ;;  %s2954_s10 = spop %2953 }
 0xa14   : > { %s2373_s11 = sadd.f32 %s2954_s10, %s2345_s7  ;;  %s2956_s12 = spop %2955 }
 0xa15   : > { %s2388_s13 = sadd.f32 %s2956_s12, %s2360_s9  ;;  %s2958_s14 = spop %2957 }
 0xa16   : > { %s2401_s15 = sadd.f32 %s2958_s14, %s2373_s11  ;;  %s2960_s16 = spop %2959 }
 0xa17   : > { %s2416_s20 = sadd.f32 %s2960_s16, %s2388_s13  ;;  %s3141_s11 = smov 16  }
 0xa18   : > { %s2417_s23 = smul.f32 0.0009765625, %s2401_s15  ;;  %s3985_s28 = sld [smem:[#allocation2 + $0x281]] }
 0xa19   : > { %s2418_s24 = smul.f32 0.0009765625, %s2416_s20  ;;  %s3987_s17 = sld [smem:[#allocation2 + $0x301]] }
 0xa1a   : > { %s2419_s25 = smul.f32 %s2417_s23, %s2417_s23  ;;  %s3989_s21 = sld [smem:[#allocation2 + $0x282]]  ;;  %v2426_v23 = vstv %s2417_s23 }
 0xa1b   : > { %s3991_s7 = sld [smem:[#allocation2 + $0x283]]  ;;  %v2427_v9 = vsub.f32 %v3903_v15, %v2426_v23  ;;  %v2428_v1 = vsub.f32 %v3900_v33, %v2426_v23  ;;  %v2452_v43 = vsub.f32 %v3906_v42, %v2426_v23  ;;  %v2453_v60 = vsub.f32 %v3897_v30, %v2426_v23  ;;  %s3142_s12 = smov 32  }
 0xa1c   : > { %s2420_s26 = ssub.f32 %s2418_s24, %s2419_s25  ;;  %v2493_v14 = vsub.f32 %v3909_v34, %v2426_v23  ;;  %v2494_v13 = vsub.f32 %v3916_v49, %v2426_v23  ;;  %v2534_v15 = vsub.f32 %v3927_v22, %v2426_v23  ;;  %v2535_v21 = vsub.f32 %v3937_v7, %v2426_v23  ;;  %s4020_s15 = scalar_lea.vmem %s4042_s5, %s2766_s27 }
 0xa1d   : > { %s3995_s8 = sld [smem:[#allocation2 + $0x303]] }
 0xa1e   : > { %s2421_s29 = smax.f32 %s3138_s22, %s2420_s26  ;;  %s3993_s22 = sld [smem:[#allocation2 + $0x302]]  ;;  %v2457_v8 = vstv %s3985_s28 }
 0xa1f   : > { %s2422_s30 = sadd.f32 1e-06, %s2421_s29  ;;  %v2461_v54 = vstv %s3987_s17 }
 0xa20   : > { %s3999_s9 = sld [smem:[#allocation2 + $0x300]]  ;;  %v2498_v24 = vstv %s3989_s21 }
 0xa21   : > { %v2423_v63 = vstv %s2422_s30  ;;  %v2539_v4 = vstv %s3991_s7 }
 0xa22   : > { %3101 = vrsqrt.f32 %v2423_v63 }
 0xa23   : > { %v2543_v56 = vstv %s3995_s8 }
 0xa24   : > { %v2502_v33 = vstv %s3993_s22 }
 0xa26   : > { %v2437_v11 = vstv %s3999_s9 }
 0xa2f   : > { %v3102_v45 = vpop.eup %3101 }
 0xa30   : > { %2961 = vpush %v3102_v45 }
 0xa61   : > { %s2962_s10 = spop %2961 }
 0xa62   : > { %v2429_v59 = vstv %s2962_s10 }
 0xa63   : > { %v2430_v10 = vmul.f32 %v2429_v59, %v2427_v9  ;;  %v2431_v29 = vmul.f32 %v2429_v59, %v2428_v1  ;;  %v2454_v44 = vmul.f32 %v2452_v43, %v2429_v59  ;;  %v2455_v35 = vmul.f32 %v2453_v60, %v2429_v59  ;;  %v2559_v43 = vpop.permute.xlu1 %2558 }
 0xa64   : > { %v2495_v42 = vmul.f32 %v2493_v14, %v2429_v59  ;;  %v2496_v50 = vmul.f32 %v2494_v13, %v2429_v59  ;;  %v2536_v30 = vmul.f32 %v2534_v15, %v2429_v59  ;;  %v2537_v57 = vmul.f32 %v2535_v21, %v2429_v59 }
 0xa65   : > { %v2458_v27 = vmul.f32 %v2457_v8, %v2454_v44  ;;  %v2459_v34 = vmul.f32 %v2457_v8, %v2455_v35  ;;  %v2434_v3 = vmul.f32 %v2433_v58, %v2430_v10  ;;  %v2435_v22 = vmul.f32 %v2433_v58, %v2431_v29 }
 0xa66   : > { %v2499_v36 = vmul.f32 %v2498_v24, %v2495_v42  ;;  %v2500_v49 = vmul.f32 %v2498_v24, %v2496_v50  ;;  %v2540_v37 = vmul.f32 %v2539_v4, %v2536_v30  ;;  %v2541_v20 = vmul.f32 %v2539_v4, %v2537_v57 }
 0xa67   : > { %v2462_v19 = vadd.f32 %v2461_v54, %v2458_v27  ;;  %v2463_v7 = vadd.f32 %v2461_v54, %v2459_v34  ;;  %v2438_v40 = vadd.f32 %v2437_v11, %v2434_v3  ;;  %v2439_v28 = vadd.f32 %v2437_v11, %v2435_v22 }
 0xa68   : > { %v2503_v12 = vadd.f32 %v2502_v33, %v2499_v36  ;;  %v2504_v51 = vadd.f32 %v2502_v33, %v2500_v49  ;;  %v2544_v41 = vadd.f32 %v2543_v56, %v2540_v37  ;;  %v2545_v52 = vadd.f32 %v2543_v56, %v2541_v20 }
 0xa69   : > { %vm2464_vm12 = vcmp.ge.f32.partialorder %v2462_v19, 0.0  ;;  %v2466_v31 = vmul.f32 0.25, %v2462_v19  ;;  %v2467_v38 = vmul.f32 0.25, %v2463_v7  ;;  %vm2465_vm13 = vcmp.ge.f32.partialorder %v2463_v7, 0.0 }
 0xa6a   : > { %vm2505_vm14 = vcmp.ge.f32.partialorder %v2503_v12, 0.0  ;;  %v2507_v46 = vmul.f32 0.25, %v2503_v12  ;;  %vm2546_vm15 = vcmp.ge.f32.partialorder %v2544_v41, 0.0  ;;  %v2548_v47 = vmul.f32 0.25, %v2544_v41 }
 0xa6b   : > { %v2468_v25 = vsel %vm2464_vm12, %v2462_v19, %v2466_v31  ;;  %v2508_v39 = vmul.f32 0.25, %v2504_v51  ;;  %v2469_v62 = vsel %vm2465_vm13, %v2463_v7, %v2467_v38  ;;  %vm2506_vm0 = vcmp.ge.f32.partialorder %v2504_v51, 0.0 }
 0xa6c   : > { %v2480_v48 = vadd.f32 %v2475_v17, %v2468_v25  ;;  %v2509_v16 = vsel %vm2505_vm14, %v2503_v12, %v2507_v46  ;;  %v2550_v55 = vsel %vm2546_vm15, %v2544_v41, %v2548_v47  ;;  %vm2440_vm1 = vcmp.ge.f32.partialorder %v2438_v40, 0.0 }
 0xa6d   : > { %v2521_v2 = vadd.f32 %v2516_v6, %v2509_v16  ;;  %v2442_v61 = vmul.f32 0.25, %v2438_v40  ;;  %vm2441_vm3 = vcmp.ge.f32.partialorder %v2439_v28, 0.0  ;;  %v2443_v5 = vmul.f32 0.25, %v2439_v28 }
 0xa6e   : > { %2484 = vrot.lane.b32.xlu1 %v2480_v48, %s3141_s11  ;;  %v2481_v63 = vadd.f32 %v2477_v26, %v2469_v62  ;;  %v2510_v45 = vsel %vm2506_vm0, %v2504_v51, %v2508_v39  ;;  %v2562_v58 = vadd.f32 %v2557_v18, %v2550_v55  ;;  %v2549_v8 = vmul.f32 0.25, %v2545_v52 }
 0xa6f   : > { %2525 = vrot.lane.b32.xlu0 %v2521_v2, %s3142_s12  ;;  %v2444_v23 = vsel %vm2440_vm1, %v2438_v40, %v2442_v61  ;;  %v2445_v54 = vsel %vm2441_vm3, %v2439_v28, %v2443_v5  ;;  %vm2547_vm4 = vcmp.ge.f32.partialorder %v2545_v52, 0.0  ;;  %v2522_v4 = vadd.f32 %v2518_v32, %v2510_v45 }
 0xa70   : > { %v2448_v9 = vadd.f32 %v3966_v0, %v2444_v23  ;;  %v2449_v24 = vadd.f32 %v3968_v53, %v2445_v54  ;;  %v2551_v1 = vsel %vm2547_vm4, %v2545_v52, %v2549_v8 }
 0xa71   : > { %v2563_v0 = vadd.f32 %v2559_v43, %v2551_v1 }
 0xa72   : > { %2486 = vrot.lane.b32.xlu1 %v2481_v63, %s3141_s11  ;;  %2450 = vst.msk [vmem:[%s4020_s15] sm:$0xff] %vm886_vm2, %v2448_v9  ;;  %2451 = vst.msk [vmem:[%s4020_s15 + $0x8] sm:$0xff] %vm886_vm2, %v2449_v24 }
 0xa73   : > { %2566 = vrot.lane.b32.xlu0 %v2562_v58, %s3143_s19 }
 0xa76   : > { %2527 = vrot.lane.b32.xlu1 %v2522_v4, %s3142_s12 }
 0xa7a   : > { %2568 = vrot.lane.b32.xlu1 %v2563_v0, %s3143_s19 }
 0xae0   : > { %v2485_v53 = vpop.permute.xlu1 %2484 }
 0xae1   : > { %v2526_v60 = vpop.permute.xlu0 %2525  ;;  %2491 = vst.msk [vmem:[%s4020_s15] sm:$0xff] %vm2490_vm5, %v2485_v53 }
 0xae2   : > { %2532 = vst.msk [vmem:[%s4020_s15] sm:$0xff] %vm2531_vm6, %v2526_v60 }
 0xae4   : > { %v2487_v14 = vpop.permute.xlu1 %2486 }
 0xae5   : > { %v2567_v59 = vpop.permute.xlu0 %2566  ;;  %2492 = vst.msk [vmem:[%s4020_s15 + $0x8] sm:$0xff] %vm2490_vm5, %v2487_v14 }
 0xae6   : > { %2573 = vst.msk [vmem:[%s4020_s15] sm:$0xff] %vm2572_vm7, %v2567_v59 }
 0xae8   : > { %v2528_v17 = vpop.permute.xlu1 %2527 }
 0xae9   : > { %2533 = vst.msk [vmem:[%s4020_s15 + $0x8] sm:$0xff] %vm2531_vm6, %v2528_v17 }
 0xaec   : > { %v2569_v13 = vpop.permute.xlu1 %2568 }
 0xaed   : > { %2574 = vst.msk [vmem:[%s4020_s15 + $0x8] sm:$0xff] %vm2572_vm7, %v2569_v13 }
 0xaee PF: > { %s16_s18 = sadd.s32 1, %s3131_s18  }
 0xaef   : > { %p13_p1 = scmp.ge.s32.totalorder %s16_s18, 4  }
 0xaf1   :  { %15 = sbr.rel (!%p13_p1) target bundleno = 1 (0x1), region = 79 }
 0xaf6   :  { %2596 = vsyncpa [#allocation3], 1 }
 0xaf7   :  { %2598 = vsyncpa [#allocation3 + $0x1], 1 }

</bundles_post_ra>
